<compile_context>
chip_gen: v6e
topology: v6e:2x2x1
jax: 0.10.0
libtpu: 0.0.40
codegen_flags: <defaults>
</compile_context>

<pallas_src>
import jax
import jax.numpy as jnp
import numpy as np
from jax import lax
from jax.experimental import pallas as pl
from jax.experimental.pallas import tpu as pltpu

LN_EPS = 1e-5


def _round_up(v, m):
    return (v + m - 1) // m * m


def _layernorm(h, gamma, beta):
    # one-pass variance: E[h^2] - mu^2
    mu = jnp.mean(h, axis=-1, keepdims=True)
    var = jnp.maximum(jnp.mean(h * h, axis=-1, keepdims=True) - mu * mu, 0.0)
    return (h - mu) * lax.rsqrt(var + LN_EPS) * gamma + beta


# --------------------------- fused message-passing block kernel ---------------------------

def gnn_block_kernel(
    # data tiles
    x_ref, xsrc_ref, e_ref, dst_ref,
    # edge MLP params (first layer split: src / dst / edge)
    ew1s_ref, ew1d_ref, ew1e_ref, eb1_ref, ew2_ref, eb2_ref, ew3_ref, eb3_ref,
    eg_ref, ebt_ref,
    # node MLP params (first layer split: x / agg)
    nw1x_ref, nw1a_ref, nb1_ref, nw2_ref, nb2_ref, nw3_ref, nb3_ref,
    ng_ref, nbt_ref,
    # outputs
    x_out_ref, e_out_ref,
    # scratch
    agg_ref,
):
    i = pl.program_id(0)                 # node-tile index
    t = pl.program_id(1)                 # edge-tile index within this node tile's segment
    node_tile = x_ref.shape[0]
    edge_tile = e_ref.shape[0]

    @pl.when(t == 0)
    def _init():
        agg_ref[...] = jnp.zeros_like(agg_ref)

    x_f32 = x_ref[...]
    x_bf = x_f32.astype(jnp.bfloat16)
    e_f32 = e_ref[...]
    e_bf = e_f32.astype(jnp.bfloat16)
    x_src = xsrc_ref[...]                # [Et, Dn] bf16 (gathered in wrapper)

    # One-hot of dst within this 128-node tile, built in-register from int32 ids
    # (padding rows carry dst = -1 -> all-zero rows -> contribute nothing).
    lane = lax.broadcasted_iota(jnp.int32, (edge_tile, node_tile), 1)
    onehot = (dst_ref[...] == i * node_tile + lane).astype(jnp.bfloat16)   # [Et, Nt]

    # Gather destination-node rows from the resident node tile (MXU row-select).
    x_dst = jnp.dot(onehot, x_bf, preferred_element_type=jnp.float32).astype(jnp.bfloat16)

    # ---- Edge MLP: split first layer (no lane-axis concat), bf16 MXU, f32 accum ----
    h = (jnp.dot(x_src, ew1s_ref[...], preferred_element_type=jnp.float32)
         + jnp.dot(x_dst, ew1d_ref[...], preferred_element_type=jnp.float32)
         + jnp.dot(e_bf, ew1e_ref[...], preferred_element_type=jnp.float32)
         + eb1_ref[...])
    h = jax.nn.silu(h)
    h = jax.nn.silu(
        jnp.dot(h.astype(jnp.bfloat16), ew2_ref[...], preferred_element_type=jnp.float32)
        + eb2_ref[...])
    h = (jnp.dot(h.astype(jnp.bfloat16), ew3_ref[...], preferred_element_type=jnp.float32)
         + eb3_ref[...])
    e_new = _layernorm(h, eg_ref[...], ebt_ref[...]) + e_f32
    e_out_ref[...] = e_new

    # ---- Scatter-sum into the node-tile accumulator (MXU, contract over edge axis) ----
    agg_ref[...] += lax.dot_general(
        onehot, e_new.astype(jnp.bfloat16),
        (((0,), (0,)), ((), ())), preferred_element_type=jnp.float32)

    # ---- Node MLP on the last edge tile of this node tile's segment ----
    @pl.when(t == pl.num_programs(1) - 1)
    def _node_update():
        agg_bf = agg_ref[...].astype(jnp.bfloat16)
        g = (jnp.dot(x_bf, nw1x_ref[...], preferred_element_type=jnp.float32)
             + jnp.dot(agg_bf, nw1a_ref[...], preferred_element_type=jnp.float32)
             + nb1_ref[...])
        g = jax.nn.silu(g)
        g = jax.nn.silu(
            jnp.dot(g.astype(jnp.bfloat16), nw2_ref[...], preferred_element_type=jnp.float32)
            + nb2_ref[...])
        g = (jnp.dot(g.astype(jnp.bfloat16), nw3_ref[...], preferred_element_type=jnp.float32)
             + nb3_ref[...])
        x_out_ref[...] = _layernorm(g, ng_ref[...], nbt_ref[...]) + x_f32


def gnn_block_pallas(x_pad, xsrc_bf, e_pad, dst_col, edge_params, node_params,
                     *, node_tile, edge_tile, tiles_per_seg):
    n_pad, dn = x_pad.shape
    e_tot, de = e_pad.shape
    num_node_tiles = n_pad // node_tile
    T = tiles_per_seg

    def edge_block_idx(i, t):
        return (i * T + t, 0)

    in_specs = [
        pl.BlockSpec((node_tile, dn), lambda i, t: (i, 0)),    # x node tile (resident over t)
        pl.BlockSpec((edge_tile, dn), edge_block_idx),         # gathered source rows (bf16)
        pl.BlockSpec((edge_tile, de), edge_block_idx),         # edge features (f32)
        pl.BlockSpec((edge_tile, 1), edge_block_idx),          # dst ids (int32, -1 = padding)
    ]
    params = tuple(edge_params) + tuple(node_params)
    for p in params:                                           # weights: full block, resident
        in_specs.append(pl.BlockSpec(p.shape, lambda i, t: (0, 0)))

    out_specs = (
        pl.BlockSpec((node_tile, dn), lambda i, t: (i, 0)),
        pl.BlockSpec((edge_tile, de), edge_block_idx),
    )

    return pl.pallas_call(
        gnn_block_kernel,
        grid=(num_node_tiles, T),
        in_specs=in_specs,
        out_specs=out_specs,
        out_shape=(
            jax.ShapeDtypeStruct((n_pad, dn), jnp.float32),
            jax.ShapeDtypeStruct((e_tot, de), jnp.float32),
        ),
        scratch_shapes=[pltpu.VMEM((node_tile, de), jnp.float32)],
        input_output_aliases={2: 1},       # edge buffer updated in place across blocks
        compiler_params=pltpu.CompilerParams(
            dimension_semantics=("parallel", "arbitrary"),
            vmem_limit_bytes=32 * 1024 * 1024,
        ),
    )(x_pad, xsrc_bf, e_pad, dst_col, *params)


# --------------------------- graph preprocessing (host, once) ---------------------------

def build_graph_layout(edge_index, n_nodes, node_tile, edge_tile):
    """Bucket edges by destination node tile into a fixed-stride padded layout."""
    edge_index = np.asarray(edge_index)
    src = edge_index[0].astype(np.int32)
    dst = edge_index[1].astype(np.int32)
    E = src.shape[0]
    n_pad = _round_up(n_nodes, node_tile)
    num_node_tiles = n_pad // node_tile

    tile_of_edge = dst // node_tile
    counts = np.bincount(tile_of_edge, minlength=num_node_tiles)
    seg_cap = _round_up(max(int(counts.max()), 1), edge_tile)     # slots per node tile
    e_pad_total = num_node_tiles * seg_cap

    order = np.argsort(tile_of_edge, kind="stable")
    starts = np.zeros(num_node_tiles, np.int64)
    starts[1:] = np.cumsum(counts)[:-1]
    pos = np.arange(E) - starts[tile_of_edge[order]]
    slots = tile_of_edge[order] * seg_cap + pos

    src_pad = np.zeros(e_pad_total, np.int32)
    dst_pad = np.full(e_pad_total, -1, np.int32)                  # -1 marks padding rows
    perm = np.zeros(e_pad_total, np.int32)
    valid = np.zeros(e_pad_total, np.bool_)
    src_pad[slots] = src[order]
    dst_pad[slots] = dst[order]
    perm[slots] = order.astype(np.int32)
    valid[slots] = True

    return dict(
        n_nodes=int(n_nodes), n_pad=int(n_pad),
        tiles_per_seg=int(seg_cap // edge_tile),
        src_pad=jnp.asarray(src_pad),
        dst_col=jnp.asarray(dst_pad.reshape(-1, 1)),
        edge_perm=jnp.asarray(perm),
        edge_valid=jnp.asarray(valid),
    )


def make_processor_forward(graph, node_tile, edge_tile):
    n_nodes = graph["n_nodes"]
    n_pad = graph["n_pad"]
    T = graph["tiles_per_seg"]
    src_pad = graph["src_pad"]
    dst_col = graph["dst_col"]
    edge_perm = graph["edge_perm"]
    edge_valid = graph["edge_valid"]

    @jax.jit
    def forward(x, edge_attr, blocks_params):
        dn = x.shape[1]
        x_pad = jnp.zeros((n_pad, dn), jnp.float32).at[:n_nodes].set(x)
        e_pad = jnp.where(edge_valid[:, None], edge_attr[edge_perm], 0.0)
        for edge_params, node_params in blocks_params:
            # gather source rows in bf16 (halves gather traffic vs f32)
            xsrc_bf = jnp.take(x_pad.astype(jnp.bfloat16), src_pad, axis=0)
            x_pad, e_pad = gnn_block_pallas(
                x_pad, xsrc_bf, e_pad, dst_col, edge_params, node_params,
                node_tile=node_tile, edge_tile=edge_tile, tiles_per_seg=T)
        return x_pad[:n_nodes]

    return forward


# --------------------------- deterministic parameter init ---------------------------

def _w(key, i, o, scale):
    return (jax.random.normal(key, (i, o), jnp.float32) * scale).astype(jnp.bfloat16)


def init_edge_mlp(key, node_dim, edge_dim, hidden):
    ks = jax.random.split(key, 8)
    s1 = 1.0 / np.sqrt(2 * node_dim + edge_dim)
    w1s = _w(ks[0], node_dim, hidden, s1)
    w1d = _w(ks[1], node_dim, hidden, s1)
    w1e = _w(ks[2], edge_dim, hidden, s1)
    b1 = 0.01 * jax.random.normal(ks[3], (1, hidden), jnp.float32)
    w2 = _w(ks[4], hidden, hidden, 1.0 / np.sqrt(hidden))
    b2 = 0.01 * jax.random.normal(ks[5], (1, hidden), jnp.float32)
    w3 = _w(ks[6], hidden, edge_dim, 1.0 / np.sqrt(hidden))
    b3 = 0.01 * jax.random.normal(ks[7], (1, edge_dim), jnp.float32)
    gamma = jnp.ones((1, edge_dim), jnp.float32)
    beta = jnp.zeros((1, edge_dim), jnp.float32)
    return (w1s, w1d, w1e, b1, w2, b2, w3, b3, gamma, beta)


def init_node_mlp(key, node_dim, edge_dim, hidden):
    ks = jax.random.split(key, 7)
    s1 = 1.0 / np.sqrt(node_dim + edge_dim)
    w1x = _w(ks[0], node_dim, hidden, s1)
    w1a = _w(ks[1], edge_dim, hidden, s1)
    b1 = 0.01 * jax.random.normal(ks[2], (1, hidden), jnp.float32)
    w2 = _w(ks[3], hidden, hidden, 1.0 / np.sqrt(hidden))
    b2 = 0.01 * jax.random.normal(ks[4], (1, hidden), jnp.float32)
    w3 = _w(ks[5], hidden, node_dim, 1.0 / np.sqrt(hidden))
    b3 = 0.01 * jax.random.normal(ks[6], (1, node_dim), jnp.float32)
    gamma = jnp.ones((1, node_dim), jnp.float32)
    beta = jnp.zeros((1, node_dim), jnp.float32)
    return (w1x, w1a, b1, w2, b2, w3, b3, gamma, beta)


def init_processor_params(key, num_blocks, node_dim, edge_dim, hidden_node, hidden_edge):
    blocks = []
    for b in range(num_blocks):
        ke, kn = jax.random.split(jax.random.fold_in(key, b))
        blocks.append((init_edge_mlp(ke, node_dim, edge_dim, hidden_edge),
                       init_node_mlp(kn, node_dim, edge_dim, hidden_node)))
    return blocks


# --------------------------- pure-JAX reference (bf16 matmul inputs, f32 accum) ---------------------------

def _mm(a, w):
    return jnp.dot(a.astype(jnp.bfloat16), w.astype(jnp.bfloat16),
                   preferred_element_type=jnp.float32)


def processor_ref(x, edge_index, edge_attr, blocks_params):
    src, dst = edge_index[0], edge_index[1]
    n_nodes = x.shape[0]
    for edge_params, node_params in blocks_params:
        w1s, w1d, w1e, b1, w2, b2, w3, b3, g, bt = edge_params
        h = _mm(x[src], w1s) + _mm(x[dst], w1d) + _mm(edge_attr, w1e) + b1
        h = jax.nn.silu(h)
        h = jax.nn.silu(_mm(h, w2) + b2)
        h = _mm(h, w3) + b3
        edge_attr = _layernorm(h, g, bt) + edge_attr

        agg = jax.ops.segment_sum(
            edge_attr.astype(jnp.bfloat16).astype(jnp.float32), dst, num_segments=n_nodes)

        nw1x, nw1a, nb1, nw2, nb2, nw3, nb3, ng, nbt = node_params
        gph = _mm(x, nw1x) + _mm(agg, nw1a) + nb1
        gph = jax.nn.silu(gph)
        gph = jax.nn.silu(_mm(gph, nw2) + nb2)
        gph = _mm(gph, nw3) + nb3
        x = _layernorm(gph, ng, nbt) + x
    return x


if __name__ == "__main__":
    key = jax.random.PRNGKey(0)
    kx, ke, ksrc, kdst, kp = jax.random.split(key, 5)

    # Small shapes consistent with Processor (lane-dense 128-wide features; module default is 256).
    N_NODES, N_EDGES = 200, 600
    NODE_DIM = EDGE_DIM = HIDDEN = 128
    NUM_BLOCKS = 2
    NODE_TILE, EDGE_TILE = 128, 256

    x = jax.random.normal(kx, (N_NODES, NODE_DIM), jnp.float32)
    edge_attr = jax.random.normal(ke, (N_EDGES, EDGE_DIM), jnp.float32)
    src = jax.random.randint(ksrc, (N_EDGES,), 0, N_NODES, dtype=jnp.int32)
    dst = jax.random.randint(kdst, (N_EDGES,), 0, N_NODES, dtype=jnp.int32)
    edge_index = jnp.stack([src, dst])

    params = init_processor_params(kp, NUM_BLOCKS, NODE_DIM, EDGE_DIM, HIDDEN, HIDDEN)

    graph = build_graph_layout(np.asarray(edge_index), N_NODES, NODE_TILE, EDGE_TILE)
    forward = make_processor_forward(graph, NODE_TILE, EDGE_TILE)

    out = jax.block_until_ready(forward(x, edge_attr, params))
    ref = jax.block_until_ready(processor_ref(x, edge_index, edge_attr, params))

    np.testing.assert_allclose(np.asarray(out), np.asarray(ref), rtol=2e-2, atol=2e-2)
    print("KERNEL_OK")
</pallas_src>

<mosaic_0001>
module attributes {stable_mosaic.version = 11 : i64} {
  func.func @gnn_block_kernel(%arg0: i32, %arg1: i32, %arg2: memref<128x128xf32, #tpu.memory_space<vmem>>, %arg3: memref<256x128xbf16, #tpu.memory_space<vmem>>, %arg4: memref<256x128xf32, #tpu.memory_space<vmem>>, %arg5: memref<256x1xi32, #tpu.memory_space<vmem>>, %arg6: memref<128x128xbf16, #tpu.memory_space<vmem>>, %arg7: memref<128x128xbf16, #tpu.memory_space<vmem>>, %arg8: memref<128x128xbf16, #tpu.memory_space<vmem>>, %arg9: memref<1x128xf32, #tpu.memory_space<vmem>>, %arg10: memref<128x128xbf16, #tpu.memory_space<vmem>>, %arg11: memref<1x128xf32, #tpu.memory_space<vmem>>, %arg12: memref<128x128xbf16, #tpu.memory_space<vmem>>, %arg13: memref<1x128xf32, #tpu.memory_space<vmem>>, %arg14: memref<1x128xf32, #tpu.memory_space<vmem>>, %arg15: memref<1x128xf32, #tpu.memory_space<vmem>>, %arg16: memref<128x128xbf16, #tpu.memory_space<vmem>>, %arg17: memref<128x128xbf16, #tpu.memory_space<vmem>>, %arg18: memref<1x128xf32, #tpu.memory_space<vmem>>, %arg19: memref<128x128xbf16, #tpu.memory_space<vmem>>, %arg20: memref<1x128xf32, #tpu.memory_space<vmem>>, %arg21: memref<128x128xbf16, #tpu.memory_space<vmem>>, %arg22: memref<1x128xf32, #tpu.memory_space<vmem>>, %arg23: memref<1x128xf32, #tpu.memory_space<vmem>>, %arg24: memref<1x128xf32, #tpu.memory_space<vmem>>, %arg25: memref<128x128xf32, #tpu.memory_space<vmem>>, %arg26: memref<256x128xf32, #tpu.memory_space<vmem>>, %arg27: memref<128x128xf32, #tpu.memory_space<vmem>>) attributes {dimension_semantics = [#tpu.dimension_semantics<parallel>, #tpu.dimension_semantics<arbitrary>], iteration_bounds = array<i64: 2, 2>, scalar_prefetch = 0 : i64, scratch_operands = 1 : i64, tpu.core_type = #tpu.core_type<tc>, window_params = [{transform_indices = @transform_0, window_bounds = array<i64: 128, 128>}, {transform_indices = @transform_1, window_bounds = array<i64: 256, 128>}, {transform_indices = @transform_2, window_bounds = array<i64: 256, 128>}, {transform_indices = @transform_3, window_bounds = array<i64: 256, 1>}, {pipeline_mode = #tpu.pipeline_mode<synchronous>, transform_indices = @transform_4, window_bounds = array<i64: 128, 128>}, {pipeline_mode = #tpu.pipeline_mode<synchronous>, transform_indices = @transform_5, window_bounds = array<i64: 128, 128>}, {pipeline_mode = #tpu.pipeline_mode<synchronous>, transform_indices = @transform_6, window_bounds = array<i64: 128, 128>}, {pipeline_mode = #tpu.pipeline_mode<synchronous>, transform_indices = @transform_7, window_bounds = array<i64: 1, 128>}, {pipeline_mode = #tpu.pipeline_mode<synchronous>, transform_indices = @transform_8, window_bounds = array<i64: 128, 128>}, {pipeline_mode = #tpu.pipeline_mode<synchronous>, transform_indices = @transform_9, window_bounds = array<i64: 1, 128>}, {pipeline_mode = #tpu.pipeline_mode<synchronous>, transform_indices = @transform_10, window_bounds = array<i64: 128, 128>}, {pipeline_mode = #tpu.pipeline_mode<synchronous>, transform_indices = @transform_11, window_bounds = array<i64: 1, 128>}, {pipeline_mode = #tpu.pipeline_mode<synchronous>, transform_indices = @transform_12, window_bounds = array<i64: 1, 128>}, {pipeline_mode = #tpu.pipeline_mode<synchronous>, transform_indices = @transform_13, window_bounds = array<i64: 1, 128>}, {pipeline_mode = #tpu.pipeline_mode<synchronous>, transform_indices = @transform_14, window_bounds = array<i64: 128, 128>}, {pipeline_mode = #tpu.pipeline_mode<synchronous>, transform_indices = @transform_15, window_bounds = array<i64: 128, 128>}, {pipeline_mode = #tpu.pipeline_mode<synchronous>, transform_indices = @transform_16, window_bounds = array<i64: 1, 128>}, {pipeline_mode = #tpu.pipeline_mode<synchronous>, transform_indices = @transform_17, window_bounds = array<i64: 128, 128>}, {pipeline_mode = #tpu.pipeline_mode<synchronous>, transform_indices = @transform_18, window_bounds = array<i64: 1, 128>}, {pipeline_mode = #tpu.pipeline_mode<synchronous>, transform_indices = @transform_19, window_bounds = array<i64: 128, 128>}, {pipeline_mode = #tpu.pipeline_mode<synchronous>, transform_indices = @transform_20, window_bounds = array<i64: 1, 128>}, {pipeline_mode = #tpu.pipeline_mode<synchronous>, transform_indices = @transform_21, window_bounds = array<i64: 1, 128>}, {pipeline_mode = #tpu.pipeline_mode<synchronous>, transform_indices = @transform_22, window_bounds = array<i64: 1, 128>}, {transform_indices = @transform_23, window_bounds = array<i64: 128, 128>}, {transform_indices = @transform_24, window_bounds = array<i64: 256, 128>}]} {
    %c0_i32 = arith.constant 0 : i32
    %0 = arith.cmpi eq, %arg1, %c0_i32 : i32
    %1 = arith.extui %0 : i1 to i32
    %c0_i32_0 = arith.constant 0 : i32
    %2 = arith.cmpi ne, %1, %c0_i32_0 : i32
    scf.if %2 {
      %cst_49 = arith.constant 0.000000e+00 : f32
      %91 = vector.broadcast %cst_49 : f32 to vector<128x128xf32>
      %c0_50 = arith.constant 0 : index
      %c0_51 = arith.constant 0 : index
      %92 = vector.load %arg27[%c0_50, %c0_51] : memref<128x128xf32, #tpu.memory_space<vmem>>, vector<128x128xf32>
      tpu.vector_store %arg27[%c0_50, %c0_51], %91 {strides = array<i32>} : memref<128x128xf32, #tpu.memory_space<vmem>>, vector<128x128xf32>,
    } else {
    }
    %c0 = arith.constant 0 : index
    %c0_1 = arith.constant 0 : index
    %3 = vector.load %arg2[%c0, %c0_1] : memref<128x128xf32, #tpu.memory_space<vmem>>, vector<128x128xf32>
    %4 = arith.truncf %3 : vector<128x128xf32> to vector<128x128xbf16>
    %c0_2 = arith.constant 0 : index
    %c0_3 = arith.constant 0 : index
    %5 = vector.load %arg4[%c0_2, %c0_3] : memref<256x128xf32, #tpu.memory_space<vmem>>, vector<256x128xf32>
    %6 = arith.truncf %5 : vector<256x128xf32> to vector<256x128xbf16>
    %c0_4 = arith.constant 0 : index
    %c0_5 = arith.constant 0 : index
    %7 = vector.load %arg3[%c0_4, %c0_5] : memref<256x128xbf16, #tpu.memory_space<vmem>>, vector<256x128xbf16>
    %8 = tpu.iota {dimensions = array<i32: 1>} : vector<256x128xi32>
    %c0_6 = arith.constant 0 : index
    %c0_7 = arith.constant 0 : index
    %9 = vector.load %arg5[%c0_6, %c0_7] : memref<256x1xi32, #tpu.memory_space<vmem>>, vector<256x1xi32>
    %c128_i32 = arith.constant 128 : i32
    %10 = arith.muli %arg0, %c128_i32 : i32
    %11 = vector.broadcast %10 : i32 to vector<256x128xi32>
    %12 = arith.addi %11, %8 : vector<256x128xi32>
    %13 = vector.broadcast %9 : vector<256x1xi32> to vector<256x128xi32>
    %14 = arith.cmpi eq, %13, %12 : vector<256x128xi32>
    %15 = arith.extui %14 : vector<256x128xi1> to vector<256x128xi32>
    %16 = arith.sitofp %15 : vector<256x128xi32> to vector<256x128xf32>
    %17 = arith.truncf %16 : vector<256x128xf32> to vector<256x128xbf16>
    %cst = arith.constant dense<0.000000e+00> : vector<256x128xf32>
    %18 = tpu.matmul %17, %4, %cst {dimension_numbers = #tpu.dot_dimension_numbers<[1], [0], [0], [1], [0, 0, 1, 1], [], []>} : vector<256x128xbf16>, vector<128x128xbf16>, vector<256x128xf32> -> vector<256x128xf32>
    %19 = arith.truncf %18 : vector<256x128xf32> to vector<256x128xbf16>
    %c0_8 = arith.constant 0 : index
    %c0_9 = arith.constant 0 : index
    %20 = vector.load %arg6[%c0_8, %c0_9] : memref<128x128xbf16, #tpu.memory_space<vmem>>, vector<128x128xbf16>
    %cst_10 = arith.constant dense<0.000000e+00> : vector<256x128xf32>
    %21 = tpu.matmul %7, %20, %cst_10 {dimension_numbers = #tpu.dot_dimension_numbers<[1], [0], [0], [1], [0, 0, 1, 1], [], []>} : vector<256x128xbf16>, vector<128x128xbf16>, vector<256x128xf32> -> vector<256x128xf32>
    %c0_11 = arith.constant 0 : index
    %c0_12 = arith.constant 0 : index
    %22 = vector.load %arg7[%c0_11, %c0_12] : memref<128x128xbf16, #tpu.memory_space<vmem>>, vector<128x128xbf16>
    %cst_13 = arith.constant dense<0.000000e+00> : vector<256x128xf32>
    %23 = tpu.matmul %19, %22, %cst_13 {dimension_numbers = #tpu.dot_dimension_numbers<[1], [0], [0], [1], [0, 0, 1, 1], [], []>} : vector<256x128xbf16>, vector<128x128xbf16>, vector<256x128xf32> -> vector<256x128xf32>
    %24 = arith.addf %21, %23 : vector<256x128xf32>
    %c0_14 = arith.constant 0 : index
    %c0_15 = arith.constant 0 : index
    %25 = vector.load %arg8[%c0_14, %c0_15] : memref<128x128xbf16, #tpu.memory_space<vmem>>, vector<128x128xbf16>
    %cst_16 = arith.constant dense<0.000000e+00> : vector<256x128xf32>
    %26 = tpu.matmul %6, %25, %cst_16 {dimension_numbers = #tpu.dot_dimension_numbers<[1], [0], [0], [1], [0, 0, 1, 1], [], []>} : vector<256x128xbf16>, vector<128x128xbf16>, vector<256x128xf32> -> vector<256x128xf32>
    %27 = arith.addf %24, %26 : vector<256x128xf32>
    %c0_17 = arith.constant 0 : index
    %c0_18 = arith.constant 0 : index
    %28 = vector.load %arg9[%c0_17, %c0_18] : memref<1x128xf32, #tpu.memory_space<vmem>>, vector<1x128xf32>
    %29 = vector.broadcast %28 : vector<1x128xf32> to vector<256x128xf32>
    %30 = arith.addf %27, %29 : vector<256x128xf32>
    %31 = arith.negf %30 : vector<256x128xf32>
    %32 = math.exp %31 : vector<256x128xf32>
    %cst_19 = arith.constant 1.000000e+00 : f32
    %33 = vector.broadcast %cst_19 : f32 to vector<256x128xf32>
    %34 = arith.addf %33, %32 : vector<256x128xf32>
    %35 = arith.divf %33, %34 : vector<256x128xf32>
    %36 = arith.mulf %30, %35 : vector<256x128xf32>
    %37 = arith.truncf %36 : vector<256x128xf32> to vector<256x128xbf16>
    %c0_20 = arith.constant 0 : index
    %c0_21 = arith.constant 0 : index
    %38 = vector.load %arg10[%c0_20, %c0_21] : memref<128x128xbf16, #tpu.memory_space<vmem>>, vector<128x128xbf16>
    %cst_22 = arith.constant dense<0.000000e+00> : vector<256x128xf32>
    %39 = tpu.matmul %37, %38, %cst_22 {dimension_numbers = #tpu.dot_dimension_numbers<[1], [0], [0], [1], [0, 0, 1, 1], [], []>} : vector<256x128xbf16>, vector<128x128xbf16>, vector<256x128xf32> -> vector<256x128xf32>
    %c0_23 = arith.constant 0 : index
    %c0_24 = arith.constant 0 : index
    %40 = vector.load %arg11[%c0_23, %c0_24] : memref<1x128xf32, #tpu.memory_space<vmem>>, vector<1x128xf32>
    %41 = vector.broadcast %40 : vector<1x128xf32> to vector<256x128xf32>
    %42 = arith.addf %39, %41 : vector<256x128xf32>
    %43 = arith.negf %42 : vector<256x128xf32>
    %44 = math.exp %43 : vector<256x128xf32>
    %cst_25 = arith.constant 1.000000e+00 : f32
    %45 = vector.broadcast %cst_25 : f32 to vector<256x128xf32>
    %46 = arith.addf %45, %44 : vector<256x128xf32>
    %47 = arith.divf %45, %46 : vector<256x128xf32>
    %48 = arith.mulf %42, %47 : vector<256x128xf32>
    %49 = arith.truncf %48 : vector<256x128xf32> to vector<256x128xbf16>
    %c0_26 = arith.constant 0 : index
    %c0_27 = arith.constant 0 : index
    %50 = vector.load %arg12[%c0_26, %c0_27] : memref<128x128xbf16, #tpu.memory_space<vmem>>, vector<128x128xbf16>
    %cst_28 = arith.constant dense<0.000000e+00> : vector<256x128xf32>
    %51 = tpu.matmul %49, %50, %cst_28 {dimension_numbers = #tpu.dot_dimension_numbers<[1], [0], [0], [1], [0, 0, 1, 1], [], []>} : vector<256x128xbf16>, vector<128x128xbf16>, vector<256x128xf32> -> vector<256x128xf32>
    %c0_29 = arith.constant 0 : index
    %c0_30 = arith.constant 0 : index
    %52 = vector.load %arg13[%c0_29, %c0_30] : memref<1x128xf32, #tpu.memory_space<vmem>>, vector<1x128xf32>
    %53 = vector.broadcast %52 : vector<1x128xf32> to vector<256x128xf32>
    %54 = arith.addf %51, %53 : vector<256x128xf32>
    %c0_31 = arith.constant 0 : index
    %c0_32 = arith.constant 0 : index
    %55 = vector.load %arg14[%c0_31, %c0_32] : memref<1x128xf32, #tpu.memory_space<vmem>>, vector<1x128xf32>
    %c0_33 = arith.constant 0 : index
    %c0_34 = arith.constant 0 : index
    %56 = vector.load %arg15[%c0_33, %c0_34] : memref<1x128xf32, #tpu.memory_space<vmem>>, vector<1x128xf32>
    %cst_35 = arith.constant dense<0.000000e+00> : vector<256xf32>
    %57 = vector.multi_reduction <add>, %54, %cst_35 [1] : vector<256x128xf32> to vector<256xf32>
    %58 = vector.shape_cast %57 : vector<256xf32> to vector<256x1xf32>
    %cst_36 = arith.constant 1.280000e+02 : f32
    %59 = vector.broadcast %cst_36 : f32 to vector<256x1xf32>
    %60 = arith.divf %58, %59 : vector<256x1xf32>
    %61 = arith.mulf %54, %54 : vector<256x128xf32>
    %cst_37 = arith.constant dense<0.000000e+00> : vector<256xf32>
    %62 = vector.multi_reduction <add>, %61, %cst_37 [1] : vector<256x128xf32> to vector<256xf32>
    %63 = vector.shape_cast %62 : vector<256xf32> to vector<256x1xf32>
    %cst_38 = arith.constant 1.280000e+02 : f32
    %64 = vector.broadcast %cst_38 : f32 to vector<256x1xf32>
    %65 = arith.divf %63, %64 : vector<256x1xf32>
    %66 = arith.mulf %60, %60 : vector<256x1xf32>
    %67 = arith.subf %65, %66 : vector<256x1xf32>
    %cst_39 = arith.constant 0.000000e+00 : f32
    %68 = vector.broadcast %cst_39 : f32 to vector<256x1xf32>
    %69 = arith.maximumf %67, %68 : vector<256x1xf32>
    %70 = vector.broadcast %60 : vector<256x1xf32> to vector<256x128xf32>
    %71 = arith.subf %54, %70 : vector<256x128xf32>
    %cst_40 = arith.constant 9.99999974E-6 : f32
    %72 = vector.broadcast %cst_40 : f32 to vector<256x1xf32>
    %73 = arith.addf %69, %72 : vector<256x1xf32>
    %74 = math.rsqrt %73 : vector<256x1xf32>
    %75 = vector.broadcast %74 : vector<256x1xf32> to vector<256x128xf32>
    %76 = arith.mulf %71, %75 : vector<256x128xf32>
    %77 = vector.broadcast %55 : vector<1x128xf32> to vector<256x128xf32>
    %78 = arith.mulf %76, %77 : vector<256x128xf32>
    %79 = vector.broadcast %56 : vector<1x128xf32> to vector<256x128xf32>
    %80 = arith.addf %78, %79 : vector<256x128xf32>
    %81 = arith.addf %80, %5 : vector<256x128xf32>
    %c0_41 = arith.constant 0 : index
    %c0_42 = arith.constant 0 : index
    %82 = vector.load %arg26[%c0_41, %c0_42] : memref<256x128xf32, #tpu.memory_space<vmem>>, vector<256x128xf32>
    tpu.vector_store %arg26[%c0_41, %c0_42], %81 {strides = array<i32>} : memref<256x128xf32, #tpu.memory_space<vmem>>, vector<256x128xf32>,
    %c0_43 = arith.constant 0 : index
    %c0_44 = arith.constant 0 : index
    %83 = vector.load %arg27[%c0_43, %c0_44] : memref<128x128xf32, #tpu.memory_space<vmem>>, vector<128x128xf32>
    %84 = arith.truncf %81 : vector<256x128xf32> to vector<256x128xbf16>
    %cst_45 = arith.constant dense<0.000000e+00> : vector<128x128xf32>
    %85 = tpu.matmul %17, %84, %cst_45 {dimension_numbers = #tpu.dot_dimension_numbers<[0], [0], [1], [1], [0, 1, 1, 1], [], []>} : vector<256x128xbf16>, vector<256x128xbf16>, vector<128x128xf32> -> vector<128x128xf32>
    %86 = arith.addf %83, %85 : vector<128x128xf32>
    %c0_46 = arith.constant 0 : index
    %c0_47 = arith.constant 0 : index
    %87 = vector.load %arg27[%c0_46, %c0_47] : memref<128x128xf32, #tpu.memory_space<vmem>>, vector<128x128xf32>
    tpu.vector_store %arg27[%c0_46, %c0_47], %86 {strides = array<i32>} : memref<128x128xf32, #tpu.memory_space<vmem>>, vector<128x128xf32>,
    %c1_i32 = arith.constant 1 : i32
    %88 = arith.cmpi eq, %arg1, %c1_i32 : i32
    %89 = arith.extui %88 : i1 to i32
    %c0_i32_48 = arith.constant 0 : i32
    %90 = arith.cmpi ne, %89, %c0_i32_48 : i32
    scf.if %90 {
      %c0_49 = arith.constant 0 : index
      %c0_50 = arith.constant 0 : index
      %91 = vector.load %arg27[%c0_49, %c0_50] : memref<128x128xf32, #tpu.memory_space<vmem>>, vector<128x128xf32>
      %92 = arith.truncf %91 : vector<128x128xf32> to vector<128x128xbf16>
      %c0_51 = arith.constant 0 : index
      %c0_52 = arith.constant 0 : index
      %93 = vector.load %arg16[%c0_51, %c0_52] : memref<128x128xbf16, #tpu.memory_space<vmem>>, vector<128x128xbf16>
      %cst_53 = arith.constant dense<0.000000e+00> : vector<128x128xf32>
      %94 = tpu.matmul %4, %93, %cst_53 {dimension_numbers = #tpu.dot_dimension_numbers<[1], [0], [0], [1], [0, 0, 1, 1], [], []>} : vector<128x128xbf16>, vector<128x128xbf16>, vector<128x128xf32> -> vector<128x128xf32>
      %c0_54 = arith.constant 0 : index
      %c0_55 = arith.constant 0 : index
      %95 = vector.load %arg17[%c0_54, %c0_55] : memref<128x128xbf16, #tpu.memory_space<vmem>>, vector<128x128xbf16>
      %cst_56 = arith.constant dense<0.000000e+00> : vector<128x128xf32>
      %96 = tpu.matmul %92, %95, %cst_56 {dimension_numbers = #tpu.dot_dimension_numbers<[1], [0], [0], [1], [0, 0, 1, 1], [], []>} : vector<128x128xbf16>, vector<128x128xbf16>, vector<128x128xf32> -> vector<128x128xf32>
      %97 = arith.addf %94, %96 : vector<128x128xf32>
      %c0_57 = arith.constant 0 : index
      %c0_58 = arith.constant 0 : index
      %98 = vector.load %arg18[%c0_57, %c0_58] : memref<1x128xf32, #tpu.memory_space<vmem>>, vector<1x128xf32>
      %99 = vector.broadcast %98 : vector<1x128xf32> to vector<128x128xf32>
      %100 = arith.addf %97, %99 : vector<128x128xf32>
      %101 = arith.negf %100 : vector<128x128xf32>
      %102 = math.exp %101 : vector<128x128xf32>
      %cst_59 = arith.constant 1.000000e+00 : f32
      %103 = vector.broadcast %cst_59 : f32 to vector<128x128xf32>
      %104 = arith.addf %103, %102 : vector<128x128xf32>
      %105 = arith.divf %103, %104 : vector<128x128xf32>
      %106 = arith.mulf %100, %105 : vector<128x128xf32>
      %107 = arith.truncf %106 : vector<128x128xf32> to vector<128x128xbf16>
      %c0_60 = arith.constant 0 : index
      %c0_61 = arith.constant 0 : index
      %108 = vector.load %arg19[%c0_60, %c0_61] : memref<128x128xbf16, #tpu.memory_space<vmem>>, vector<128x128xbf16>
      %cst_62 = arith.constant dense<0.000000e+00> : vector<128x128xf32>
      %109 = tpu.matmul %107, %108, %cst_62 {dimension_numbers = #tpu.dot_dimension_numbers<[1], [0], [0], [1], [0, 0, 1, 1], [], []>} : vector<128x128xbf16>, vector<128x128xbf16>, vector<128x128xf32> -> vector<128x128xf32>
      %c0_63 = arith.constant 0 : index
      %c0_64 = arith.constant 0 : index
      %110 = vector.load %arg20[%c0_63, %c0_64] : memref<1x128xf32, #tpu.memory_space<vmem>>, vector<1x128xf32>
      %111 = vector.broadcast %110 : vector<1x128xf32> to vector<128x128xf32>
      %112 = arith.addf %109, %111 : vector<128x128xf32>
      %113 = arith.negf %112 : vector<128x128xf32>
      %114 = math.exp %113 : vector<128x128xf32>
      %cst_65 = arith.constant 1.000000e+00 : f32
      %115 = vector.broadcast %cst_65 : f32 to vector<128x128xf32>
      %116 = arith.addf %115, %114 : vector<128x128xf32>
      %117 = arith.divf %115, %116 : vector<128x128xf32>
      %118 = arith.mulf %112, %117 : vector<128x128xf32>
      %119 = arith.truncf %118 : vector<128x128xf32> to vector<128x128xbf16>
      %c0_66 = arith.constant 0 : index
      %c0_67 = arith.constant 0 : index
      %120 = vector.load %arg21[%c0_66, %c0_67] : memref<128x128xbf16, #tpu.memory_space<vmem>>, vector<128x128xbf16>
      %cst_68 = arith.constant dense<0.000000e+00> : vector<128x128xf32>
      %121 = tpu.matmul %119, %120, %cst_68 {dimension_numbers = #tpu.dot_dimension_numbers<[1], [0], [0], [1], [0, 0, 1, 1], [], []>} : vector<128x128xbf16>, vector<128x128xbf16>, vector<128x128xf32> -> vector<128x128xf32>
      %c0_69 = arith.constant 0 : index
      %c0_70 = arith.constant 0 : index
      %122 = vector.load %arg22[%c0_69, %c0_70] : memref<1x128xf32, #tpu.memory_space<vmem>>, vector<1x128xf32>
      %123 = vector.broadcast %122 : vector<1x128xf32> to vector<128x128xf32>
      %124 = arith.addf %121, %123 : vector<128x128xf32>
      %c0_71 = arith.constant 0 : index
      %c0_72 = arith.constant 0 : index
      %125 = vector.load %arg23[%c0_71, %c0_72] : memref<1x128xf32, #tpu.memory_space<vmem>>, vector<1x128xf32>
      %c0_73 = arith.constant 0 : index
      %c0_74 = arith.constant 0 : index
      %126 = vector.load %arg24[%c0_73, %c0_74] : memref<1x128xf32, #tpu.memory_space<vmem>>, vector<1x128xf32>
      %cst_75 = arith.constant dense<0.000000e+00> : vector<128xf32>
      %127 = vector.multi_reduction <add>, %124, %cst_75 [1] : vector<128x128xf32> to vector<128xf32>
      %128 = vector.shape_cast %127 : vector<128xf32> to vector<128x1xf32>
      %cst_76 = arith.constant 1.280000e+02 : f32
      %129 = vector.broadcast %cst_76 : f32 to vector<128x1xf32>
      %130 = arith.divf %128, %129 : vector<128x1xf32>
      %131 = arith.mulf %124, %124 : vector<128x128xf32>
      %cst_77 = arith.constant dense<0.000000e+00> : vector<128xf32>
      %132 = vector.multi_reduction <add>, %131, %cst_77 [1] : vector<128x128xf32> to vector<128xf32>
      %133 = vector.shape_cast %132 : vector<128xf32> to vector<128x1xf32>
      %cst_78 = arith.constant 1.280000e+02 : f32
      %134 = vector.broadcast %cst_78 : f32 to vector<128x1xf32>
      %135 = arith.divf %133, %134 : vector<128x1xf32>
      %136 = arith.mulf %130, %130 : vector<128x1xf32>
      %137 = arith.subf %135, %136 : vector<128x1xf32>
      %cst_79 = arith.constant 0.000000e+00 : f32
      %138 = vector.broadcast %cst_79 : f32 to vector<128x1xf32>
      %139 = arith.maximumf %137, %138 : vector<128x1xf32>
      %140 = vector.broadcast %130 : vector<128x1xf32> to vector<128x128xf32>
      %141 = arith.subf %124, %140 : vector<128x128xf32>
      %cst_80 = arith.constant 9.99999974E-6 : f32
      %142 = vector.broadcast %cst_80 : f32 to vector<128x1xf32>
      %143 = arith.addf %139, %142 : vector<128x1xf32>
      %144 = math.rsqrt %143 : vector<128x1xf32>
      %145 = vector.broadcast %144 : vector<128x1xf32> to vector<128x128xf32>
      %146 = arith.mulf %141, %145 : vector<128x128xf32>
      %147 = vector.broadcast %125 : vector<1x128xf32> to vector<128x128xf32>
      %148 = arith.mulf %146, %147 : vector<128x128xf32>
      %149 = vector.broadcast %126 : vector<1x128xf32> to vector<128x128xf32>
      %150 = arith.addf %148, %149 : vector<128x128xf32>
      %151 = arith.addf %150, %3 : vector<128x128xf32>
      %c0_81 = arith.constant 0 : index
      %c0_82 = arith.constant 0 : index
      %152 = vector.load %arg25[%c0_81, %c0_82] : memref<128x128xf32, #tpu.memory_space<vmem>>, vector<128x128xf32>
      tpu.vector_store %arg25[%c0_81, %c0_82], %151 {strides = array<i32>} : memref<128x128xf32, #tpu.memory_space<vmem>>, vector<128x128xf32>,
    } else {
    }
    return
  }
  func.func @transform_0(%arg0: i32, %arg1: i32) -> (i32, i32) {
    %c0_i32 = arith.constant 0 : i32
    %c0_i32_0 = arith.constant 0 : i32
    return %arg0, %c0_i32 : i32, i32
  }
  func.func @transform_1(%arg0: i32, %arg1: i32) -> (i32, i32) {
    %c2_i32 = arith.constant 2 : i32
    %0 = arith.muli %arg0, %c2_i32 : i32
    %1 = arith.addi %0, %arg1 : i32
    %c0_i32 = arith.constant 0 : i32
    %c0_i32_0 = arith.constant 0 : i32
    return %1, %c0_i32 : i32, i32
  }
  func.func @transform_2(%arg0: i32, %arg1: i32) -> (i32, i32) {
    %c2_i32 = arith.constant 2 : i32
    %0 = arith.muli %arg0, %c2_i32 : i32
    %1 = arith.addi %0, %arg1 : i32
    %c0_i32 = arith.constant 0 : i32
    %c0_i32_0 = arith.constant 0 : i32
    return %1, %c0_i32 : i32, i32
  }
  func.func @transform_3(%arg0: i32, %arg1: i32) -> (i32, i32) {
    %c2_i32 = arith.constant 2 : i32
    %0 = arith.muli %arg0, %c2_i32 : i32
    %1 = arith.addi %0, %arg1 : i32
    %c0_i32 = arith.constant 0 : i32
    %c0_i32_0 = arith.constant 0 : i32
    return %1, %c0_i32 : i32, i32
  }
  func.func @transform_4(%arg0: i32, %arg1: i32) -> (i32, i32) {
    %c0_i32 = arith.constant 0 : i32
    %c0_i32_0 = arith.constant 0 : i32
    %c0_i32_1 = arith.constant 0 : i32
    return %c0_i32, %c0_i32_0 : i32, i32
  }
  func.func @transform_5(%arg0: i32, %arg1: i32) -> (i32, i32) {
    %c0_i32 = arith.constant 0 : i32
    %c0_i32_0 = arith.constant 0 : i32
    %c0_i32_1 = arith.constant 0 : i32
    return %c0_i32, %c0_i32_0 : i32, i32
  }
  func.func @transform_6(%arg0: i32, %arg1: i32) -> (i32, i32) {
    %c0_i32 = arith.constant 0 : i32
    %c0_i32_0 = arith.constant 0 : i32
    %c0_i32_1 = arith.constant 0 : i32
    return %c0_i32, %c0_i32_0 : i32, i32
  }
  func.func @transform_7(%arg0: i32, %arg1: i32) -> (i32, i32) {
    %c0_i32 = arith.constant 0 : i32
    %c0_i32_0 = arith.constant 0 : i32
    %c0_i32_1 = arith.constant 0 : i32
    return %c0_i32, %c0_i32_0 : i32, i32
  }
  func.func @transform_8(%arg0: i32, %arg1: i32) -> (i32, i32) {
    %c0_i32 = arith.constant 0 : i32
    %c0_i32_0 = arith.constant 0 : i32
    %c0_i32_1 = arith.constant 0 : i32
    return %c0_i32, %c0_i32_0 : i32, i32
  }
  func.func @transform_9(%arg0: i32, %arg1: i32) -> (i32, i32) {
    %c0_i32 = arith.constant 0 : i32
    %c0_i32_0 = arith.constant 0 : i32
    %c0_i32_1 = arith.constant 0 : i32
    return %c0_i32, %c0_i32_0 : i32, i32
  }
  func.func @transform_10(%arg0: i32, %arg1: i32) -> (i32, i32) {
    %c0_i32 = arith.constant 0 : i32
    %c0_i32_0 = arith.constant 0 : i32
    %c0_i32_1 = arith.constant 0 : i32
    return %c0_i32, %c0_i32_0 : i32, i32
  }
  func.func @transform_11(%arg0: i32, %arg1: i32) -> (i32, i32) {
    %c0_i32 = arith.constant 0 : i32
    %c0_i32_0 = arith.constant 0 : i32
    %c0_i32_1 = arith.constant 0 : i32
    return %c0_i32, %c0_i32_0 : i32, i32
  }
  func.func @transform_12(%arg0: i32, %arg1: i32) -> (i32, i32) {
    %c0_i32 = arith.constant 0 : i32
    %c0_i32_0 = arith.constant 0 : i32
    %c0_i32_1 = arith.constant 0 : i32
    return %c0_i32, %c0_i32_0 : i32, i32
  }
  func.func @transform_13(%arg0: i32, %arg1: i32) -> (i32, i32) {
    %c0_i32 = arith.constant 0 : i32
    %c0_i32_0 = arith.constant 0 : i32
    %c0_i32_1 = arith.constant 0 : i32
    return %c0_i32, %c0_i32_0 : i32, i32
  }
  func.func @transform_14(%arg0: i32, %arg1: i32) -> (i32, i32) {
    %c0_i32 = arith.constant 0 : i32
    %c0_i32_0 = arith.constant 0 : i32
    %c0_i32_1 = arith.constant 0 : i32
    return %c0_i32, %c0_i32_0 : i32, i32
  }
  func.func @transform_15(%arg0: i32, %arg1: i32) -> (i32, i32) {
    %c0_i32 = arith.constant 0 : i32
    %c0_i32_0 = arith.constant 0 : i32
    %c0_i32_1 = arith.constant 0 : i32
    return %c0_i32, %c0_i32_0 : i32, i32
  }
  func.func @transform_16(%arg0: i32, %arg1: i32) -> (i32, i32) {
    %c0_i32 = arith.constant 0 : i32
    %c0_i32_0 = arith.constant 0 : i32
    %c0_i32_1 = arith.constant 0 : i32
    return %c0_i32, %c0_i32_0 : i32, i32
  }
  func.func @transform_17(%arg0: i32, %arg1: i32) -> (i32, i32) {
    %c0_i32 = arith.constant 0 : i32
    %c0_i32_0 = arith.constant 0 : i32
    %c0_i32_1 = arith.constant 0 : i32
    return %c0_i32, %c0_i32_0 : i32, i32
  }
  func.func @transform_18(%arg0: i32, %arg1: i32) -> (i32, i32) {
    %c0_i32 = arith.constant 0 : i32
    %c0_i32_0 = arith.constant 0 : i32
    %c0_i32_1 = arith.constant 0 : i32
    return %c0_i32, %c0_i32_0 : i32, i32
  }
  func.func @transform_19(%arg0: i32, %arg1: i32) -> (i32, i32) {
    %c0_i32 = arith.constant 0 : i32
    %c0_i32_0 = arith.constant 0 : i32
    %c0_i32_1 = arith.constant 0 : i32
    return %c0_i32, %c0_i32_0 : i32, i32
  }
  func.func @transform_20(%arg0: i32, %arg1: i32) -> (i32, i32) {
    %c0_i32 = arith.constant 0 : i32
    %c0_i32_0 = arith.constant 0 : i32
    %c0_i32_1 = arith.constant 0 : i32
    return %c0_i32, %c0_i32_0 : i32, i32
  }
  func.func @transform_21(%arg0: i32, %arg1: i32) -> (i32, i32) {
    %c0_i32 = arith.constant 0 : i32
    %c0_i32_0 = arith.constant 0 : i32
    %c0_i32_1 = arith.constant 0 : i32
    return %c0_i32, %c0_i32_0 : i32, i32
  }
  func.func @transform_22(%arg0: i32, %arg1: i32) -> (i32, i32) {
    %c0_i32 = arith.constant 0 : i32
    %c0_i32_0 = arith.constant 0 : i32
    %c0_i32_1 = arith.constant 0 : i32
    return %c0_i32, %c0_i32_0 : i32, i32
  }
  func.func @transform_23(%arg0: i32, %arg1: i32) -> (i32, i32) {
    %c0_i32 = arith.constant 0 : i32
    %c0_i32_0 = arith.constant 0 : i32
    return %arg0, %c0_i32 : i32, i32
  }
  func.func @transform_24(%arg0: i32, %arg1: i32) -> (i32, i32) {
    %c2_i32 = arith.constant 2 : i32
    %0 = arith.muli %arg0, %c2_i32 : i32
    %1 = arith.addi %0, %arg1 : i32
    %c0_i32 = arith.constant 0 : i32
    %c0_i32_0 = arith.constant 0 : i32
    return %1, %c0_i32 : i32, i32
  }
}

</mosaic_0001>

<bundles_post_ra>
// kernel: forward.2
= control target key start
LH: loop header
LB: loop body
LE: loop exit
PB: predicated region body
PF: predicated region fallthrough
CT: control target
= control target key end

     0   :  { %s7179_s26 = smov 0   ;;  %s7181_s27 = smov 0   ;;  %s9563_s0 = inlined_call_operand.vmem [shape: f32[256,128], index: 0, kind: input, shape index: {}]   ;;  %s9564_s1 = inlined_call_operand.vmem [shape: bf16[1024,128], index: 1, kind: input, shape index: {}]   ;;  %s9565_s2 = inlined_call_operand.vmem [shape: f32[1024,128], index: 2, kind: input, shape index: {}, may-alias: {2,24}]   ;;  %s9566_s3 = inlined_call_operand.vmem [shape: s32[1024,1], index: 3, kind: input, shape index: {}]   ;;  %s9567_s4 = inlined_call_operand.vmem [shape: bf16[128,128], index: 4, kind: input, shape index: {}]   ;;  %s9568_s5 = inlined_call_operand.vmem [shape: bf16[128,128], index: 5, kind: input, shape index: {}]   ;;  %s9569_s6 = inlined_call_operand.vmem [shape: bf16[128,128], index: 6, kind: input, shape index: {}]   ;;  %s9570_s7 = inlined_call_operand.vmem [shape: f32[1,128], index: 7, kind: input, shape index: {}]   ;;  %s9571_s8 = inlined_call_operand.vmem [shape: bf16[128,128], index: 8, kind: input, shape index: {}]   ;;  %s9572_s9 = inlined_call_operand.vmem [shape: f32[1,128], index: 9, kind: input, shape index: {}]   ;;  %s9573_s10 = inlined_call_operand.vmem [shape: bf16[128,128], index: 10, kind: input, shape index: {}]   ;;  %s9574_s11 = inlined_call_operand.vmem [shape: f32[1,128], index: 11, kind: input, shape index: {}]   ;;  %s9575_s12 = inlined_call_operand.vmem [shape: f32[1,128], index: 12, kind: input, shape index: {}]   ;;  %s9576_s13 = inlined_call_operand.vmem [shape: f32[1,128], index: 13, kind: input, shape index: {}]   ;;  %s9577_s14 = inlined_call_operand.vmem [shape: bf16[128,128], index: 14, kind: input, shape index: {}]   ;;  %s9578_s15 = inlined_call_operand.vmem [shape: bf16[128,128], index: 15, kind: input, shape index: {}]   ;;  %s9579_s16 = inlined_call_operand.vmem [shape: f32[1,128], index: 16, kind: input, shape index: {}]   ;;  %s9580_s17 = inlined_call_operand.vmem [shape: bf16[128,128], index: 17, kind: input, shape index: {}]   ;;  %s9581_s18 = inlined_call_operand.vmem [shape: f32[1,128], index: 18, kind: input, shape index: {}]   ;;  %s9582_s19 = inlined_call_operand.vmem [shape: bf16[128,128], index: 19, kind: input, shape index: {}]   ;;  %s9583_s20 = inlined_call_operand.vmem [shape: f32[1,128], index: 20, kind: input, shape index: {}]   ;;  %s9584_s21 = inlined_call_operand.vmem [shape: f32[1,128], index: 21, kind: input, shape index: {}]   ;;  %s9585_s22 = inlined_call_operand.vmem [shape: f32[1,128], index: 22, kind: input, shape index: {}]   ;;  %s9586_s23 = inlined_call_operand.vmem [shape: f32[256,128], index: 23, kind: output, shape index: {0}]   ;;  %s9587_s24 = inlined_call_operand.vmem [shape: f32[1024,128], index: 24, kind: output, shape index: {1}, may-alias: {2,24}]  }
   0x1   :  { %9684 = sst [smem:[#allocation95_spill]] %s9563_s0  ;;  %s7183_s28 = smov 0  }
   0x2   :  { %9685 = sst [smem:[#allocation96_spill]] %s9564_s1 }
   0x3   :  { %9686 = sst [smem:[#allocation97_spill]] %s9565_s2 }
   0x4   :  { %9687 = sst [smem:[#allocation98_spill]] %s9566_s3 }
   0x5   :  { %9688 = sst [smem:[#allocation99_spill]] %s9567_s4 }
   0x6   :  { %9689 = sst [smem:[#allocation100_spill]] %s9568_s5  ;;  %s7177_s5 = smov 0  }
   0x7   :  { %9690 = sst [smem:[#allocation101_spill]] %s9569_s6  ;;  %s7185_s6 = smov 0  }
   0x8   :  { %9691 = sst [smem:[#allocation102_spill]] %s9570_s7 }
   0x9   :  { %9692 = sst [smem:[#allocation103_spill]] %s9571_s8 }
   0xa   :  { %9693 = sst [smem:[#allocation104_spill]] %s9579_s16 }
   0xb   :  { %9694 = sst [smem:[#allocation105_spill]] %s9580_s17 }
   0xc   :  { %9695 = sst [smem:[#allocation106_spill]] %s9581_s18 }
   0xd   :  { %9696 = sst [smem:[#allocation107_spill]] %s9582_s19 }
   0xe   :  { %9697 = sst [smem:[#allocation108_spill]] %s9583_s20 }
   0xf   :  { %9698 = sst [smem:[#allocation109_spill]] %s9584_s21 }
  0x10   :  { %9699 = sst [smem:[#allocation110_spill]] %s9585_s22 }
  0x11 LB: > { %9700 = sst [smem:[#allocation3_spill]] %s7038_s27  ;;  %s44_s2 = sadd.s32 1, %s7038_s27  ;;  %s7046_s6 = sphi %s7185_s6, %s35_s6   ;;  %s7042_s28 = sphi %s7183_s28, %s9920_s28   ;;  %s7038_s27 = sphi %s7181_s27, %s9919_s27   ;;  %s7034_s26 = sphi %s7179_s26, %s9918_s26   ;;  %s7030_s5 = sphi %s7177_s5, %s9917_s5  }
  0x12   : > { %9701 = sst [smem:[#allocation4_spill]] %s7042_s28  ;;  %s47_s29 = sadd.s32 1, %s7042_s28 }
  0x13   : > { %9702 = sst [smem:[#allocation5_spill]] %s7046_s6  ;;  %p45_p0 = scmp.ge.s32.totalorder %s44_s2, 2 }
  0x14   : > { %p5409_p1 = scmp.ge.s32.totalorder %s7046_s6, 1  ;;  %p739_p2 = scmp.lt.s32.totalorder %s7046_s6, 5 }
  0x15   : > { %s9922_s2 = smov (%p45_p0, %s44_s2), 0  ;;  %s9924_s29 = smov (!%p45_p0, %s47_s29), %s7042_s28 }
  0x16   : > { %9703 = sst [smem:[#allocation6_spill]] %s9922_s2  ;;  %p740_p3 = pnand %p5409_p1, %p739_p2 }
  0x17   : > { %p49_p4 = scmp.ge.s32.totalorder %s9924_s29, 2 }
  0x18   : > { %743 = sbr.rel (%p740_p3) target bundleno = 2637 (0xa4d), region = 112 }
  0x19   : > { %s9926_s29 = smov (%p49_p4, %s9924_s29), 0 }
  0x1a   : > { %9704 = sst [smem:[#allocation7_spill]] %s9926_s29 }
  0x1d   : > { %s5410_s0 = sshll.u32 %s7034_s26, 4  ;;  %s5412_s7 = sshll.u32 %s7034_s26, 1 }
  0x1e   : > { %p834_p5 = scmp.lt.s32.totalorder %s5410_s0, 31  ;;  %s840_s30 = sadd.s32 %s7030_s5, %s5412_s7 }
  0x1f   : > { %s5413_s3 = sshll.u32 %s840_s30, 5  ;;  %s9705_s1 = sld [smem:[#allocation95_spill]] }
  0x20   : > { %s9928_s0 = smov (!%p834_p5, %s5410_s0), 31  ;;  %p842_p6 = scmp.lt.s32.totalorder %s5413_s3, 127 }
  0x21   : > { %s5411_s25 = sshll.u32 %s9928_s0, 3  ;;  %s9706_s7 = sld [smem:[#allocation96_spill]] }
  0x22   : > { %s7222_s29 = scalar_lea.vmem %s9586_s23, %s5411_s25  ;;  %s9930_s3 = smov (!%p842_p6, %s5413_s3), 127 }
  0x23   : > { %s5414_s6 = sshll.u32 %s9930_s3, 2  ;;  %s5417_s22 = sshll.u32 %s9930_s3, 3 }
  0x24   : > { %s9707_s19 = sld [smem:[#allocation97_spill]]  ;;  %p5426_p7 = scmp.ne.s32.totalorder %s7030_s5, 0 }
  0x25   : > { %s7217_s2 = scalar_lea.vmem %s9705_s1, %s5411_s25  ;;  %s9708_s1 = sld [smem:[#allocation98_spill]] }
  0x26   : > { %s7242_s25 = scalar_lea.vmem %s9587_s24, %s5417_s22 }
  0x27   : > { %s7227_s30 = scalar_lea.vmem %s9706_s7, %s5414_s6  ;;  %889 = sbr.rel (%p5426_p7) target bundleno = 53 (0x35), region = 116 }
  0x2a   : > { %s7232_s16 = scalar_lea.vmem %s9707_s19, %s5417_s22 }
  0x2b   : > { %s7237_s17 = scalar_lea.vmem %s9708_s1, %s5417_s22 }
  0x2c   : > { %v7048_v0 = vmov 0.0  }
  0x2d   : > { %890 = vst [vmem:[#allocation2 + $0x30] sm:$0xff] %v7048_v0  ;;  %891 = vst [vmem:[#allocation2] sm:$0xff] %v7048_v0 }
  0x2e   : > { %892 = vst [vmem:[#allocation2 + $0x58] sm:$0xff] %v7048_v0  ;;  %893 = vst [vmem:[#allocation2 + $0x18] sm:$0xff] %v7048_v0 }
  0x2f   : > { %894 = vst [vmem:[#allocation2 + $0x50] sm:$0xff] %v7048_v0  ;;  %895 = vst [vmem:[#allocation2 + $0x68] sm:$0xff] %v7048_v0 }
  0x30   : > { %896 = vst [vmem:[#allocation2 + $0x8] sm:$0xff] %v7048_v0  ;;  %897 = vst [vmem:[#allocation2 + $0x48] sm:$0xff] %v7048_v0 }
  0x31   : > { %898 = vst [vmem:[#allocation2 + $0x40] sm:$0xff] %v7048_v0  ;;  %899 = vst [vmem:[#allocation2 + $0x20] sm:$0xff] %v7048_v0 }
  0x32   : > { %900 = vst [vmem:[#allocation2 + $0x10] sm:$0xff] %v7048_v0  ;;  %901 = vst [vmem:[#allocation2 + $0x38] sm:$0xff] %v7048_v0 }
  0x33   : > { %902 = vst [vmem:[#allocation2 + $0x60] sm:$0xff] %v7048_v0  ;;  %903 = vst [vmem:[#allocation2 + $0x70] sm:$0xff] %v7048_v0 }
  0x34   : > { %904 = vst [vmem:[#allocation2 + $0x78] sm:$0xff] %v7048_v0  ;;  %905 = vst [vmem:[#allocation2 + $0x28] sm:$0xff] %v7048_v0 }
  0x35 PF: > { %v1014_v1 = vld [vmem:[%s7237_s17 + $0x10] sm:$0xff]  ;;  %v1012_v2 = vld [vmem:[%s7237_s17] sm:$0xff]  ;;  %v7049_v3 = vmov 0   ;;  %v1015_v4 = vld [vmem:[%s7237_s17 + $0x18] sm:$0xff]  ;;  %s9733_s20 = sld [smem:[#allocation100_spill]]  ;;  %v1010_v60 = vlaneseq  ;;  %s5427_s3 = sshll.u32 %s7034_s26, 7 }
  0x36   : > { %6438 = vset.pattern.permute.xlu1 %v7049_v3  ;;  %6437 = vset.pattern.permute.xlu0 %v7049_v3  ;;  %v1013_v5 = vld [vmem:[%s7237_s17 + $0x8] sm:$0xff]  ;;  %v1016_v7 = vld [vmem:[%s7237_s17 + $0x20] sm:$0xff]  ;;  %v1019_v8 = vld [vmem:[%s7237_s17 + $0x38] sm:$0xff]  ;;  %s9734_s6 = sld [smem:[#allocation99_spill]]  ;;  %v1045_v62 = vstv %s5427_s3  ;;  %p5617_p8 = scmp.ne.s32.totalorder %s7030_s5, 1 }
  0x37   : > { %1054 = vperm.xlu1 %6438, %v1014_v1   ;;  %1048 = vperm.xlu0 %6437, %v1012_v2   ;;  %v1017_v6 = vld [vmem:[%s7237_s17 + $0x28] sm:$0xff]  ;;  %v1018_v9 = vld [vmem:[%s7237_s17 + $0x30] sm:$0xff]  ;;  %v7257_v11 = vld [vmem:[%s7217_s2 + $0x78] sm:$0xff]  ;;  %v1011_v61 = vand.u32 127, %v1010_v60  ;;  %s9800_s7 = sld [smem:[#allocation103_spill]] }
  0x38   : > { %v7254_v10 = vld [vmem:[%s7217_s2 + $0x70] sm:$0xff]  ;;  %9710 = vst [vmem:[#allocation9_spill] sm:$0xff] %v7257_v11  ;;  %v7260_v12 = vld [vmem:[%s7217_s2 + $0x60] sm:$0xff]  ;;  %v7263_v13 = vld [vmem:[%s7217_s2 + $0x68] sm:$0xff]  ;;  %s9801_s8 = sld [smem:[#allocation102_spill]] }
  0x39   : > { %9709 = vst [vmem:[#allocation8_spill] sm:$0xff] %v7254_v10  ;;  %9711 = vst [vmem:[#allocation10_spill] sm:$0xff] %v7260_v12  ;;  %v7267_v14 = vpack.c.bf16 %v7257_v11, %v7254_v10  ;;  %v7271_v15 = vpack.c.bf16 %v7263_v13, %v7260_v12  ;;  %v7274_v16 = vld [vmem:[%s7217_s2 + $0x50] sm:$0xff]  ;;  %v7277_v17 = vld [vmem:[%s7217_s2 + $0x58] sm:$0xff]  ;;  %v7399_v63 = vadd.s32 %v1045_v62, %v1011_v61  ;;  %s9895_s0 = sld [smem:[#allocation107_spill]] (!%p5617_p8) }
  0x3a   : > { %9712 = vst [vmem:[#allocation11_spill] sm:$0xff] %v7263_v13  ;;  %9715 = vst [vmem:[#allocation14_spill] sm:$0xff] %v7274_v16  ;;  %v1021_v18 = vld [vmem:[%s7237_s17 + $0x48] sm:$0xff]  ;;  %v1020_v19 = vld [vmem:[%s7237_s17 + $0x40] sm:$0xff]  ;;  %v7296_v24 = vpack.c.bf16 %v7277_v17, %v7274_v16  ;;  %s9896_s4 = sld [smem:[#allocation106_spill]] (!%p5617_p8) }
  0x3b   : > { %1057 = vperm.xlu1 %6438, %v1015_v4   ;;  %1051 = vperm.xlu0 %6437, %v1013_v5   ;;  %9713 = vst [vmem:[#allocation12_spill] sm:$0xff] %v7267_v14  ;;  %9714 = vst [vmem:[#allocation13_spill] sm:$0xff] %v7271_v15  ;;  %v7285_v20 = vld [vmem:[%s7217_s2 + $0x40] sm:$0xff]  ;;  %v7288_v21 = vld [vmem:[%s7217_s2 + $0x48] sm:$0xff]  ;;  %v7050_v4 = vmov 0.0   ;;  %s9897_s27 = sld [smem:[#allocation108_spill]] (!%p5617_p8) }
  0x3c   : > { %9716 = vst [vmem:[#allocation15_spill] sm:$0xff] %v7277_v17  ;;  %5961 = vmatprep.subr.bf16.mxu0 %v7267_v14  ;;  %6377 = vmatprep.subr.bf16.mxu1 %v7267_v14  ;;  %9717 = vst [vmem:[#allocation16_spill] sm:$0xff] %v7285_v20  ;;  %v1023_v22 = vld [vmem:[%s7237_s17 + $0x58] sm:$0xff]  ;;  %v1022_v23 = vld [vmem:[%s7237_s17 + $0x50] sm:$0xff]  ;;  %v7312_v29 = vpack.c.bf16 %v7288_v21, %v7285_v20  ;;  %s9898_s19 = sld [smem:[#allocation109_spill]] (!%p5617_p8) }
  0x3d   : > { %5962 = vmatpush3.bf16.msra.mxu0 %v7267_v14  ;;  %9718 = vst [vmem:[#allocation17_spill] sm:$0xff] %v7288_v21  ;;  %6385 = vmatpush3.bf16.msra.mxu1 %v7267_v14  ;;  %9719 = vst [vmem:[#allocation18_spill] sm:$0xff] %v7296_v24  ;;  %v7301_v25 = vld [vmem:[%s7217_s2 + $0x30] sm:$0xff]  ;;  %v7304_v26 = vld [vmem:[%s7217_s2 + $0x38] sm:$0xff] }
  0x3e   : > { %5963 = vmatprep.subr.bf16.mxu0 %v7271_v15  ;;  %6378 = vmatprep.subr.bf16.mxu1 %v7271_v15  ;;  %9720 = vst [vmem:[#allocation19_spill] sm:$0xff] %v7301_v25  ;;  %9721 = vst [vmem:[#allocation20_spill] sm:$0xff] %v7304_v26  ;;  %v1025_v27 = vld [vmem:[%s7237_s17 + $0x68] sm:$0xff]  ;;  %v1024_v28 = vld [vmem:[%s7237_s17 + $0x60] sm:$0xff]  ;;  %v7328_v34 = vpack.c.bf16 %v7304_v26, %v7301_v25 }
  0x3f   : > { %1063 = vperm.xlu1 %6438, %v1017_v6   ;;  %1060 = vperm.xlu0 %6437, %v1016_v7   ;;  %9722 = vst [vmem:[#allocation21_spill] sm:$0xff] %v7312_v29  ;;  %v7317_v30 = vld [vmem:[%s7217_s2 + $0x20] sm:$0xff]  ;;  %v7320_v31 = vld [vmem:[%s7217_s2 + $0x28] sm:$0xff]  ;;  %v1027_v32 = vld [vmem:[%s7237_s17 + $0x78] sm:$0xff] }
  0x40   : > { %9723 = vst [vmem:[#allocation22_spill] sm:$0xff] %v7317_v30  ;;  %9724 = vst [vmem:[#allocation23_spill] sm:$0xff] %v7320_v31  ;;  %v1026_v33 = vld [vmem:[%s7237_s17 + $0x70] sm:$0xff]  ;;  %v7336_v36 = vld [vmem:[%s7217_s2 + $0x18] sm:$0xff]  ;;  %v7344_v39 = vpack.c.bf16 %v7320_v31, %v7317_v30 }
  0x41   : > { %5964 = vmatpush3.bf16.msra.mxu0 %v7271_v15  ;;  %6386 = vmatpush3.bf16.msra.mxu1 %v7271_v15  ;;  %9725 = vst [vmem:[#allocation24_spill] sm:$0xff] %v7328_v34  ;;  %v7333_v35 = vld [vmem:[%s7217_s2 + $0x10] sm:$0xff]  ;;  %9727 = vst [vmem:[#allocation26_spill] sm:$0xff] %v7336_v36  ;;  %v1029_v37 = vld [vmem:[%s7237_s17 + $0x88] sm:$0xff] }
  0x42   : > { %5965 = vmatprep.subr.bf16.mxu0 %v7296_v24  ;;  %6379 = vmatprep.subr.bf16.mxu1 %v7296_v24  ;;  %9726 = vst [vmem:[#allocation25_spill] sm:$0xff] %v7333_v35  ;;  %v1028_v38 = vld [vmem:[%s7237_s17 + $0x80] sm:$0xff]  ;;  %9728 = vst [vmem:[#allocation27_spill] sm:$0xff] %v7344_v39  ;;  %v7352_v41 = vld [vmem:[%s7217_s2 + $0x8] sm:$0xff]  ;;  %v7360_v44 = vpack.c.bf16 %v7336_v36, %v7333_v35 }
  0x43   : > { %1069 = vperm.xlu1 %6438, %v1019_v8   ;;  %1066 = vperm.xlu0 %6437, %v1018_v9   ;;  %v7349_v40 = vld [vmem:[%s7217_s2] sm:$0xff]  ;;  %9730 = vst [vmem:[#allocation29_spill] sm:$0xff] %v7352_v41  ;;  %v1031_v42 = vld [vmem:[%s7237_s17 + $0x98] sm:$0xff]  ;;  %v1030_v43 = vld [vmem:[%s7237_s17 + $0x90] sm:$0xff]  ;;  %s9735_s2 = smov %s9734_s6 }
  0x44   : > { %9729 = vst [vmem:[#allocation28_spill] sm:$0xff] %v7349_v40  ;;  %9731 = vst [vmem:[#allocation30_spill] sm:$0xff] %v7360_v44  ;;  %v1033_v45 = vld [vmem:[%s7237_s17 + $0xa8] sm:$0xff]  ;;  %v1032_v46 = vld [vmem:[%s7237_s17 + $0xa0] sm:$0xff]  ;;  %v7370_v47 = vpack.c.bf16 %v7352_v41, %v7349_v40 }
  0x45   : > { %5966 = vmatpush3.bf16.msra.mxu0 %v7296_v24  ;;  %6387 = vmatpush3.bf16.msra.mxu1 %v7296_v24  ;;  %v1035_v48 = vld [vmem:[%s7237_s17 + $0xb8] sm:$0xff]  ;;  %v1034_v49 = vld [vmem:[%s7237_s17 + $0xb0] sm:$0xff]  ;;  %v1037_v50 = vld [vmem:[%s7237_s17 + $0xc8] sm:$0xff] }
  0x46   : > { %5967 = vmatprep.subr.bf16.mxu0 %v7312_v29  ;;  %6380 = vmatprep.subr.bf16.mxu1 %v7312_v29  ;;  %9732 = vst [vmem:[#allocation31_spill] sm:$0xff] %v7370_v47  ;;  %v1036_v51 = vld [vmem:[%s7237_s17 + $0xc0] sm:$0xff]  ;;  %v1039_v52 = vld [vmem:[%s7237_s17 + $0xd8] sm:$0xff]  ;;  %v1038_v53 = vld [vmem:[%s7237_s17 + $0xd0] sm:$0xff] }
  0x47   : > { %1075 = vperm.xlu1 %6438, %v1021_v18   ;;  %1072 = vperm.xlu0 %6437, %v1020_v19   ;;  %v1041_v54 = vld [vmem:[%s7237_s17 + $0xe8] sm:$0xff]  ;;  %v1040_v55 = vld [vmem:[%s7237_s17 + $0xe0] sm:$0xff]  ;;  %v1043_v56 = vld [vmem:[%s7237_s17 + $0xf8] sm:$0xff] }
  0x48   : > { %v1042_v57 = vld [vmem:[%s7237_s17 + $0xf0] sm:$0xff]  ;;  %v7392_v58 = vld [vmem:[%s9733_s20 + $0x38] sm:$0xff]   ;;  %v6460_v9 = vld [vmem:[%s7227_s30 + $0x28] sm:$0xff]   ;;  %s9768_s17 = sld [smem:[#allocation101_spill]] }
  0x49   : > { %5968 = vmatpush3.bf16.msra.mxu0 %v7312_v29  ;;  %6388 = vmatpush3.bf16.msra.mxu1 %v7312_v29  ;;  %v6440_v59 = vld [vmem:[%s9734_s6 + $0x38] sm:$0xff]   ;;  %v6442_v19 = vld [vmem:[%s9735_s2 + $0x30] sm:$0xff]   ;;  %v6472_v10 = vld [vmem:[%s7227_s30 + $0x68] sm:$0xff]   ;;  %s9899_s6 = sld [smem:[#allocation110_spill]] (!%p5617_p8) }
  0x4a   : > { %5969 = vmatprep.subr.bf16.mxu0 %v7328_v34  ;;  %6381 = vmatprep.subr.bf16.mxu1 %v7328_v34  ;;  %v6450_v61 = vld [vmem:[%s9735_s2 + $0x10] sm:$0xff]   ;;  %v7723_v25 = vld [vmem:[%s7232_s16 + $0x88] sm:$0xff]  ;;  %v7736_v40 = vld [vmem:[%s7232_s16 + $0xa0] sm:$0xff] }
  0x4b   : > { %1081 = vperm.xlu1 %6438, %v1023_v22   ;;  %1078 = vperm.xlu0 %6437, %v1022_v23   ;;  %v7051_v22 = vmov 1.0|1.0   ;;  %9785 = vst [vmem:[#allocation80_spill] sm:$0xff] %v7723_v25  ;;  %9788 = vst [vmem:[#allocation83_spill] sm:$0xff] %v7736_v40  ;;  %v7739_v36 = vld [vmem:[%s7232_s16 + $0xa8] sm:$0xff]  ;;  %v7752_v15 = vld [vmem:[%s7232_s16 + $0xc0] sm:$0xff] }
  0x4c   : > { %9789 = vst [vmem:[#allocation84_spill] sm:$0xff] %v7739_v36  ;;  %v972_v14 = vpack.c.bf16 %v7739_v36, %v7736_v40  ;;  %9792 = vst [vmem:[#allocation87_spill] sm:$0xff] %v7752_v15  ;;  %v7755_v24 = vld [vmem:[%s7232_s16 + $0xc8] sm:$0xff] }
  0x4d   : > { %5970 = vmatpush3.bf16.msra.mxu0 %v7328_v34  ;;  %6389 = vmatpush3.bf16.msra.mxu1 %v7328_v34  ;;  %9793 = vst [vmem:[#allocation88_spill] sm:$0xff] %v7755_v24  ;;  %v974_v34 = vpack.c.bf16 %v7755_v24, %v7752_v15 }
  0x4e   : > { %5971 = vmatprep.subr.bf16.mxu0 %v7344_v39  ;;  %6382 = vmatprep.subr.bf16.mxu1 %v7344_v39 }
  0x4f   : > { %1087 = vperm.xlu1 %6438, %v1025_v27   ;;  %1084 = vperm.xlu0 %6437, %v1024_v28  }
  0x51   : > { %5972 = vmatpush3.bf16.msra.mxu0 %v7344_v39  ;;  %6390 = vmatpush3.bf16.msra.mxu1 %v7344_v39  ;;  %v7768_v39 = vld [vmem:[%s7232_s16 + $0xe0] sm:$0xff] }
  0x52   : > { %5973 = vmatprep.subr.bf16.mxu0 %v7360_v44  ;;  %6383 = vmatprep.subr.bf16.mxu1 %v7360_v44  ;;  %9796 = vst [vmem:[#allocation91_spill] sm:$0xff] %v7768_v39 }
  0x53   : > { %1093 = vperm.xlu1 %6438, %v1027_v32   ;;  %1090 = vperm.xlu0 %6437, %v1026_v33  }
  0x55   : > { %5974 = vmatpush3.bf16.msra.mxu0 %v7360_v44  ;;  %6391 = vmatpush3.bf16.msra.mxu1 %v7360_v44  ;;  %v7771_v44 = vld [vmem:[%s7232_s16 + $0xe8] sm:$0xff] }
  0x56   : > { %5975 = vmatprep.subr.bf16.mxu0 %v7370_v47  ;;  %6384 = vmatprep.subr.bf16.mxu1 %v7370_v47  ;;  %9797 = vst [vmem:[#allocation92_spill] sm:$0xff] %v7771_v44 }
  0x57   : > { %1099 = vperm.xlu1 %6438, %v1029_v37   ;;  %1096 = vperm.xlu0 %6437, %v1028_v38   ;;  %v6444_v37 = vld [vmem:[%s9735_s2 + $0x28] sm:$0xff]  }
  0x59   : > { %5976 = vmatpush3.bf16.msra.mxu0 %v7370_v47  ;;  %6392 = vmatpush3.bf16.msra.mxu1 %v7370_v47 }
  0x5a   : > { %6009 = vmatprep.subr.bf16.mxu1 %v7392_v58  ;;  %6057 = vmatprep.subr.bf16.mxu0 %v6440_v59 }
  0x5b   : > { %1105 = vperm.xlu1 %6438, %v1031_v42   ;;  %1102 = vperm.xlu0 %6437, %v1030_v43  }
  0x5f   : > { %1111 = vperm.xlu1 %6438, %v1033_v45   ;;  %1108 = vperm.xlu0 %6437, %v1032_v46  }
  0x63   : > { %1117 = vperm.xlu1 %6438, %v1035_v48   ;;  %1114 = vperm.xlu0 %6437, %v1034_v49   ;;  %v6446_v48 = vld [vmem:[%s9735_s2 + $0x20] sm:$0xff]  }
  0x67   : > { %1123 = vperm.xlu1 %6438, %v1037_v50   ;;  %1120 = vperm.xlu0 %6437, %v1036_v51  }
  0x6b   : > { %1129 = vperm.xlu1 %6438, %v1039_v52   ;;  %1126 = vperm.xlu0 %6437, %v1038_v53  }
  0x6f   : > { %1135 = vperm.xlu1 %6438, %v1041_v54   ;;  %1132 = vperm.xlu0 %6437, %v1040_v55   ;;  %v6448_v54 = vld [vmem:[%s9735_s2 + $0x18] sm:$0xff]  }
  0x73   : > { %1141 = vperm.xlu1 %6438, %v1043_v56   ;;  %1138 = vperm.xlu0 %6437, %v1042_v57  }
  0xb2   : > { %v1055_v0 = vpop.permute.xlu1 %1054  ;;  %v1049_v1 = vpop.permute.xlu0 %1048 }
  0xb3   : > { %vm1145_vm0 = vcmp.eq.s32.totalorder %v1055_v0, %v7399_v63  ;;  %vm1143_vm1 = vcmp.eq.s32.totalorder %v1049_v1, %v7399_v63 }
  0xb4   : > { %v7406_v5 = vsel %vm1145_vm0, 1.0, %v7050_v4  ;;  %v7409_v6 = vsel %vm1143_vm1, 1.0, %v7050_v4 }
  0xb5   : > { %9736 = vst [vmem:[#allocation32_spill] sm:$0xff] %v7406_v5  ;;  %9737 = vst [vmem:[#allocation33_spill] sm:$0xff] %v7409_v6 }
  0xb6   : > { %v1058_v2 = vpop.permute.xlu1 %1057  ;;  %v1052_v3 = vpop.permute.xlu0 %1051 }
  0xb7   : > { %vm1146_vm2 = vcmp.eq.s32.totalorder %v1058_v2, %v7399_v63  ;;  %vm1144_vm3 = vcmp.eq.s32.totalorder %v1052_v3, %v7399_v63 }
  0xb8   : > { %v7412_v7 = vsel %vm1146_vm2, 1.0, %v7050_v4  ;;  %vm5462_vm4 = vmpackc.low %vm1146_vm2, %vm1145_vm0  ;;  %v7415_v8 = vsel %vm1144_vm3, 1.0, %v7050_v4 }
  0xb9   : > { %9738 = vst [vmem:[#allocation34_spill] sm:$0xff] %v7412_v7  ;;  %9739 = vst [vmem:[#allocation35_spill] sm:$0xff] %v7415_v8  ;;  %v7888_v7 = vld [vmem:[%s9801_s8] ss:$0 sm:$0xff] }
  0xba   : > { %vm5460_vm5 = vmpackc.low %vm1144_vm3, %vm1143_vm1  ;;  %v1064_v23 = vpop.permute.xlu1 %1063  ;;  %v1061_v27 = vpop.permute.xlu0 %1060 }
  0xbb   : > { %5977 = vmatprep.mubr.msk.bf16.mxu0 %vm5460_vm5, %v7051_v22  ;;  %vm1148_vm6 = vcmp.eq.s32.totalorder %v1064_v23, %v7399_v63  ;;  %vm1147_vm7 = vcmp.eq.s32.totalorder %v1061_v27, %v7399_v63 }
  0xbc   : > { %5978 = vmatmul.mubr.msk.bf16.vlgmr.msra.gmra.mxu0 %vm5462_vm4, %v7051_v22  ;;  %v7429_v28 = vsel %vm1148_vm6, 1.0, %v7050_v4  ;;  %v7432_v32 = vsel %vm1147_vm7, 1.0, %v7050_v4  ;;  %vm5464_vm8 = vmpackc.low %vm1148_vm6, %vm1147_vm7 }
  0xbd   : > { %9740 = vst [vmem:[#allocation36_spill] sm:$0xff] %v7429_v28  ;;  %9741 = vst [vmem:[#allocation37_spill] sm:$0xff] %v7432_v32  ;;  %6058 = vmatpush3.bf16.msra.mxu0 %v6440_v59  ;;  %5981 = vmatprep.mubr.msk.bf16.mxu0 %vm5464_vm8, %v7051_v22 }
  0xbe   : > { %6059 = vmatprep.subr.bf16.mxu0 %v6442_v19  ;;  %v1070_v38 = vpop.permute.xlu1 %1069  ;;  %v1067_v42 = vpop.permute.xlu0 %1066 }
  0xbf   : > { %vm1150_vm9 = vcmp.eq.s32.totalorder %v1070_v38, %v7399_v63  ;;  %vm1149_vm10 = vcmp.eq.s32.totalorder %v1067_v42, %v7399_v63 }
  0xc0   : > { %v7443_v43 = vsel %vm1150_vm9, 1.0, %v7050_v4  ;;  %v7446_v45 = vsel %vm1149_vm10, 1.0, %v7050_v4  ;;  %vm5466_vm11 = vmpackc.low %vm1150_vm9, %vm1149_vm10 }
  0xc1   : > { %9742 = vst [vmem:[#allocation38_spill] sm:$0xff] %v7443_v43  ;;  %9743 = vst [vmem:[#allocation39_spill] sm:$0xff] %v7446_v45  ;;  %6060 = vmatpush3.bf16.msra.mxu0 %v6442_v19 }
  0xc2   : > { %6061 = vmatprep.subr.bf16.mxu0 %v6444_v37  ;;  %v1076_v49 = vpop.permute.xlu1 %1075  ;;  %v1073_v50 = vpop.permute.xlu0 %1072 }
  0xc3   : > { %vm1152_vm12 = vcmp.eq.s32.totalorder %v1076_v49, %v7399_v63  ;;  %vm1151_vm13 = vcmp.eq.s32.totalorder %v1073_v50, %v7399_v63 }
  0xc4   : > { %5982 = vmatmul.mubr.msk.bf16.gmra.mxu0 %vm5466_vm11, %v7051_v22  ;;  %v7457_v51 = vsel %vm1152_vm12, 1.0, %v7050_v4  ;;  %v7460_v52 = vsel %vm1151_vm13, 1.0, %v7050_v4  ;;  %vm5468_vm14 = vmpackc.low %vm1152_vm12, %vm1151_vm13 }
  0xc5   : > { %9744 = vst [vmem:[#allocation40_spill] sm:$0xff] %v7457_v51  ;;  %9745 = vst [vmem:[#allocation41_spill] sm:$0xff] %v7460_v52  ;;  %6062 = vmatpush3.bf16.msra.mxu0 %v6444_v37  ;;  %5985 = vmatprep.mubr.msk.bf16.mxu0 %vm5468_vm14, %v7051_v22 }
  0xc6   : > { %6063 = vmatprep.subr.bf16.mxu0 %v6446_v48  ;;  %v1082_v55 = vpop.permute.xlu1 %1081  ;;  %v1079_v56 = vpop.permute.xlu0 %1078 }
  0xc7   : > { %vm1154_vm15 = vcmp.eq.s32.totalorder %v1082_v55, %v7399_v63  ;;  %vm1153_vm0 = vcmp.eq.s32.totalorder %v1079_v56, %v7399_v63 }
  0xc8   : > { %v7471_v57 = vsel %vm1154_vm15, 1.0, %v7050_v4  ;;  %v7474_v59 = vsel %vm1153_vm0, 1.0, %v7050_v4  ;;  %vm5470_vm1 = vmpackc.low %vm1154_vm15, %vm1153_vm0 }
  0xc9   : > { %9746 = vst [vmem:[#allocation42_spill] sm:$0xff] %v7471_v57  ;;  %9747 = vst [vmem:[#allocation43_spill] sm:$0xff] %v7474_v59  ;;  %6064 = vmatpush3.bf16.msra.mxu0 %v6446_v48 }
  0xca   : > { %6065 = vmatprep.subr.bf16.mxu0 %v6448_v54  ;;  %v1088_v62 = vpop.permute.xlu1 %1087  ;;  %v1085_v0 = vpop.permute.xlu0 %1084 }
  0xcb   : > { %vm1156_vm2 = vcmp.eq.s32.totalorder %v1088_v62, %v7399_v63  ;;  %vm1155_vm3 = vcmp.eq.s32.totalorder %v1085_v0, %v7399_v63 }
  0xcc   : > { %5986 = vmatmul.mubr.msk.bf16.gmra.mxu0 %vm5470_vm1, %v7051_v22  ;;  %v7485_v1 = vsel %vm1156_vm2, 1.0, %v7050_v4  ;;  %v7488_v2 = vsel %vm1155_vm3, 1.0, %v7050_v4  ;;  %vm5472_vm4 = vmpackc.low %vm1156_vm2, %vm1155_vm3 }
  0xcd   : > { %9748 = vst [vmem:[#allocation44_spill] sm:$0xff] %v7485_v1  ;;  %9749 = vst [vmem:[#allocation45_spill] sm:$0xff] %v7488_v2  ;;  %6066 = vmatpush3.bf16.msra.mxu0 %v6448_v54  ;;  %5989 = vmatprep.mubr.msk.bf16.mxu0 %vm5472_vm4, %v7051_v22 }
  0xce   : > { %6067 = vmatprep.subr.bf16.mxu0 %v6450_v61  ;;  %v1094_v19 = vpop.permute.xlu1 %1093  ;;  %v1091_v23 = vpop.permute.xlu0 %1090 }
  0xcf   : > { %vm1158_vm5 = vcmp.eq.s32.totalorder %v1094_v19, %v7399_v63  ;;  %vm1157_vm6 = vcmp.eq.s32.totalorder %v1091_v23, %v7399_v63 }
  0xd0   : > { %v7496_v27 = vsel %vm1158_vm5, 1.0, %v7050_v4  ;;  %v7499_v37 = vsel %vm1157_vm6, 1.0, %v7050_v4  ;;  %vm5474_vm7 = vmpackc.low %vm1158_vm5, %vm1157_vm6 }
  0xd1   : > { %9750 = vst [vmem:[#allocation46_spill] sm:$0xff] %v7496_v27  ;;  %9751 = vst [vmem:[#allocation47_spill] sm:$0xff] %v7499_v37  ;;  %6068 = vmatpush3.bf16.msra.mxu0 %v6450_v61  ;;  %v6441_v61 = vld [vmem:[%s9733_s20 + $0x30] sm:$0xff]  }
  0xd2   : > { %v1100_v42 = vpop.permute.xlu1 %1099  ;;  %v1097_v48 = vpop.permute.xlu0 %1096 }
  0xd3   : > { %vm1160_vm8 = vcmp.eq.s32.totalorder %v1100_v42, %v7399_v63  ;;  %vm1159_vm9 = vcmp.eq.s32.totalorder %v1097_v48, %v7399_v63  ;;  %v6443_v48 = vld [vmem:[%s9733_s20 + $0x28] sm:$0xff]  }
  0xd4   : > { %5990 = vmatmul.mubr.msk.bf16.gmra.mxu0 %vm5474_vm7, %v7051_v22  ;;  %v7507_v49 = vsel %vm1160_vm8, 1.0, %v7050_v4  ;;  %v7510_v50 = vsel %vm1159_vm9, 1.0, %v7050_v4  ;;  %vm5476_vm10 = vmpackc.low %vm1160_vm8, %vm1159_vm9 }
  0xd5   : > { %9752 = vst [vmem:[#allocation48_spill] sm:$0xff] %v7507_v49  ;;  %9753 = vst [vmem:[#allocation49_spill] sm:$0xff] %v7510_v50  ;;  %5993 = vmatprep.mubr.msk.bf16.mxu1 %vm5476_vm10, %v7051_v22 }
  0xd6   : > { %v1106_v55 = vpop.permute.xlu1 %1105  ;;  %v1103_v56 = vpop.permute.xlu0 %1102 }
  0xd7   : > { %vm1162_vm11 = vcmp.eq.s32.totalorder %v1106_v55, %v7399_v63  ;;  %vm1161_vm12 = vcmp.eq.s32.totalorder %v1103_v56, %v7399_v63 }
  0xd8   : > { %v7521_v62 = vsel %vm1162_vm11, 1.0, %v7050_v4  ;;  %v7524_v0 = vsel %vm1161_vm12, 1.0, %v7050_v4  ;;  %vm5478_vm13 = vmpackc.low %vm1162_vm11, %vm1161_vm12 }
  0xd9   : > { %9754 = vst [vmem:[#allocation50_spill] sm:$0xff] %v7521_v62  ;;  %9755 = vst [vmem:[#allocation51_spill] sm:$0xff] %v7524_v0  ;;  %5994 = vmatmul.mubr.msk.bf16.vlgmr.msra.gmra.mxu1 %vm5478_vm13, %v7051_v22 }
  0xda   : > { %v1112_v23 = vpop.permute.xlu1 %1111  ;;  %v1109_v42 = vpop.permute.xlu0 %1108  ;;  %6010 = vmatpush3.bf16.msra.mxu1 %v7392_v58 }
  0xdb   : > { %vm1164_vm14 = vcmp.eq.s32.totalorder %v1112_v23, %v7399_v63  ;;  %vm1163_vm15 = vcmp.eq.s32.totalorder %v1109_v42, %v7399_v63  ;;  %6011 = vmatprep.subr.bf16.mxu1 %v6441_v61  ;;  %v6445_v42 = vld [vmem:[%s9733_s20 + $0x20] sm:$0xff]  }
  0xdc   : > { %v7536_v55 = vsel %vm1164_vm14, 1.0, %v7050_v4  ;;  %v7539_v56 = vsel %vm1163_vm15, 1.0, %v7050_v4  ;;  %vm5480_vm0 = vmpackc.low %vm1164_vm14, %vm1163_vm15 }
  0xdd   : > { %9756 = vst [vmem:[#allocation52_spill] sm:$0xff] %v7536_v55  ;;  %9757 = vst [vmem:[#allocation53_spill] sm:$0xff] %v7539_v56  ;;  %5997 = vmatprep.mubr.msk.bf16.mxu1 %vm5480_vm0, %v7051_v22 }
  0xde   : > { %v1118_v58 = vpop.permute.xlu1 %1117  ;;  %v1115_v23 = vpop.permute.xlu0 %1114  ;;  %6012 = vmatpush3.bf16.msra.mxu1 %v6441_v61 }
  0xdf   : > { %vm1166_vm1 = vcmp.eq.s32.totalorder %v1118_v58, %v7399_v63  ;;  %vm1165_vm2 = vcmp.eq.s32.totalorder %v1115_v23, %v7399_v63  ;;  %6013 = vmatprep.subr.bf16.mxu1 %v6443_v48  ;;  %v6447_v23 = vld [vmem:[%s9733_s20 + $0x18] sm:$0xff]  }
  0xe0   : > { %v7550_v3 = vsel %vm1166_vm1, 1.0, %v7050_v4  ;;  %v7553_v60 = vsel %vm1165_vm2, 1.0, %v7050_v4  ;;  %vm5482_vm3 = vmpackc.low %vm1166_vm1, %vm1165_vm2 }
  0xe1   : > { %9758 = vst [vmem:[#allocation54_spill] sm:$0xff] %v7550_v3  ;;  %9759 = vst [vmem:[#allocation55_spill] sm:$0xff] %v7553_v60  ;;  %5998 = vmatmul.mubr.msk.bf16.gmra.mxu1 %vm5482_vm3, %v7051_v22 }
  0xe2   : > { %v1124_v61 = vpop.permute.xlu1 %1123  ;;  %v1121_v58 = vpop.permute.xlu0 %1120  ;;  %6014 = vmatpush3.bf16.msra.mxu1 %v6443_v48 }
  0xe3   : > { %vm1168_vm4 = vcmp.eq.s32.totalorder %v1124_v61, %v7399_v63  ;;  %vm1167_vm5 = vcmp.eq.s32.totalorder %v1121_v58, %v7399_v63  ;;  %6015 = vmatprep.subr.bf16.mxu1 %v6445_v42  ;;  %v6449_v58 = vld [vmem:[%s9733_s20 + $0x10] sm:$0xff]  }
  0xe4   : > { %v7564_v46 = vsel %vm1168_vm4, 1.0, %v7050_v4  ;;  %v7567_v33 = vsel %vm1167_vm5, 1.0, %v7050_v4  ;;  %vm5484_vm6 = vmpackc.low %vm1168_vm4, %vm1167_vm5 }
  0xe5   : > { %9760 = vst [vmem:[#allocation56_spill] sm:$0xff] %v7564_v46  ;;  %9761 = vst [vmem:[#allocation57_spill] sm:$0xff] %v7567_v33  ;;  %6001 = vmatprep.mubr.msk.bf16.mxu1 %vm5484_vm6, %v7051_v22 }
  0xe6   : > { %v1130_v48 = vpop.permute.xlu1 %1129  ;;  %v1127_v61 = vpop.permute.xlu0 %1126  ;;  %6016 = vmatpush3.bf16.msra.mxu1 %v6445_v42 }
  0xe7   : > { %vm1170_vm7 = vcmp.eq.s32.totalorder %v1130_v48, %v7399_v63  ;;  %vm1169_vm8 = vcmp.eq.s32.totalorder %v1127_v61, %v7399_v63  ;;  %6017 = vmatprep.subr.bf16.mxu1 %v6447_v23 }
  0xe8   : > { %v7578_v53 = vsel %vm1170_vm7, 1.0, %v7050_v4  ;;  %v7581_v18 = vsel %vm1169_vm8, 1.0, %v7050_v4  ;;  %vm5486_vm9 = vmpackc.low %vm1170_vm7, %vm1169_vm8 }
  0xe9   : > { %9762 = vst [vmem:[#allocation58_spill] sm:$0xff] %v7578_v53  ;;  %9763 = vst [vmem:[#allocation59_spill] sm:$0xff] %v7581_v18  ;;  %6002 = vmatmul.mubr.msk.bf16.gmra.mxu1 %vm5486_vm9, %v7051_v22 }
  0xea   : > { %v1136_v42 = vpop.permute.xlu1 %1135  ;;  %v1133_v48 = vpop.permute.xlu0 %1132  ;;  %6018 = vmatpush3.bf16.msra.mxu1 %v6447_v23 }
  0xeb   : > { %vm1172_vm10 = vcmp.eq.s32.totalorder %v1136_v42, %v7399_v63  ;;  %vm1171_vm11 = vcmp.eq.s32.totalorder %v1133_v48, %v7399_v63  ;;  %6019 = vmatprep.subr.bf16.mxu1 %v6449_v58  ;;  %v6459_v48 = vld [vmem:[%s7227_s30 + $0x20] sm:$0xff]  }
  0xec   : > { %v7589_v61 = vsel %vm1172_vm10, 1.0, %v7050_v4  ;;  %v7592_v38 = vsel %vm1171_vm11, 1.0, %v7050_v4  ;;  %vm5488_vm12 = vmpackc.low %vm1172_vm10, %vm1171_vm11 }
  0xed   : > { %9764 = vst [vmem:[#allocation60_spill] sm:$0xff] %v7589_v61  ;;  %9765 = vst [vmem:[#allocation61_spill] sm:$0xff] %v7592_v38  ;;  %6005 = vmatprep.mubr.msk.bf16.mxu1 %vm5488_vm12, %v7051_v22 }
  0xee   : > { %v1142_v19 = vpop.permute.xlu1 %1141  ;;  %v1139_v54 = vpop.permute.xlu0 %1138  ;;  %6020 = vmatpush3.bf16.msra.mxu1 %v6449_v58  ;;  %v6456_v58 = vld [vmem:[%s7227_s30 + $0x8] sm:$0xff]  }
  0xef   : > { %vm1174_vm13 = vcmp.eq.s32.totalorder %v1142_v19, %v7399_v63  ;;  %vm1173_vm14 = vcmp.eq.s32.totalorder %v1139_v54, %v7399_v63  ;;  %v6451_v19 = vld [vmem:[%s9733_s20 + $0x8] sm:$0xff]   ;;  %v6455_v54 = vld [vmem:[%s7227_s30] sm:$0xff]  }
  0xf0   : > { %v7600_v23 = vsel %vm1174_vm13, 1.0, %v7050_v4  ;;  %v7603_v42 = vsel %vm1173_vm14, 1.0, %v7050_v4  ;;  %vm5490_vm15 = vmpackc.low %vm1174_vm13, %vm1173_vm14  ;;  %v6452_v63 = vld [vmem:[%s9735_s2 + $0x8] sm:$0xff]   ;;  %6021 = vmatprep.subr.bf16.mxu1 %v6451_v19  ;;  %v6453_v4 = vld [vmem:[%s9733_s20] sm:$0xff]   ;;  %6073 = vmatprep.mubr.bf16.mxu0 %v6455_v54 }
  0xf1   : > { %9766 = vst [vmem:[#allocation62_spill] sm:$0xff] %v7600_v23  ;;  %9767 = vst [vmem:[#allocation63_spill] sm:$0xff] %v7603_v42  ;;  %6006 = vmatmul.mubr.msk.bf16.gmra.mxu1 %vm5490_vm15, %v7051_v22  ;;  %6069 = vmatprep.subr.bf16.mxu0 %v6452_v63  ;;  %v6454_v22 = vld [vmem:[%s9735_s2] sm:$0xff]   ;;  %v6463_v54 = vld [vmem:[%s9768_s17 + $0x38] sm:$0xff]  }
  0xf2   : > { %6022 = vmatpush3.bf16.msra.mxu1 %v6451_v19  ;;  %6070 = vmatpush3.bf16.msra.mxu0 %v6452_v63  ;;  %v6457_v19 = vld [vmem:[%s7227_s30 + $0x10] sm:$0xff]   ;;  %v6458_v63 = vld [vmem:[%s7227_s30 + $0x18] sm:$0xff]  }
  0xf3   : > { %6023 = vmatprep.subr.bf16.mxu1 %v6453_v4  ;;  %6071 = vmatprep.subr.bf16.mxu0 %v6454_v22 }
  0xf6   : > { %6024 = vmatpush3.bf16.msra.mxu1 %v6453_v4  ;;  %6072 = vmatpush3.bf16.msra.mxu0 %v6454_v22  ;;  %v6461_v4 = vld [vmem:[%s7227_s30 + $0x30] sm:$0xff]   ;;  %v6462_v22 = vld [vmem:[%s7227_s30 + $0x38] sm:$0xff]  }
  0xf7   : > { %6105 = vmatprep.subr.bf16.mxu1 %v6463_v54 }
  0xf9   : > { %6074 = vmatmul.mubr.bf16.vlgmr.msra.gmra.mxu0 %v6456_v58  ;;  %v6464_v58 = vld [vmem:[%s7227_s30 + $0x40] sm:$0xff]  }
  0xfa   : > { %6077 = vmatprep.mubr.bf16.mxu0 %v6457_v19  ;;  %v6465_v19 = vld [vmem:[%s7227_s30 + $0x48] sm:$0xff]  }
 0x101   : > { %6078 = vmatmul.mubr.bf16.gmra.mxu0 %v6458_v63  ;;  %v6467_v63 = vld [vmem:[%s7227_s30 + $0x50] sm:$0xff]  }
 0x102   : > { %6081 = vmatprep.mubr.bf16.mxu0 %v6459_v48  ;;  %v6468_v48 = vld [vmem:[%s7227_s30 + $0x58] sm:$0xff]  }
 0x109   : > { %6082 = vmatmul.mubr.bf16.gmra.mxu0 %v6460_v9  ;;  %v6471_v9 = vld [vmem:[%s7227_s30 + $0x60] sm:$0xff]  }
 0x10a   : > { %6085 = vmatprep.mubr.bf16.mxu0 %v6461_v4  ;;  %v6475_v4 = vld [vmem:[%s7227_s30 + $0x70] sm:$0xff]  }
 0x111   : > { %6086 = vmatmul.mubr.bf16.gmra.mxu0 %v6462_v22  ;;  %v6476_v22 = vld [vmem:[%s7227_s30 + $0x78] sm:$0xff]  }
 0x112   : > { %6089 = vmatprep.mubr.bf16.mxu0 %v6464_v58 }
 0x119   : > { %6090 = vmatmul.mubr.bf16.gmra.mxu0 %v6465_v19  ;;  %v6466_v19 = vld [vmem:[%s9768_s17 + $0x30] sm:$0xff]  }
 0x11a   : > { %6093 = vmatprep.mubr.bf16.mxu0 %v6467_v63 }
 0x121   : > { %6094 = vmatmul.mubr.bf16.gmra.mxu0 %v6468_v48  ;;  %v6469_v48 = vld [vmem:[%s9768_s17 + $0x28] sm:$0xff]  }
 0x122   : > { %6097 = vmatprep.mubr.bf16.mxu0 %v6471_v9 }
 0x129   : > { %6098 = vmatmul.mubr.bf16.gmra.mxu0 %v6472_v10 }
 0x12a   : > { %6101 = vmatprep.mubr.bf16.mxu0 %v6475_v4 }
 0x131   : > { %6102 = vmatmul.mubr.bf16.gmra.mxu0 %v6476_v22 }
 0x17c   : > { %v5979_v11 = vpop.f32.mrf.mxu0 }
 0x17e   : > { %v1289_v12 = vpop.f32.mrf.mxu0 }
 0x180   : > { %v5980_v13 = vpop.f32.mrf.mxu0 }
 0x181   : > { %v1417_v16 = vpack.c.bf16 %v5980_v13, %v5979_v11  ;;  %v6470_v13 = vld [vmem:[%s9768_s17 + $0x20] sm:$0xff]  }
 0x182   : > { %v1292_v20 = vpop.f32.mrf.mxu0 }
 0x183   : > { %v1416_v21 = vpack.c.bf16 %v1292_v20, %v1289_v12 }
 0x184   : > { %v5983_v58 = vpop.f32.mrf.mxu0 }
 0x185   : > { %6025 = vmatprep.mubr.bf16.mxu1 %v1416_v21  ;;  %v6473_v21 = vld [vmem:[%s9768_s17 + $0x18] sm:$0xff]  }
 0x186   : > { %v1305_v63 = vpop.f32.mrf.mxu0  ;;  %6026 = vmatmul.mubr.bf16.vlgmr.msra.gmra.mxu1 %v1417_v16 }
 0x187   : > { %6106 = vmatpush3.bf16.msra.mxu1 %v6463_v54 }
 0x188   : > { %v5984_v10 = vpop.f32.mrf.mxu0  ;;  %6107 = vmatprep.subr.bf16.mxu1 %v6466_v19 }
 0x189   : > { %v1419_v12 = vpack.c.bf16 %v5984_v10, %v5983_v58 }
 0x18a   : > { %v1308_v9 = vpop.f32.mrf.mxu0 }
 0x18b   : > { %v1418_v4 = vpack.c.bf16 %v1308_v9, %v1305_v63  ;;  %6108 = vmatpush3.bf16.msra.mxu1 %v6466_v19  ;;  %v6474_v63 = vld [vmem:[%s9768_s17 + $0x10] sm:$0xff]   ;;  %v6477_v9 = vld [vmem:[%s9768_s17 + $0x8] sm:$0xff]  }
 0x18c   : > { %v5987_v11 = vpop.f32.mrf.mxu0  ;;  %6109 = vmatprep.subr.bf16.mxu1 %v6469_v48 }
 0x18d   : > { %6029 = vmatprep.mubr.bf16.mxu1 %v1418_v4 }
 0x18e   : > { %v1321_v20 = vpop.f32.mrf.mxu0  ;;  %6030 = vmatmul.mubr.bf16.gmra.mxu1 %v1419_v12 }
 0x18f   : > { %6110 = vmatpush3.bf16.msra.mxu1 %v6469_v48 }
 0x190   : > { %v5988_v16 = vpop.f32.mrf.mxu0  ;;  %6111 = vmatprep.subr.bf16.mxu1 %v6470_v13 }
 0x191   : > { %v1421_v58 = vpack.c.bf16 %v5988_v16, %v5987_v11  ;;  %v6478_v16 = vld [vmem:[%s9768_s17] sm:$0xff]  }
 0x192   : > { %v1324_v54 = vpop.f32.mrf.mxu0 }
 0x193   : > { %v1420_v22 = vpack.c.bf16 %v1324_v54, %v1321_v20  ;;  %6112 = vmatpush3.bf16.msra.mxu1 %v6470_v13 }
 0x194   : > { %v5991_v19 = vpop.f32.mrf.mxu0  ;;  %6113 = vmatprep.subr.bf16.mxu1 %v6473_v21 }
 0x195   : > { %6033 = vmatprep.mubr.bf16.mxu1 %v1420_v22 }
 0x196   : > { %v1337_v10 = vpop.f32.mrf.mxu0  ;;  %6034 = vmatmul.mubr.bf16.gmra.mxu1 %v1421_v58 }
 0x197   : > { %6114 = vmatpush3.bf16.msra.mxu1 %v6473_v21 }
 0x198   : > { %v5992_v48 = vpop.f32.mrf.mxu0  ;;  %6115 = vmatprep.subr.bf16.mxu1 %v6474_v63 }
 0x199   : > { %v5995_v12 = vpop.f32.mrf.mxu1  ;;  %v1423_v11 = vpack.c.bf16 %v5992_v48, %v5991_v19 }
 0x19a   : > { %v1340_v4 = vpop.f32.mrf.mxu0 }
 0x19b   : > { %v1422_v13 = vpack.c.bf16 %v1340_v4, %v1337_v10  ;;  %6116 = vmatpush3.bf16.msra.mxu1 %v6474_v63  ;;  %v1353_v20 = vpop.f32.mrf.mxu1 }
 0x19c   : > { %6117 = vmatprep.subr.bf16.mxu1 %v6477_v9 }
 0x19d   : > { %6037 = vmatprep.mubr.bf16.mxu1 %v1422_v13  ;;  %v5996_v21 = vpop.f32.mrf.mxu1 }
 0x19e   : > { %6038 = vmatmul.mubr.bf16.gmra.mxu1 %v1423_v11  ;;  %v1425_v17 = vpack.c.bf16 %v5996_v21, %v5995_v12 }
 0x19f   : > { %6118 = vmatpush3.bf16.msra.mxu1 %v6477_v9  ;;  %v1356_v54 = vpop.f32.mrf.mxu1 }
 0x1a0   : > { %6119 = vmatprep.subr.bf16.mxu1 %v6478_v16  ;;  %v1424_v22 = vpack.c.bf16 %v1356_v54, %v1353_v20  ;;  %v7661_v54 = vld [vmem:[%s7232_s16] sm:$0xff] }
 0x1a1   : > { %v5999_v58 = vpop.f32.mrf.mxu1  ;;  %9769 = vst [vmem:[#allocation64_spill] sm:$0xff] %v7661_v54 }
 0x1a2   : > { %6041 = vmatprep.mubr.bf16.mxu1 %v1424_v22  ;;  %v7664_v22 = vld [vmem:[%s7232_s16 + $0x8] sm:$0xff] }
 0x1a3   : > { %6120 = vmatpush3.bf16.msra.mxu1 %v6478_v16  ;;  %v1369_v10 = vpop.f32.mrf.mxu1  ;;  %9770 = vst [vmem:[#allocation65_spill] sm:$0xff] %v7664_v22 }
 0x1a5   : > { %v6000_v19 = vpop.f32.mrf.mxu1 }
 0x1a6   : > { %6042 = vmatmul.mubr.bf16.gmra.mxu1 %v1425_v17  ;;  %v1427_v13 = vpack.c.bf16 %v6000_v19, %v5999_v58  ;;  %v7672_v19 = vld [vmem:[%s7232_s16 + $0x18] sm:$0xff] }
 0x1a7   : > { %v1372_v63 = vpop.f32.mrf.mxu1  ;;  %9772 = vst [vmem:[#allocation67_spill] sm:$0xff] %v7672_v19 }
 0x1a8   : > { %v1426_v48 = vpack.c.bf16 %v1372_v63, %v1369_v10  ;;  %v7669_v10 = vld [vmem:[%s7232_s16 + $0x10] sm:$0xff]  ;;  %v7675_v63 = vld [vmem:[%s7232_s16 + $0x20] sm:$0xff] }
 0x1a9   : > { %v6003_v4 = vpop.f32.mrf.mxu1  ;;  %9771 = vst [vmem:[#allocation66_spill] sm:$0xff] %v7669_v10  ;;  %9773 = vst [vmem:[#allocation68_spill] sm:$0xff] %v7675_v63 }
 0x1aa   : > { %6045 = vmatprep.mubr.bf16.mxu1 %v1426_v48  ;;  %v7678_v48 = vld [vmem:[%s7232_s16 + $0x28] sm:$0xff] }
 0x1ab   : > { %v1385_v11 = vpop.f32.mrf.mxu1  ;;  %9774 = vst [vmem:[#allocation69_spill] sm:$0xff] %v7678_v48 }
 0x1ad   : > { %v6004_v9 = vpop.f32.mrf.mxu1 }
 0x1ae   : > { %6046 = vmatmul.mubr.bf16.gmra.mxu1 %v1427_v13  ;;  %v1429_v12 = vpack.c.bf16 %v6004_v9, %v6003_v4  ;;  %v963_v4 = vpack.c.bf16 %v7672_v19, %v7669_v10  ;;  %v964_v13 = vpack.c.bf16 %v7678_v48, %v7675_v63  ;;  %v7686_v9 = vld [vmem:[%s7232_s16 + $0x38] sm:$0xff] }
 0x1af   : > { %v1388_v30 = vpop.f32.mrf.mxu1  ;;  %9775 = vst [vmem:[#allocation70_spill] sm:$0xff] %v7686_v9 }
 0x1b0   : > { %v1428_v31 = vpack.c.bf16 %v1388_v30, %v1385_v11  ;;  %v962_v30 = vpack.c.bf16 %v7664_v22, %v7661_v54  ;;  %v936_v11 = vld [vmem:[%s7232_s16 + $0x30] sm:$0xff]  ;;  %v976_v22 = vpack.c.bf16 %v7771_v44, %v7768_v39  ;;  %v6479_v54 = vld [vmem:[%s9800_s7 + $0x38] sm:$0xff]  }
 0x1b1   : > { %v6007_v20 = vpop.f32.mrf.mxu1  ;;  %6153 = vmatprep.subr.bf16.mxu0 %v6479_v54 }
 0x1b2   : > { %6049 = vmatprep.mubr.bf16.mxu1 %v1428_v31  ;;  %6154 = vmatpush3.bf16.msra.mxu0 %v6479_v54  ;;  %v6483_v54 = vld [vmem:[%s9800_s7 + $0x18] sm:$0xff]  }
 0x1b3   : > { %v1401_v17 = vpop.f32.mrf.mxu1 }
 0x1b5   : > { %v6008_v16 = vpop.f32.mrf.mxu1 }
 0x1b6   : > { %6050 = vmatmul.mubr.bf16.gmra.mxu1 %v1429_v12  ;;  %v1431_v31 = vpack.c.bf16 %v6008_v16, %v6007_v20  ;;  %v7689_v20 = vld [vmem:[%s7232_s16 + $0x40] sm:$0xff]  ;;  %v7692_v12 = vld [vmem:[%s7232_s16 + $0x48] sm:$0xff] }
 0x1b7   : > { %v1404_v21 = vpop.f32.mrf.mxu1  ;;  %9776 = vst [vmem:[#allocation71_spill] sm:$0xff] %v7689_v20  ;;  %9777 = vst [vmem:[#allocation72_spill] sm:$0xff] %v7692_v12  ;;  %v966_v16 = vpack.c.bf16 %v7692_v12, %v7689_v20 }
 0x1b8   : > { %v1430_v58 = vpack.c.bf16 %v1404_v21, %v1401_v17  ;;  %v965_v17 = vpack.c.bf16 %v7686_v9, %v936_v11  ;;  %v7698_v21 = vld [vmem:[%s7232_s16 + $0x50] sm:$0xff] }
 0x1b9   : > { %9778 = vst [vmem:[#allocation73_spill] sm:$0xff] %v7698_v21  ;;  %v7714_v11 = vld [vmem:[%s7232_s16 + $0x70] sm:$0xff] }
 0x1ba   : > { %6053 = vmatprep.mubr.bf16.mxu1 %v1430_v58  ;;  %v7701_v58 = vld [vmem:[%s7232_s16 + $0x58] sm:$0xff]  ;;  %9782 = vst [vmem:[#allocation77_spill] sm:$0xff] %v7714_v11 }
 0x1bb   : > { %9779 = vst [vmem:[#allocation74_spill] sm:$0xff] %v7701_v58 }
 0x1be   : > { %6054 = vmatmul.mubr.bf16.gmra.mxu1 %v1431_v31  ;;  %v7707_v31 = vld [vmem:[%s7232_s16 + $0x68] sm:$0xff] }
 0x1bf   : > { %6121 = vmatprep.mubr.bf16.mxu1 %v962_v30  ;;  %v7704_v30 = vld [vmem:[%s7232_s16 + $0x60] sm:$0xff]  ;;  %9781 = vst [vmem:[#allocation76_spill] sm:$0xff] %v7707_v31 }
 0x1c0   : > { %9780 = vst [vmem:[#allocation75_spill] sm:$0xff] %v7704_v30 }
 0x1c6   : > { %6122 = vmatmul.mubr.bf16.vlgmr.msra.gmra.mxu1 %v963_v4  ;;  %v967_v4 = vpack.c.bf16 %v7701_v58, %v7698_v21 }
 0x1c7   : > { %6125 = vmatprep.mubr.bf16.mxu1 %v964_v13  ;;  %v968_v13 = vpack.c.bf16 %v7707_v31, %v7704_v30 }
 0x1ce   : > { %6126 = vmatmul.mubr.bf16.gmra.mxu1 %v965_v17  ;;  %v7717_v17 = vld [vmem:[%s7232_s16 + $0x78] sm:$0xff] }
 0x1cf   : > { %6129 = vmatprep.mubr.bf16.mxu1 %v966_v16  ;;  %9783 = vst [vmem:[#allocation78_spill] sm:$0xff] %v7717_v17  ;;  %v7720_v16 = vld [vmem:[%s7232_s16 + $0x80] sm:$0xff]  ;;  %v969_v26 = vpack.c.bf16 %v7717_v17, %v7714_v11 }
 0x1d0   : > { %9784 = vst [vmem:[#allocation79_spill] sm:$0xff] %v7720_v16  ;;  %v970_v41 = vpack.c.bf16 %v7723_v25, %v7720_v16  ;;  %v7778_v25 = vld [vmem:[%s7232_s16 + $0xf0] sm:$0xff] }
 0x1d1   : > { %9798 = vst [vmem:[#allocation93_spill] sm:$0xff] %v7778_v25  ;;  %v6480_v16 = vld [vmem:[%s9800_s7 + $0x30] sm:$0xff]  }
 0x1d2   : > { %6155 = vmatprep.subr.bf16.mxu0 %v6480_v16 }
 0x1d3   : > { %6156 = vmatpush3.bf16.msra.mxu0 %v6480_v16  ;;  %v6484_v16 = vld [vmem:[%s9800_s7 + $0x10] sm:$0xff]  }
 0x1d6   : > { %6130 = vmatmul.mubr.bf16.gmra.mxu1 %v967_v4  ;;  %v7730_v4 = vld [vmem:[%s7232_s16 + $0x90] sm:$0xff] }
 0x1d7   : > { %6133 = vmatprep.mubr.bf16.mxu1 %v968_v13  ;;  %9786 = vst [vmem:[#allocation81_spill] sm:$0xff] %v7730_v4  ;;  %v7733_v13 = vld [vmem:[%s7232_s16 + $0x98] sm:$0xff] }
 0x1d8   : > { %9787 = vst [vmem:[#allocation82_spill] sm:$0xff] %v7733_v13  ;;  %v971_v35 = vpack.c.bf16 %v7733_v13, %v7730_v4 }
 0x1de   : > { %6134 = vmatmul.mubr.bf16.gmra.mxu1 %v969_v26  ;;  %v7746_v26 = vld [vmem:[%s7232_s16 + $0xb0] sm:$0xff] }
 0x1df   : > { %6137 = vmatprep.mubr.bf16.mxu1 %v970_v41  ;;  %9790 = vst [vmem:[#allocation85_spill] sm:$0xff] %v7746_v26  ;;  %v7749_v41 = vld [vmem:[%s7232_s16 + $0xb8] sm:$0xff] }
 0x1e0   : > { %9791 = vst [vmem:[#allocation86_spill] sm:$0xff] %v7749_v41  ;;  %v973_v29 = vpack.c.bf16 %v7749_v41, %v7746_v26 }
 0x1e6   : > { %6138 = vmatmul.mubr.bf16.gmra.mxu1 %v971_v35  ;;  %v7762_v35 = vld [vmem:[%s7232_s16 + $0xd0] sm:$0xff] }
 0x1e7   : > { %6141 = vmatprep.mubr.bf16.mxu1 %v972_v14  ;;  %9794 = vst [vmem:[#allocation89_spill] sm:$0xff] %v7762_v35  ;;  %v7765_v14 = vld [vmem:[%s7232_s16 + $0xd8] sm:$0xff] }
 0x1e8   : > { %9795 = vst [vmem:[#allocation90_spill] sm:$0xff] %v7765_v14  ;;  %v975_v47 = vpack.c.bf16 %v7765_v14, %v7762_v35 }
 0x1ee   : > { %6142 = vmatmul.mubr.bf16.gmra.mxu1 %v973_v29  ;;  %v7781_v29 = vld [vmem:[%s7232_s16 + $0xf8] sm:$0xff] }
 0x1ef   : > { %6145 = vmatprep.mubr.bf16.mxu1 %v974_v34  ;;  %9799 = vst [vmem:[#allocation94_spill] sm:$0xff] %v7781_v29  ;;  %v977_v34 = vpack.c.bf16 %v7781_v29, %v7778_v25 }
 0x1f6   : > { %6146 = vmatmul.mubr.bf16.gmra.mxu1 %v975_v47  ;;  %v6481_v47 = vld [vmem:[%s9800_s7 + $0x28] sm:$0xff]  }
 0x1f7   : > { %6149 = vmatprep.mubr.bf16.mxu1 %v976_v22  ;;  %6157 = vmatprep.subr.bf16.mxu0 %v6481_v47  ;;  %v6482_v22 = vld [vmem:[%s9800_s7 + $0x20] sm:$0xff]  }
 0x1f8   : > { %6158 = vmatpush3.bf16.msra.mxu0 %v6481_v47  ;;  %v6486_v47 = vld [vmem:[%s9800_s7] sm:$0xff]  }
 0x1f9   : > { %6159 = vmatprep.subr.bf16.mxu0 %v6482_v22 }
 0x1fc   : > { %6160 = vmatpush3.bf16.msra.mxu0 %v6482_v22  ;;  %v6075_v22 = vpop.f32.mrf.mxu0 }
 0x1fd   : > { %6161 = vmatprep.subr.bf16.mxu0 %v6483_v54 }
 0x1fe   : > { %6150 = vmatmul.mubr.bf16.gmra.mxu1 %v977_v34  ;;  %v6485_v34 = vld [vmem:[%s9800_s7 + $0x8] sm:$0xff]  }
 0x200   : > { %6162 = vmatpush3.bf16.msra.mxu0 %v6483_v54  ;;  %v1851_v54 = vpop.f32.mrf.mxu0 }
 0x201   : > { %6163 = vmatprep.subr.bf16.mxu0 %v6484_v16 }
 0x202   : > { %v6076_v13 = vpop.f32.mrf.mxu0 }
 0x204   : > { %6164 = vmatpush3.bf16.msra.mxu0 %v6484_v16  ;;  %v1854_v39 = vpop.f32.mrf.mxu0 }
 0x205   : > { %6165 = vmatprep.subr.bf16.mxu0 %v6485_v34 }
 0x206   : > { %v6079_v4 = vpop.f32.mrf.mxu0 }
 0x208   : > { %6166 = vmatpush3.bf16.msra.mxu0 %v6485_v34  ;;  %v1867_v34 = vpop.f32.mrf.mxu0 }
 0x209   : > { %6167 = vmatprep.subr.bf16.mxu0 %v6486_v47 }
 0x20a   : > { %v7815_v36 = vpop.f32.mrf.mxu0 }
 0x20c   : > { %6168 = vmatpush3.bf16.msra.mxu0 %v6486_v47  ;;  %v7821_v41 = vpop.f32.mrf.mxu0 }
 0x20e   : > { %v7827_v31 = vpop.f32.mrf.mxu0 }
 0x210   : > { %v7833_v12 = vpop.f32.mrf.mxu0 }
 0x212   : > { %v7839_v27 = vpop.f32.mrf.mxu0 }
 0x214   : > { %v7845_v20 = vpop.f32.mrf.mxu0 }
 0x216   : > { %v7851_v58 = vpop.f32.mrf.mxu0 }
 0x218   : > { %v7857_v52 = vpop.f32.mrf.mxu0 }
 0x21a   : > { %v7863_v38 = vpop.f32.mrf.mxu0 }
 0x21c   : > { %v7869_v43 = vpop.f32.mrf.mxu0 }
 0x21e   : > { %v7875_v53 = vpop.f32.mrf.mxu0 }
 0x220   : > { %v7881_v63 = vpop.f32.mrf.mxu0 }
 0x222   : > { %v7890_v60 = vpop.f32.mrf.mxu0 }
 0x224   : > { %v7895_v50 = vpop.f32.mrf.mxu0 }
 0x246   : > { %v6027_v19 = vpop.f32.mrf.mxu1 }
 0x247   : > { %v1860_v46 = vadd.f32 %v6075_v22, %v6027_v19 }
 0x248   : > { %v1546_v44 = vpop.f32.mrf.mxu1 }
 0x249   : > { %v1852_v9 = vadd.f32 %v1851_v54, %v1546_v44 }
 0x24a   : > { %v6028_v10 = vpop.f32.mrf.mxu1 }
 0x24b   : > { %v1863_v8 = vadd.f32 %v6076_v13, %v6028_v10 }
 0x24c   : > { %v1549_v16 = vpop.f32.mrf.mxu1 }
 0x24d   : > { %v1855_v62 = vadd.f32 %v1854_v39, %v1549_v16  ;;  %v7905_v39 = vpop.f32.mrf.mxu0 }
 0x24e   : > { %v6031_v29 = vpop.f32.mrf.mxu1 }
 0x24f   : > { %v1876_v44 = vadd.f32 %v6079_v4, %v6031_v29  ;;  %v7919_v16 = vpop.f32.mrf.mxu0 }
 0x250   : > { %v1562_v24 = vpop.f32.mrf.mxu1 }
 0x252   : > { %v7809_v25 = vpop.f32.mrf.mxu1 }
 0x254   : > { %v7811_v14 = vpop.f32.mrf.mxu1 }
 0x255   : > { %v1871_v13 = vadd.f32 %v7821_v41, %v7811_v14 }
 0x256   : > { %v7813_v15 = vpop.f32.mrf.mxu1 }
 0x258   : > { %v7817_v47 = vpop.f32.mrf.mxu1 }
 0x259   : > { %v1884_v14 = vadd.f32 %v7833_v12, %v7817_v47 }
 0x25a   : > { %v7819_v35 = vpop.f32.mrf.mxu1 }
 0x25b   : > { %v1895_v12 = vadd.f32 %v7839_v27, %v7819_v35 }
 0x25c   : > { %v7823_v40 = vpop.f32.mrf.mxu1 }
 0x25d   : > { %v1887_v47 = vadd.f32 %v7845_v20, %v7823_v40 }
 0x25e   : > { %v7825_v26 = vpop.f32.mrf.mxu1 }
 0x260   : > { %v7829_v17 = vpop.f32.mrf.mxu1 }
 0x262   : > { %v7831_v30 = vpop.f32.mrf.mxu1 }
 0x264   : > { %v7835_v11 = vpop.f32.mrf.mxu1 }
 0x266   : > { %v7837_v37 = vpop.f32.mrf.mxu1 }
 0x268   : > { %v7841_v2 = vpop.f32.mrf.mxu1 }
 0x26a   : > { %v7843_v1 = vpop.f32.mrf.mxu1 }
 0x26c   : > { %v7847_v59 = vpop.f32.mrf.mxu1 }
 0x26e   : > { %v7849_v57 = vpop.f32.mrf.mxu1 }
 0x270   : > { %v7853_v42 = vpop.f32.mrf.mxu1 }
 0x272   : > { %v7855_v23 = vpop.f32.mrf.mxu1 }
 0x274   : > { %v7859_v51 = vpop.f32.mrf.mxu1 }
 0x276   : > { %v7861_v21 = vpop.f32.mrf.mxu1 }
 0x278   : > { %v7865_v61 = vpop.f32.mrf.mxu1 }
 0x27a   : > { %v7867_v45 = vpop.f32.mrf.mxu1 }
 0x27c   : > { %v7871_v48 = vpop.f32.mrf.mxu1 }
 0x27e   : > { %v7873_v18 = vpop.f32.mrf.mxu1 }
 0x280   : > { %v7877_v32 = vpop.f32.mrf.mxu1 }
 0x282   : > { %v7879_v28 = vpop.f32.mrf.mxu1 }
 0x284   : > { %v7883_v33 = vpop.f32.mrf.mxu1 }
 0x286   : > { %v6123_v5 = vpop.f32.mrf.mxu1 }
 0x287   : > { %v2205_v3 = vadd.f32 %v6123_v5, %v1860_v46 }
 0x288   : > { %v2076_v6 = vpop.f32.mrf.mxu1 }
 0x289   : > { %v7893_v56 = vadd.f32 %v7888_v7, %v2205_v3  ;;  %v2203_v55 = vadd.f32 %v2076_v6, %v1852_v9  ;;  %v1868_v6 = vadd.f32 %v1867_v34, %v1562_v24 }
 0x28a   : > { %v6124_v0 = vpop.f32.mrf.mxu1 }
 0x28b   : > { %v5535_v19 = vmul.f32 -1.442695, %v7893_v56  ;;  %v7899_v22 = vadd.f32 %v7888_v7, %v2203_v55  ;;  %v2206_v49 = vadd.f32 %v6124_v0, %v1863_v8  ;;  %v1879_v0 = vadd.f32 %v7815_v36, %v7809_v25 }
 0x28c   : > { %v2079_v54 = vpop.f32.mrf.mxu1  ;;  %v1892_v36 = vadd.f32 %v7827_v31, %v7813_v15 }
 0x28d   : > { %6495 = vpow2.f32 %v5535_v19  ;;  %v5533_v5 = vmul.f32 -1.442695, %v7899_v22  ;;  %v7903_v46 = vadd.f32 %v7888_v7, %v2206_v49  ;;  %v2204_v3 = vadd.f32 %v2079_v54, %v1855_v62 }
 0x28e   : > { %v6127_v10 = vpop.f32.mrf.mxu1 }
 0x28f   : > { %6497 = vpow2.f32 %v5533_v5  ;;  %v5536_v9 = vmul.f32 -1.442695, %v7903_v46  ;;  %v7909_v55 = vadd.f32 %v7888_v7, %v2204_v3  ;;  %v2209_v8 = vadd.f32 %v6127_v10, %v1876_v44 }
 0x290   : > { %v2092_v4 = vpop.f32.mrf.mxu1 }
 0x291   : > { %6499 = vpow2.f32 %v5536_v9  ;;  %v5534_v49 = vmul.f32 -1.442695, %v7909_v55  ;;  %v7915_v62 = vadd.f32 %v7888_v7, %v2209_v8  ;;  %v2207_v24 = vadd.f32 %v2092_v4, %v1868_v6  ;;  %v7933_v6 = vpop.f32.mrf.mxu0 }
 0x292   : > { %v6128_v29 = vpop.f32.mrf.mxu1 }
 0x293   : > { %6501 = vpow2.f32 %v5534_v49  ;;  %v5539_v34 = vmul.f32 -1.442695, %v7915_v62  ;;  %v7923_v19 = vadd.f32 %v7888_v7, %v2207_v24  ;;  %v2210_v25 = vadd.f32 %v6128_v29, %v1879_v0 }
 0x294   : > { %v2095_v44 = vpop.f32.mrf.mxu1 }
 0x295   : > { %6503 = vpow2.f32 %v5539_v34  ;;  %v5537_v54 = vmul.f32 -1.442695, %v7923_v19  ;;  %v7929_v5 = vadd.f32 %v7888_v7, %v2210_v25  ;;  %v2208_v41 = vadd.f32 %v2095_v44, %v1871_v13  ;;  %v7947_v13 = vpop.f32.mrf.mxu0 }
 0x296   : > { %v6131_v3 = vpop.f32.mrf.mxu1  ;;  %v1908_v44 = vadd.f32 %v7851_v58, %v7825_v26 }
 0x297   : > { %6505 = vpow2.f32 %v5537_v54  ;;  %v5540_v10 = vmul.f32 -1.442695, %v7929_v5  ;;  %v7937_v9 = vadd.f32 %v7888_v7, %v2208_v41  ;;  %v2213_v15 = vadd.f32 %v6131_v3, %v1892_v36 }
 0x298   : > { %v2108_v31 = vpop.f32.mrf.mxu1 }
 0x299   : > { %6507 = vpow2.f32 %v5540_v10  ;;  %v5538_v8 = vmul.f32 -1.442695, %v7937_v9  ;;  %v7941_v0 = vadd.f32 %v7888_v7, %v2213_v15  ;;  %v2211_v4 = vadd.f32 %v2108_v31, %v1884_v14  ;;  %v7959_v10 = vpop.f32.mrf.mxu0 }
 0x29a   : > { %v6496_v49 = vpop.eup %6495  ;;  %v6132_v24 = vpop.f32.mrf.mxu1 }
 0x29b   : > { %v2372_v29 = vadd.f32 1.0, %v6496_v49  ;;  %6509 = vpow2.f32 %v5538_v8  ;;  %v5543_v34 = vmul.f32 -1.442695, %v7941_v0  ;;  %v7951_v25 = vadd.f32 %v7888_v7, %v2211_v4 }
 0x29c   : > { %v6498_v36 = vpop.eup %6497  ;;  %v2214_v54 = vadd.f32 %v6132_v24, %v1895_v12  ;;  %v2111_v41 = vpop.f32.mrf.mxu1  ;;  %v1900_v8 = vadd.f32 %v7857_v52, %v7829_v17  ;;  %v1911_v4 = vadd.f32 %v7863_v38, %v7831_v30 }
 0x29d   : > { %6511 = vrcp.f32 %v2372_v29  ;;  %v2370_v27 = vadd.f32 1.0, %v6498_v36  ;;  %v5541_v40 = vmul.f32 -1.442695, %v7951_v25  ;;  %v2212_v20 = vadd.f32 %v2111_v41, %v1887_v47 }
 0x29e   : > { %v6500_v35 = vpop.eup %6499  ;;  %6513 = vpow2.f32 %v5543_v34  ;;  %v7957_v14 = vadd.f32 %v7888_v7, %v2214_v54  ;;  %v6135_v3 = vpop.f32.mrf.mxu1  ;;  %v1903_v36 = vadd.f32 %v7869_v43, %v7835_v11 }
 0x29f   : > { %6515 = vrcp.f32 %v2370_v27  ;;  %v2373_v15 = vadd.f32 1.0, %v6500_v35  ;;  %v7962_v31 = vadd.f32 %v7888_v7, %v2212_v20  ;;  %v2217_v58 = vadd.f32 %v6135_v3, %v1908_v44  ;;  %v1947_v44 = vpop.f32.mrf.mxu0 }
 0x2a0   : > { %v6502_v26 = vpop.eup %6501  ;;  %6517 = vpow2.f32 %v5541_v40  ;;  %v5544_v49 = vmul.f32 -1.442695, %v7957_v14  ;;  %v2124_v12 = vpop.f32.mrf.mxu1  ;;  %v1924_v27 = vadd.f32 %v7875_v53, %v7837_v37 }
 0x2a1   : > { %6519 = vrcp.f32 %v2373_v15  ;;  %v2371_v47 = vadd.f32 1.0, %v6502_v26  ;;  %v5542_v24 = vmul.f32 -1.442695, %v7962_v31  ;;  %v7971_v29 = vadd.f32 %v7888_v7, %v2217_v58  ;;  %v6100_v26 = vpop.f32.mrf.mxu0 }
 0x2a2   : > { %v6504_v34 = vpop.eup %6503  ;;  %6521 = vpow2.f32 %v5544_v49  ;;  %v2215_v52 = vadd.f32 %v2124_v12, %v1900_v8  ;;  %v6136_v17 = vpop.f32.mrf.mxu1  ;;  %v1916_v15 = vadd.f32 %v7881_v63, %v7841_v2  ;;  %v1927_v58 = vadd.f32 %v7890_v60, %v7843_v1 }
 0x2a3   : > { %6523 = vrcp.f32 %v2371_v47  ;;  %v2376_v38 = vadd.f32 1.0, %v6504_v34  ;;  %v5547_v30 = vmul.f32 -1.442695, %v7971_v29  ;;  %v2218_v54 = vadd.f32 %v6136_v17, %v1911_v4 }
 0x2a4   : > { %v6506_v41 = vpop.eup %6505  ;;  %6525 = vpow2.f32 %v5542_v24  ;;  %v7979_v40 = vadd.f32 %v7888_v7, %v2215_v52  ;;  %v2127_v20 = vpop.f32.mrf.mxu1  ;;  %v1919_v47 = vadd.f32 %v7895_v50, %v7847_v59  ;;  %v1940_v2 = vadd.f32 %v7905_v39, %v7849_v57 }
 0x2a5   : > { %6527 = vrcp.f32 %v2376_v38  ;;  %v2374_v43 = vadd.f32 1.0, %v6506_v41  ;;  %v7982_v11 = vadd.f32 %v7888_v7, %v2218_v54  ;;  %v2216_v35 = vadd.f32 %v2127_v20, %v1903_v36  ;;  %v1950_v38 = vpop.f32.mrf.mxu0 }
 0x2a6   : > { %v6508_v3 = vpop.eup %6507  ;;  %6529 = vpow2.f32 %v5547_v30  ;;  %v5545_v53 = vmul.f32 -1.442695, %v7979_v40  ;;  %v6139_v37 = vpop.f32.mrf.mxu1  ;;  %v1932_v52 = vadd.f32 %v7919_v16, %v7853_v42  ;;  %v1943_v17 = vadd.f32 %v7933_v6, %v7855_v23 }
 0x2a7   : > { %6531 = vrcp.f32 %v2374_v43  ;;  %v2377_v8 = vadd.f32 1.0, %v6508_v3  ;;  %v5548_v4 = vmul.f32 -1.442695, %v7982_v11  ;;  %v7991_v49 = vadd.f32 %v7888_v7, %v2216_v35 }
 0x2a8   : > { %v6510_v12 = vpop.eup %6509  ;;  %6533 = vpow2.f32 %v5545_v53  ;;  %v2221_v60 = vadd.f32 %v6139_v37, %v1924_v27  ;;  %v2140_v1 = vpop.f32.mrf.mxu1  ;;  %v1935_v39 = vadd.f32 %v7947_v13, %v7859_v51  ;;  %v8012_v42 = vadd.f32 %v7959_v10, %v7861_v21 }
 0x2a9   : > { %6535 = vrcp.f32 %v2377_v8  ;;  %v2375_v63 = vadd.f32 1.0, %v6510_v12  ;;  %v5546_v24 = vmul.f32 -1.442695, %v7991_v49  ;;  %v2219_v34 = vadd.f32 %v2140_v1, %v1916_v15  ;;  %v6103_v53 = vpop.f32.mrf.mxu0 }
 0x2aa   : > { %v6512_v36 = vpop.eup %6511  ;;  %6537 = vpow2.f32 %v5548_v4  ;;  %v8003_v59 = vadd.f32 %v7888_v7, %v2221_v60  ;;  %v6140_v57 = vpop.f32.mrf.mxu1  ;;  %v8016_v20 = vadd.f32 %v1947_v44, %v7865_v61  ;;  %v8023_v3 = vadd.f32 %v6100_v26, %v7867_v45 }
 0x2ab   : > { %v6514_v50 = vpop.eup %6513  ;;  %6539 = vrcp.f32 %v2375_v63  ;;  %v8008_v30 = vadd.f32 %v7888_v7, %v2219_v34  ;;  %v2222_v54 = vadd.f32 %v6140_v57, %v1927_v58  ;;  %v2468_v21 = vmul.f32 %v6512_v36, %v7893_v56 }
 0x2ac   : > { %v6516_v41 = vpop.eup %6515  ;;  %v2380_v23 = vadd.f32 1.0, %v6514_v50  ;;  %6541 = vpow2.f32 %v5546_v24  ;;  %v5551_v16 = vmul.f32 -1.442695, %v8003_v59  ;;  %v2143_v6 = vpop.f32.mrf.mxu1  ;;  %v8038_v57 = vadd.f32 %v1950_v38, %v7871_v48 }
 0x2ad   : > { %v6518_v27 = vpop.eup %6517  ;;  %v5549_v51 = vmul.f32 -1.442695, %v8008_v30  ;;  %v8020_v13 = vadd.f32 %v7888_v7, %v2222_v54  ;;  %v2220_v43 = vadd.f32 %v2143_v6, %v1919_v47  ;;  %v2466_v4 = vmul.f32 %v6516_v41, %v7899_v22 }
 0x2ae   : > { %v6520_v35 = vpop.eup %6519  ;;  %6543 = vrcp.f32 %v2380_v23  ;;  %v2378_v10 = vadd.f32 1.0, %v6518_v27  ;;  %v6143_v15 = vpop.f32.mrf.mxu1 }
 0x2af   : > { %v6522_v58 = vpop.eup %6521  ;;  %v2469_v61 = vmul.f32 %v6520_v35, %v7903_v46  ;;  %6545 = vpow2.f32 %v5551_v16  ;;  %v5552_v44 = vmul.f32 -1.442695, %v8020_v13  ;;  %v8029_v37 = vadd.f32 %v7888_v7, %v2220_v43 }
 0x2b0   : > { %v6524_v8 = vpop.eup %6523  ;;  %6547 = vrcp.f32 %v2378_v10  ;;  %v2381_v45 = vadd.f32 1.0, %v6522_v58  ;;  %v2225_v26 = vadd.f32 %v6143_v15, %v1940_v2  ;;  %v2156_v56 = vpop.f32.mrf.mxu1 }
 0x2b1   : > { %v6526_v12 = vpop.eup %6525  ;;  %v2499_v47 = vpack.c.bf16 %v2469_v61, %v2468_v21  ;;  %v2467_v60 = vmul.f32 %v6524_v8, %v7909_v55  ;;  %6549 = vpow2.f32 %v5549_v51  ;;  %v5550_v46 = vmul.f32 -1.442695, %v8029_v37  ;;  %v1963_v2 = vpop.f32.mrf.mxu0 }
 0x2b2   : > { %v6528_v1 = vpop.eup %6527  ;;  %6551 = vrcp.f32 %v2381_v45  ;;  %v2379_v63 = vadd.f32 1.0, %v6526_v12  ;;  %v8035_v24 = vadd.f32 %v7888_v7, %v2225_v26  ;;  %v2223_v34 = vadd.f32 %v2156_v56, %v1932_v52  ;;  %v6144_v36 = vpop.f32.mrf.mxu1 }
 0x2b3   : > { %v6530_v22 = vpop.eup %6529  ;;  %6553 = vpow2.f32 %v5552_v44  ;;  %v2226_v50 = vadd.f32 %v6144_v36, %v1943_v17  ;;  %v2498_v54 = vpack.c.bf16 %v2467_v60, %v2466_v4  ;;  %v8045_v52 = vadd.f32 %v6103_v53, %v7873_v18  ;;  %v6104_v15 = vpop.f32.mrf.mxu0 }
 0x2b4   : > { %v6532_v55 = vpop.eup %6531  ;;  %6555 = vrcp.f32 %v2379_v63  ;;  %v2384_v41 = vadd.f32 1.0, %v6530_v22  ;;  %v5555_v23 = vmul.f32 -1.442695, %v8035_v24  ;;  %v8042_v16 = vadd.f32 %v7888_v7, %v2223_v34  ;;  %v2159_v6 = vpop.f32.mrf.mxu1 }
 0x2b5   : > { %v6534_v27 = vpop.eup %6533  ;;  %6557 = vpow2.f32 %v5550_v46  ;;  %v8048_v48 = vadd.f32 %v7888_v7, %v2226_v50  ;;  %v2224_v38 = vadd.f32 %v2159_v6, %v1935_v39  ;;  %6169 = vmatprep.mubr.bf16.mxu0 %v2498_v54  ;;  %v2472_v51 = vmul.f32 %v6528_v1, %v7915_v62  ;;  %v1966_v46 = vpop.f32.mrf.mxu0 }
 0x2b6   : > { %v6536_v17 = vpop.eup %6535  ;;  %6559 = vrcp.f32 %v2384_v41  ;;  %v2382_v43 = vadd.f32 1.0, %v6534_v27  ;;  %v5553_v35 = vmul.f32 -1.442695, %v8042_v16  ;;  %v6147_v21 = vpop.f32.mrf.mxu1  ;;  %6170 = vmatmul.mubr.bf16.vlgmr.msra.gmra.mxu0 %v2499_v47  ;;  %v2470_v61 = vmul.f32 %v6532_v55, %v7923_v19 }
 0x2b7   : > { %v6538_v10 = vpop.eup %6537  ;;  %v2473_v18 = vmul.f32 %v6536_v17, %v7929_v5  ;;  %6561 = vpow2.f32 %v5555_v23  ;;  %v5556_v58 = vmul.f32 -1.442695, %v8048_v48  ;;  %v8055_v53 = vadd.f32 %v7888_v7, %v2224_v38 }
 0x2b8   : > { %v6540_v39 = vpop.eup %6539  ;;  %6563 = vrcp.f32 %v2382_v43  ;;  %v2385_v62 = vadd.f32 1.0, %v6538_v10  ;;  %v2229_v44 = vadd.f32 %v6147_v21, %v8012_v42  ;;  %v2172_v8 = vpop.f32.mrf.mxu1  ;;  %v1964_v34 = vadd.f32 %v1963_v2, %v7877_v32 }
 0x2b9   : > { %v6542_v4 = vpop.eup %6541  ;;  %v2471_v45 = vmul.f32 %v6540_v39, %v7937_v9  ;;  %6565 = vpow2.f32 %v5553_v35  ;;  %v5554_v5 = vmul.f32 -1.442695, %v8055_v53  ;;  %v2227_v26 = vadd.f32 %v2172_v8, %v8016_v20 }
 0x2ba   : > { %6567 = vrcp.f32 %v2385_v62  ;;  %v2383_v56 = vadd.f32 1.0, %v6542_v4  ;;  %v8063_v12 = vadd.f32 %v7888_v7, %v2229_v44  ;;  %v6148_v47 = vpop.f32.mrf.mxu1  ;;  %v2501_v19 = vpack.c.bf16 %v2473_v18, %v2472_v51 }
 0x2bb   : > { %v6544_v60 = vpop.eup %6543  ;;  %6569 = vpow2.f32 %v5556_v58  ;;  %v8066_v42 = vadd.f32 %v7888_v7, %v2227_v26  ;;  %v2230_v9 = vadd.f32 %v6148_v47, %v8023_v3  ;;  %v2500_v1 = vpack.c.bf16 %v2471_v45, %v2470_v61 }
 0x2bc   : > { %v6546_v63 = vpop.eup %6545  ;;  %v1975_v20 = vadd.f32 %v6104_v15, %v7879_v28  ;;  %6571 = vrcp.f32 %v2383_v56  ;;  %v5559_v36 = vmul.f32 -1.442695, %v8063_v12  ;;  %v2175_v22 = vpop.f32.mrf.mxu1  ;;  %v1967_v23 = vadd.f32 %v1966_v46, %v7883_v33 }
 0x2bd   : > { %v6548_v50 = vpop.eup %6547  ;;  %v2388_v54 = vadd.f32 1.0, %v6546_v63  ;;  %6573 = vpow2.f32 %v5554_v5  ;;  %v5557_v55 = vmul.f32 -1.442695, %v8066_v42  ;;  %v8074_v41 = vadd.f32 %v7888_v7, %v2230_v9  ;;  %6173 = vmatprep.mubr.bf16.mxu0 %v2500_v1 }
 0x2be   : > { %v6550_v3 = vpop.eup %6549  ;;  %v2476_v32 = vmul.f32 %v6544_v60, %v7941_v0  ;;  %6575 = vpow2.f32 %v5559_v36  ;;  %v2228_v28 = vadd.f32 %v2175_v22, %v8038_v57  ;;  %v6151_v2 = vpop.f32.mrf.mxu1  ;;  %6174 = vmatmul.mubr.bf16.gmra.mxu0 %v2501_v19  ;;  %v2474_v43 = vmul.f32 %v6548_v50, %v7951_v25 }
 0x2bf   : > { %v6552_v6 = vpop.eup %6551  ;;  %6577 = vrcp.f32 %v2388_v54  ;;  %v2386_v27 = vadd.f32 1.0, %v6550_v3  ;;  %v5560_v38 = vmul.f32 -1.442695, %v8074_v41  ;;  %v2233_v17 = vadd.f32 %v6151_v2, %v8045_v52 }
 0x2c0   : > { %v6554_v51 = vpop.eup %6553  ;;  %v2477_v35 = vmul.f32 %v6552_v6, %v7957_v14  ;;  %6579 = vpow2.f32 %v5557_v55  ;;  %v8084_v33 = vadd.f32 %v7888_v7, %v2228_v28  ;;  %v2188_v0 = vpop.f32.mrf.mxu1 }
 0x2c1   : > { %v6556_v57 = vpop.eup %6555  ;;  %6581 = vrcp.f32 %v2386_v27  ;;  %v2389_v21 = vadd.f32 1.0, %v6554_v51  ;;  %v8087_v10 = vadd.f32 %v7888_v7, %v2233_v17  ;;  %v2231_v15 = vadd.f32 %v2188_v0, %v1964_v34 }
 0x2c2   : > { %v6558_v18 = vpop.eup %6557  ;;  %v2475_v52 = vmul.f32 %v6556_v57, %v7962_v31  ;;  %6583 = vpow2.f32 %v5560_v38  ;;  %v5558_v25 = vmul.f32 -1.442695, %v8084_v33  ;;  %v6152_v58 = vpop.f32.mrf.mxu1  ;;  %v2503_v14 = vpack.c.bf16 %v2477_v35, %v2476_v32 }
 0x2c3   : > { %v6560_v39 = vpop.eup %6559  ;;  %6585 = vrcp.f32 %v2389_v21  ;;  %v2387_v61 = vadd.f32 1.0, %v6558_v18  ;;  %v5563_v62 = vmul.f32 -1.442695, %v8087_v10  ;;  %v8093_v44 = vadd.f32 %v7888_v7, %v2231_v15 }
 0x2c4   : > { %v6562_v8 = vpop.eup %6561  ;;  %6587 = vpow2.f32 %v5558_v25  ;;  %v2234_v4 = vadd.f32 %v6152_v58, %v1975_v20  ;;  %v2191_v45 = vpop.f32.mrf.mxu1  ;;  %v2502_v5 = vpack.c.bf16 %v2475_v52, %v2474_v43  ;;  %v2480_v34 = vmul.f32 %v6560_v39, %v7971_v29 }
 0x2c5   : > { %v6564_v26 = vpop.eup %6563  ;;  %6589 = vrcp.f32 %v2387_v61  ;;  %v2392_v31 = vadd.f32 1.0, %v6562_v8  ;;  %v5561_v56 = vmul.f32 -1.442695, %v8093_v44  ;;  %v2232_v47 = vadd.f32 %v2191_v45, %v1967_v23 }
 0x2c6   : > { %v6566_v19 = vpop.eup %6565  ;;  %6591 = vpow2.f32 %v5563_v62  ;;  %v8097_v60 = vadd.f32 %v7888_v7, %v2234_v4  ;;  %6177 = vmatprep.mubr.bf16.mxu0 %v2502_v5  ;;  %v2478_v3 = vmul.f32 %v6564_v26, %v7979_v40 }
 0x2c7   : > { %v6568_v46 = vpop.eup %6567  ;;  %6593 = vrcp.f32 %v2392_v31  ;;  %v2390_v9 = vadd.f32 1.0, %v6566_v19  ;;  %v8100_v1 = vadd.f32 %v7888_v7, %v2232_v47  ;;  %6178 = vmatmul.mubr.bf16.gmra.mxu0 %v2503_v14 }
 0x2c8   : > { %v6570_v63 = vpop.eup %6569  ;;  %v2481_v20 = vmul.f32 %v6568_v46, %v7982_v11  ;;  %6595 = vpow2.f32 %v5561_v56  ;;  %v5564_v36 = vmul.f32 -1.442695, %v8097_v60 }
 0x2c9   : > { %v6572_v22 = vpop.eup %6571  ;;  %6597 = vrcp.f32 %v2390_v9  ;;  %v2393_v50 = vadd.f32 1.0, %v6570_v63  ;;  %v5562_v54 = vmul.f32 -1.442695, %v8100_v1 }
 0x2ca   : > { %v6574_v55 = vpop.eup %6573  ;;  %v2479_v7 = vmul.f32 %v6572_v22, %v7991_v49  ;;  %6599 = vpow2.f32 %v5564_v36  ;;  %v2505_v23 = vpack.c.bf16 %v2481_v20, %v2480_v34 }
 0x2cb   : > { %v6576_v32 = vpop.eup %6575  ;;  %6601 = vrcp.f32 %v2393_v50  ;;  %v2391_v29 = vadd.f32 1.0, %v6574_v55 }
 0x2cc   : > { %v6578_v28 = vpop.eup %6577  ;;  %v2396_v11 = vadd.f32 1.0, %v6576_v32  ;;  %6603 = vpow2.f32 %v5562_v54  ;;  %v2504_v2 = vpack.c.bf16 %v2479_v7, %v2478_v3  ;;  %v6493_v32 = vld [vmem:[%s9573_s10 + $0x8] sm:$0xff]  }
 0x2cd   : > { %v6580_v6 = vpop.eup %6579  ;;  %6605 = vrcp.f32 %v2391_v29  ;;  %v2484_v43 = vmul.f32 %v6578_v28, %v8003_v59  ;;  %v6494_v29 = vld [vmem:[%s9573_s10] sm:$0xff]  }
 0x2ce   : > { %v6582_v27 = vpop.eup %6581  ;;  %v2394_v38 = vadd.f32 1.0, %v6580_v6  ;;  %6181 = vmatprep.mubr.bf16.mxu0 %v2504_v2  ;;  %6607 = vrcp.f32 %v2396_v11  ;;  %v8151_v28 = vld [vmem:[%s9572_s9] ss:$0 sm:$0xff] }
 0x2cf   : > { %v6584_v17 = vpop.eup %6583  ;;  %6182 = vmatmul.mubr.bf16.gmra.mxu0 %v2505_v23  ;;  %v2482_v15 = vmul.f32 %v6582_v27, %v8008_v30  ;;  %v6492_v23 = vld [vmem:[%s9573_s10 + $0x10] sm:$0xff]  }
 0x2d0   : > { %v6586_v51 = vpop.eup %6585  ;;  %v2397_v40 = vadd.f32 1.0, %v6584_v17  ;;  %6609 = vrcp.f32 %v2394_v38 }
 0x2d1   : > { %v6588_v49 = vpop.eup %6587  ;;  %v2485_v35 = vmul.f32 %v6586_v51, %v8020_v13 }
 0x2d2   : > { %v6590_v0 = vpop.eup %6589  ;;  %6611 = vrcp.f32 %v2397_v40  ;;  %v2395_v57 = vadd.f32 1.0, %v6588_v49 }
 0x2d3   : > { %v6592_v21 = vpop.eup %6591  ;;  %v2483_v18 = vmul.f32 %v6590_v0, %v8029_v37  ;;  %v2507_v52 = vpack.c.bf16 %v2485_v35, %v2484_v43 }
 0x2d4   : > { %v6594_v25 = vpop.eup %6593  ;;  %6613 = vrcp.f32 %v2395_v57  ;;  %v2400_v58 = vadd.f32 1.0, %v6592_v21 }
 0x2d5   : > { %v6596_v14 = vpop.eup %6595  ;;  %v2506_v39 = vpack.c.bf16 %v2483_v18, %v2482_v15  ;;  %v2488_v45 = vmul.f32 %v6594_v25, %v8035_v24 }
 0x2d6   : > { %v6598_v61 = vpop.eup %6597  ;;  %v2398_v62 = vadd.f32 1.0, %v6596_v14  ;;  %6615 = vrcp.f32 %v2400_v58 }
 0x2d7   : > { %v6600_v59 = vpop.eup %6599  ;;  %6185 = vmatprep.mubr.bf16.mxu0 %v2506_v39  ;;  %v2486_v26 = vmul.f32 %v6598_v61, %v8042_v16 }
 0x2d8   : > { %v6602_v13 = vpop.eup %6601  ;;  %v2401_v8 = vadd.f32 1.0, %v6600_v59  ;;  %6186 = vmatmul.mubr.bf16.gmra.mxu0 %v2507_v52  ;;  %6617 = vrcp.f32 %v2398_v62 }
 0x2d9   : > { %v6604_v4 = vpop.eup %6603  ;;  %v2489_v30 = vmul.f32 %v6602_v13, %v8048_v48 }
 0x2da   : > { %v6606_v37 = vpop.eup %6605  ;;  %6619 = vrcp.f32 %v2401_v8  ;;  %v2399_v5 = vadd.f32 1.0, %v6604_v4 }
 0x2db   : > { %v2487_v31 = vmul.f32 %v6606_v37, %v8055_v53  ;;  %v2509_v56 = vpack.c.bf16 %v2489_v30, %v2488_v45  ;;  %v6608_v47 = vpop.eup %6607 }
 0x2dc   : > { %6621 = vrcp.f32 %v2399_v5  ;;  %v2492_v63 = vmul.f32 %v6608_v47, %v8063_v12 }
 0x2dd   : > { %v2508_v19 = vpack.c.bf16 %v2487_v31, %v2486_v26  ;;  %v6610_v46 = vpop.eup %6609 }
 0x2de   : > { %v2490_v34 = vmul.f32 %v6610_v46, %v8066_v42 }
 0x2df   : > { %v6612_v9 = vpop.eup %6611  ;;  %6189 = vmatprep.mubr.bf16.mxu0 %v2508_v19 }
 0x2e0   : > { %v2493_v24 = vmul.f32 %v6612_v9, %v8074_v41  ;;  %6190 = vmatmul.mubr.bf16.gmra.mxu0 %v2509_v56 }
 0x2e1   : > { %v6614_v48 = vpop.eup %6613 }
 0x2e2   : > { %v2491_v20 = vmul.f32 %v6614_v48, %v8084_v33  ;;  %v2511_v16 = vpack.c.bf16 %v2493_v24, %v2492_v63  ;;  %v6487_v33 = vld [vmem:[%s9573_s10 + $0x38] sm:$0xff]  }
 0x2e3   : > { %v6616_v53 = vpop.eup %6615  ;;  %6201 = vmatprep.subr.bf16.mxu1 %v6487_v33 }
 0x2e4   : > { %v2510_v36 = vpack.c.bf16 %v2491_v20, %v2490_v34  ;;  %v2496_v54 = vmul.f32 %v6616_v53, %v8087_v10  ;;  %6202 = vmatpush3.bf16.msra.mxu1 %v6487_v33  ;;  %v6488_v10 = vld [vmem:[%s9573_s10 + $0x30] sm:$0xff]  }
 0x2e5   : > { %v6618_v22 = vpop.eup %6617  ;;  %6203 = vmatprep.subr.bf16.mxu1 %v6488_v10 }
 0x2e6   : > { %6193 = vmatprep.mubr.bf16.mxu0 %v2510_v36  ;;  %v2494_v41 = vmul.f32 %v6618_v22, %v8093_v44  ;;  %v6489_v44 = vld [vmem:[%s9573_s10 + $0x28] sm:$0xff]  }
 0x2e7   : > { %v6620_v50 = vpop.eup %6619 }
 0x2e8   : > { %v2497_v55 = vmul.f32 %v6620_v50, %v8097_v60  ;;  %6194 = vmatmul.mubr.bf16.gmra.mxu0 %v2511_v16  ;;  %6204 = vmatpush3.bf16.msra.mxu1 %v6488_v10  ;;  %v6490_v60 = vld [vmem:[%s9573_s10 + $0x20] sm:$0xff]  }
 0x2e9   : > { %v6622_v12 = vpop.eup %6621  ;;  %6205 = vmatprep.subr.bf16.mxu1 %v6489_v44 }
 0x2ea   : > { %v2495_v3 = vmul.f32 %v6622_v12, %v8100_v1  ;;  %v2513_v7 = vpack.c.bf16 %v2497_v55, %v2496_v54  ;;  %v6491_v1 = vld [vmem:[%s9573_s10 + $0x18] sm:$0xff]  }
 0x2ec   : > { %v2512_v42 = vpack.c.bf16 %v2495_v3, %v2494_v41  ;;  %6206 = vmatpush3.bf16.msra.mxu1 %v6489_v44 }
 0x2ed   : > { %6207 = vmatprep.subr.bf16.mxu1 %v6490_v60 }
 0x2ee   : > { %6197 = vmatprep.mubr.bf16.mxu0 %v2512_v42 }
 0x2f0   : > { %6198 = vmatmul.mubr.bf16.gmra.mxu0 %v2513_v7  ;;  %6208 = vmatpush3.bf16.msra.mxu1 %v6490_v60 }
 0x2f1   : > { %6209 = vmatprep.subr.bf16.mxu1 %v6491_v1 }
 0x2f4   : > { %6210 = vmatpush3.bf16.msra.mxu1 %v6491_v1 }
 0x2f5   : > { %6211 = vmatprep.subr.bf16.mxu1 %v6492_v23 }
 0x2f8   : > { %6212 = vmatpush3.bf16.msra.mxu1 %v6492_v23 }
 0x2f9   : > { %6213 = vmatprep.subr.bf16.mxu1 %v6493_v32 }
 0x2fc   : > { %6214 = vmatpush3.bf16.msra.mxu1 %v6493_v32 }
 0x2fd   : > { %6215 = vmatprep.subr.bf16.mxu1 %v6494_v29 }
 0x300   : > { %6216 = vmatpush3.bf16.msra.mxu1 %v6494_v29 }
 0x376   : > { %v6171_v11 = vpop.f32.mrf.mxu0 }
 0x377   : > { %v8154_v2 = vadd.f32 %v6171_v11, %v8151_v28 }
 0x378   : > { %v2619_v6 = vpop.f32.mrf.mxu0 }
 0x379   : > { %v5576_v27 = vmul.f32 -1.442695, %v8154_v2  ;;  %v8158_v38 = vadd.f32 %v8151_v28, %v2619_v6 }
 0x37a   : > { %v6172_v17 = vpop.f32.mrf.mxu0 }
 0x37b   : > { %6623 = vpow2.f32 %v5576_v27  ;;  %v5574_v51 = vmul.f32 -1.442695, %v8158_v38  ;;  %v8162_v40 = vadd.f32 %v6172_v17, %v8151_v28 }
 0x37c   : > { %v2622_v49 = vpop.f32.mrf.mxu0 }
 0x37d   : > { %6625 = vpow2.f32 %v5574_v51  ;;  %v5577_v43 = vmul.f32 -1.442695, %v8162_v40  ;;  %v8166_v35 = vadd.f32 %v8151_v28, %v2622_v49 }
 0x37e   : > { %v6175_v0 = vpop.f32.mrf.mxu0 }
 0x37f   : > { %6627 = vpow2.f32 %v5577_v43  ;;  %v5575_v57 = vmul.f32 -1.442695, %v8166_v35  ;;  %v8170_v21 = vadd.f32 %v6175_v0, %v8151_v28 }
 0x380   : > { %v2635_v15 = vpop.f32.mrf.mxu0 }
 0x381   : > { %6629 = vpow2.f32 %v5575_v57  ;;  %v5580_v18 = vmul.f32 -1.442695, %v8170_v21  ;;  %v8174_v52 = vadd.f32 %v8151_v28, %v2635_v15 }
 0x382   : > { %v6176_v25 = vpop.f32.mrf.mxu0 }
 0x383   : > { %6631 = vpow2.f32 %v5580_v18  ;;  %v5578_v58 = vmul.f32 -1.442695, %v8174_v52  ;;  %v8178_v14 = vadd.f32 %v6176_v25, %v8151_v28 }
 0x384   : > { %v2638_v39 = vpop.f32.mrf.mxu0 }
 0x385   : > { %6633 = vpow2.f32 %v5578_v58  ;;  %v5581_v61 = vmul.f32 -1.442695, %v8178_v14  ;;  %v8182_v62 = vadd.f32 %v8151_v28, %v2638_v39 }
 0x387   : > { %6635 = vpow2.f32 %v5581_v61  ;;  %v5579_v59 = vmul.f32 -1.442695, %v8182_v62  ;;  %v6179_v13 = vpop.f32.mrf.mxu0 }
 0x388   : > { %v6624_v8 = vpop.eup %6623  ;;  %v8186_v4 = vadd.f32 %v6179_v13, %v8151_v28 }
 0x389   : > { %v2844_v45 = vadd.f32 1.0, %v6624_v8  ;;  %6637 = vpow2.f32 %v5579_v59  ;;  %v2651_v30 = vpop.f32.mrf.mxu0 }
 0x38a   : > { %v6626_v37 = vpop.eup %6625  ;;  %v5584_v5 = vmul.f32 -1.442695, %v8186_v4  ;;  %v8190_v26 = vadd.f32 %v8151_v28, %v2651_v30 }
 0x38b   : > { %6639 = vrcp.f32 %v2844_v45  ;;  %v2842_v31 = vadd.f32 1.0, %v6626_v37  ;;  %v6180_v56 = vpop.f32.mrf.mxu0 }
 0x38c   : > { %v6628_v47 = vpop.eup %6627  ;;  %6641 = vpow2.f32 %v5584_v5  ;;  %v5582_v19 = vmul.f32 -1.442695, %v8190_v26  ;;  %v8194_v46 = vadd.f32 %v6180_v56, %v8151_v28 }
 0x38d   : > { %6643 = vrcp.f32 %v2842_v31  ;;  %v2845_v9 = vadd.f32 1.0, %v6628_v47  ;;  %v2654_v63 = vpop.f32.mrf.mxu0 }
 0x38e   : > { %v6630_v24 = vpop.eup %6629  ;;  %6645 = vpow2.f32 %v5582_v19  ;;  %v5585_v48 = vmul.f32 -1.442695, %v8194_v46  ;;  %v8198_v34 = vadd.f32 %v8151_v28, %v2654_v63 }
 0x38f   : > { %6647 = vrcp.f32 %v2845_v9  ;;  %v2843_v20 = vadd.f32 1.0, %v6630_v24  ;;  %v6183_v16 = vpop.f32.mrf.mxu0 }
 0x390   : > { %v6632_v36 = vpop.eup %6631  ;;  %6649 = vpow2.f32 %v5585_v48  ;;  %v5583_v53 = vmul.f32 -1.442695, %v8198_v34  ;;  %v8202_v22 = vadd.f32 %v6183_v16, %v8151_v28 }
 0x391   : > { %6651 = vrcp.f32 %v2843_v20  ;;  %v2848_v50 = vadd.f32 1.0, %v6632_v36  ;;  %v2667_v54 = vpop.f32.mrf.mxu0 }
 0x392   : > { %v6634_v55 = vpop.eup %6633  ;;  %6653 = vpow2.f32 %v5583_v53  ;;  %v5588_v12 = vmul.f32 -1.442695, %v8202_v22  ;;  %v8206_v41 = vadd.f32 %v8151_v28, %v2667_v54 }
 0x393   : > { %6655 = vrcp.f32 %v2848_v50  ;;  %v2846_v3 = vadd.f32 1.0, %v6634_v55  ;;  %v6184_v7 = vpop.f32.mrf.mxu0 }
 0x394   : > { %v6636_v42 = vpop.eup %6635  ;;  %6657 = vpow2.f32 %v5588_v12  ;;  %v5586_v33 = vmul.f32 -1.442695, %v8206_v41  ;;  %v8210_v10 = vadd.f32 %v6184_v7, %v8151_v28 }
 0x395   : > { %6659 = vrcp.f32 %v2846_v3  ;;  %v2849_v44 = vadd.f32 1.0, %v6636_v42  ;;  %v2670_v60 = vpop.f32.mrf.mxu0 }
 0x396   : > { %v6638_v1 = vpop.eup %6637  ;;  %6661 = vpow2.f32 %v5586_v33  ;;  %v5589_v23 = vmul.f32 -1.442695, %v8210_v10  ;;  %v8214_v32 = vadd.f32 %v8151_v28, %v2670_v60 }
 0x397   : > { %6663 = vrcp.f32 %v2849_v44  ;;  %v2847_v29 = vadd.f32 1.0, %v6638_v1 }
 0x398   : > { %v6640_v11 = vpop.eup %6639  ;;  %6665 = vpow2.f32 %v5589_v23  ;;  %v5587_v6 = vmul.f32 -1.442695, %v8214_v32  ;;  %v6187_v27 = vpop.f32.mrf.mxu0 }
 0x399   : > { %v6642_v17 = vpop.eup %6641  ;;  %6667 = vrcp.f32 %v2847_v29  ;;  %v8218_v51 = vadd.f32 %v6187_v27, %v8151_v28  ;;  %v2940_v9 = vmul.f32 %v6640_v11, %v8154_v2 }
 0x39a   : > { %v6644_v49 = vpop.eup %6643  ;;  %v2852_v43 = vadd.f32 1.0, %v6642_v17  ;;  %6669 = vpow2.f32 %v5587_v6  ;;  %v2683_v0 = vpop.f32.mrf.mxu0 }
 0x39b   : > { %v6646_v57 = vpop.eup %6645  ;;  %v5592_v15 = vmul.f32 -1.442695, %v8218_v51  ;;  %v8222_v18 = vadd.f32 %v8151_v28, %v2683_v0  ;;  %v2938_v31 = vmul.f32 %v6644_v49, %v8158_v38 }
 0x39c   : > { %v6648_v25 = vpop.eup %6647  ;;  %6671 = vrcp.f32 %v2852_v43  ;;  %v2850_v58 = vadd.f32 1.0, %v6646_v57  ;;  %v6188_v39 = vpop.f32.mrf.mxu0 }
 0x39d   : > { %v6650_v61 = vpop.eup %6649  ;;  %6673 = vpow2.f32 %v5592_v15  ;;  %v5590_v59 = vmul.f32 -1.442695, %v8222_v18  ;;  %v8226_v13 = vadd.f32 %v6188_v39, %v8151_v28  ;;  %v2941_v45 = vmul.f32 %v6648_v25, %v8162_v40 }
 0x39e   : > { %v6652_v8 = vpop.eup %6651  ;;  %6675 = vrcp.f32 %v2850_v58  ;;  %v2853_v30 = vadd.f32 1.0, %v6650_v61  ;;  %v2686_v37 = vpop.f32.mrf.mxu0 }
 0x39f   : > { %v6654_v5 = vpop.eup %6653  ;;  %v2939_v56 = vmul.f32 %v6652_v8, %v8166_v35  ;;  %6677 = vpow2.f32 %v5590_v59  ;;  %v5593_v47 = vmul.f32 -1.442695, %v8226_v13  ;;  %v8234_v24 = vadd.f32 %v8151_v28, %v2686_v37 }
 0x3a0   : > { %v6656_v19 = vpop.eup %6655  ;;  %6679 = vrcp.f32 %v2853_v30  ;;  %v2851_v63 = vadd.f32 1.0, %v6654_v5  ;;  %v6191_v40 = vpop.f32.mrf.mxu0  ;;  %v2971_v35 = vpack.c.bf16 %v2941_v45, %v2940_v9 }
 0x3a1   : > { %v6658_v48 = vpop.eup %6657  ;;  %6681 = vpow2.f32 %v5593_v47  ;;  %v8237_v20 = vadd.f32 %v6191_v40, %v8151_v28  ;;  %v2970_v38 = vpack.c.bf16 %v2939_v56, %v2938_v31  ;;  %v5591_v53 = vmul.f32 -1.442695, %v8234_v24 }
 0x3a2   : > { %v6660_v16 = vpop.eup %6659  ;;  %6683 = vrcp.f32 %v2851_v63  ;;  %v2856_v36 = vadd.f32 1.0, %v6658_v48  ;;  %v2699_v50 = vpop.f32.mrf.mxu0  ;;  %v2944_v43 = vmul.f32 %v6656_v19, %v8170_v21 }
 0x3a3   : > { %v6662_v2 = vpop.eup %6661  ;;  %v5596_v54 = vmul.f32 -1.442695, %v8237_v20  ;;  %v8242_v55 = vadd.f32 %v8151_v28, %v2699_v50  ;;  %6217 = vmatprep.mubr.bf16.mxu1 %v2970_v38  ;;  %v2942_v1 = vmul.f32 %v6660_v16, %v8174_v52 }
 0x3a4   : > { %v6664_v12 = vpop.eup %6663  ;;  %6685 = vrcp.f32 %v2856_v36  ;;  %v2854_v3 = vadd.f32 1.0, %v6662_v2  ;;  %v6192_v7 = vpop.f32.mrf.mxu0  ;;  %6218 = vmatmul.mubr.bf16.vlgmr.msra.gmra.mxu1 %v2971_v35 }
 0x3a5   : > { %v6666_v42 = vpop.eup %6665  ;;  %6687 = vpow2.f32 %v5591_v53  ;;  %v5594_v33 = vmul.f32 -1.442695, %v8242_v55  ;;  %v8246_v44 = vadd.f32 %v6192_v7, %v8151_v28  ;;  %v2945_v23 = vmul.f32 %v6664_v12, %v8178_v14 }
 0x3a6   : > { %v6668_v60 = vpop.eup %6667  ;;  %6689 = vrcp.f32 %v2854_v3  ;;  %v2857_v29 = vadd.f32 1.0, %v6666_v42  ;;  %v2702_v11 = vpop.f32.mrf.mxu0 }
 0x3a7   : > { %v6670_v6 = vpop.eup %6669  ;;  %v2943_v27 = vmul.f32 %v6668_v60, %v8182_v62  ;;  %6691 = vpow2.f32 %v5596_v54  ;;  %v5597_v17 = vmul.f32 -1.442695, %v8246_v44  ;;  %v8253_v49 = vadd.f32 %v8151_v28, %v2702_v11 }
 0x3a8   : > { %6693 = vrcp.f32 %v2857_v29  ;;  %v2855_v0 = vadd.f32 1.0, %v6670_v6  ;;  %v6195_v57 = vpop.f32.mrf.mxu0  ;;  %v2973_v39 = vpack.c.bf16 %v2945_v23, %v2944_v43 }
 0x3a9   : > { %v6672_v52 = vpop.eup %6671  ;;  %6695 = vpow2.f32 %v5594_v33  ;;  %v5595_v14 = vmul.f32 -1.442695, %v8253_v49  ;;  %v8258_v15 = vadd.f32 %v6195_v57, %v8151_v28  ;;  %v2972_v25 = vpack.c.bf16 %v2943_v27, %v2942_v1 }
 0x3aa   : > { %v6674_v62 = vpop.eup %6673  ;;  %6697 = vrcp.f32 %v2855_v0  ;;  %v2715_v58 = vpop.f32.mrf.mxu0  ;;  %v2948_v47 = vmul.f32 %v6672_v52, %v8186_v4 }
 0x3ab   : > { %v6676_v61 = vpop.eup %6675  ;;  %6699 = vpow2.f32 %v5597_v17  ;;  %v5600_v59 = vmul.f32 -1.442695, %v8258_v15  ;;  %v8262_v21 = vadd.f32 %v8151_v28, %v2715_v58  ;;  %6221 = vmatprep.mubr.bf16.mxu1 %v2972_v25  ;;  %v2860_v36 = vadd.f32 1.0, %v6674_v62 }
 0x3ac   : > { %v6678_v8 = vpop.eup %6677  ;;  %6701 = vpow2.f32 %v5595_v14  ;;  %v6196_v45 = vpop.f32.mrf.mxu0  ;;  %6222 = vmatmul.mubr.bf16.gmra.mxu1 %v2973_v39  ;;  %v2946_v16 = vmul.f32 %v6676_v61, %v8190_v26 }
 0x3ad   : > { %v6680_v30 = vpop.eup %6679  ;;  %v2858_v37 = vadd.f32 1.0, %v6678_v8  ;;  %v5598_v5 = vmul.f32 -1.442695, %v8262_v21  ;;  %v8266_v31 = vadd.f32 %v6196_v45, %v8151_v28  ;;  %6703 = vpow2.f32 %v5600_v59 }
 0x3ae   : > { %v6682_v56 = vpop.eup %6681  ;;  %v2949_v19 = vmul.f32 %v6680_v30, %v8194_v46  ;;  %v2718_v9 = vpop.f32.mrf.mxu0 }
 0x3af   : > { %v6684_v63 = vpop.eup %6683  ;;  %6705 = vrcp.f32 %v2858_v37  ;;  %v2861_v40 = vadd.f32 1.0, %v6682_v56  ;;  %v5601_v48 = vmul.f32 -1.442695, %v8266_v31  ;;  %v8272_v38 = vadd.f32 %v8151_v28, %v2718_v9 }
 0x3b0   : > { %v2947_v35 = vmul.f32 %v6684_v63, %v8198_v34  ;;  %6707 = vpow2.f32 %v5598_v5  ;;  %v6199_v53 = vpop.f32.mrf.mxu0  ;;  %v2975_v3 = vpack.c.bf16 %v2949_v19, %v2948_v47 }
 0x3b1   : > { %v6686_v4 = vpop.eup %6685  ;;  %6709 = vrcp.f32 %v2861_v40  ;;  %v5599_v46 = vmul.f32 -1.442695, %v8272_v38  ;;  %v8278_v50 = vadd.f32 %v6199_v53, %v8151_v28 }
 0x3b2   : > { %v6688_v2 = vpop.eup %6687  ;;  %6711 = vpow2.f32 %v5601_v48  ;;  %v2731_v54 = vpop.f32.mrf.mxu0  ;;  %v2974_v12 = vpack.c.bf16 %v2947_v35, %v2946_v16  ;;  %v2952_v39 = vmul.f32 %v6686_v4, %v8202_v22 }
 0x3b3   : > { %v6690_v7 = vpop.eup %6689  ;;  %v2859_v42 = vadd.f32 1.0, %v6688_v2  ;;  %6713 = vpow2.f32 %v5599_v46  ;;  %v5604_v26 = vmul.f32 -1.442695, %v8278_v50  ;;  %v8282_v34 = vadd.f32 %v8151_v28, %v2731_v54 }
 0x3b4   : > { %v6692_v33 = vpop.eup %6691  ;;  %6715 = vrcp.f32 %v2860_v36  ;;  %v6200_v60 = vpop.f32.mrf.mxu0  ;;  %6225 = vmatprep.mubr.bf16.mxu1 %v2974_v12  ;;  %v2950_v25 = vmul.f32 %v6690_v7, %v8206_v41 }
 0x3b5   : > { %v6694_v1 = vpop.eup %6693  ;;  %6717 = vrcp.f32 %v2859_v42  ;;  %v2864_v23 = vadd.f32 1.0, %v6692_v33  ;;  %v5602_v29 = vmul.f32 -1.442695, %v8282_v34  ;;  %v8286_v11 = vadd.f32 %v6200_v60, %v8151_v28  ;;  %6226 = vmatmul.mubr.bf16.gmra.mxu1 %v2975_v3 }
 0x3b6   : > { %v6696_v6 = vpop.eup %6695  ;;  %v2953_v27 = vmul.f32 %v6694_v1, %v8210_v10  ;;  %6719 = vpow2.f32 %v5604_v26  ;;  %v2734_v17 = vpop.f32.mrf.mxu0 }
 0x3b7   : > { %v6698_v43 = vpop.eup %6697  ;;  %6721 = vrcp.f32 %v2864_v23  ;;  %v2862_v0 = vadd.f32 1.0, %v6696_v6  ;;  %v5605_v57 = vmul.f32 -1.442695, %v8286_v11  ;;  %v8291_v52 = vadd.f32 %v8151_v28, %v2734_v17 }
 0x3b8   : > { %v6700_v14 = vpop.eup %6699  ;;  %v2951_v62 = vmul.f32 %v6698_v43, %v8214_v32  ;;  %6723 = vpow2.f32 %v5602_v29  ;;  %v2977_v28 = vpack.c.bf16 %v2953_v27, %v2952_v39 }
 0x3b9   : > { %v6702_v58 = vpop.eup %6701  ;;  %6725 = vrcp.f32 %v2862_v0  ;;  %v2865_v10 = vadd.f32 1.0, %v6700_v14  ;;  %v5603_v61 = vmul.f32 -1.442695, %v8291_v52 }
 0x3ba   : > { %v2863_v59 = vadd.f32 1.0, %v6702_v58  ;;  %6727 = vpow2.f32 %v5605_v57  ;;  %v2976_v8 = vpack.c.bf16 %v2951_v62, %v2950_v25  ;;  %v6704_v45 = vpop.eup %6703 }
 0x3bb   : > { %6729 = vrcp.f32 %v2865_v10  ;;  %v2868_v56 = vadd.f32 1.0, %v6704_v45 }
 0x3bc   : > { %v6706_v30 = vpop.eup %6705  ;;  %6731 = vrcp.f32 %v2863_v59  ;;  %6229 = vmatprep.mubr.bf16.mxu1 %v2976_v8 }
 0x3bd   : > { %v6708_v41 = vpop.eup %6707  ;;  %6733 = vpow2.f32 %v5603_v61  ;;  %6230 = vmatmul.mubr.bf16.gmra.mxu1 %v2977_v28  ;;  %v2954_v16 = vmul.f32 %v6706_v30, %v8222_v18 }
 0x3be   : > { %v6710_v32 = vpop.eup %6709  ;;  %v2866_v37 = vadd.f32 1.0, %v6708_v41 }
 0x3bf   : > { %v6712_v5 = vpop.eup %6711  ;;  %v2957_v40 = vmul.f32 %v6710_v32, %v8226_v13 }
 0x3c0   : > { %v6714_v22 = vpop.eup %6713  ;;  %v2869_v47 = vadd.f32 1.0, %v6712_v5  ;;  %6735 = vrcp.f32 %v2866_v37 }
 0x3c1   : > { %v6716_v19 = vpop.eup %6715  ;;  %v2867_v9 = vadd.f32 1.0, %v6714_v22 }
 0x3c2   : > { %v6718_v63 = vpop.eup %6717  ;;  %6737 = vrcp.f32 %v2869_v47  ;;  %v2956_v53 = vmul.f32 %v6716_v19, %v8218_v51 }
 0x3c3   : > { %v6720_v48 = vpop.eup %6719  ;;  %v2955_v35 = vmul.f32 %v6718_v63, %v8234_v24  ;;  %6739 = vrcp.f32 %v2867_v9 }
 0x3c4   : > { %v6722_v36 = vpop.eup %6721  ;;  %6741 = vrcp.f32 %v2868_v56  ;;  %v2979_v54 = vpack.c.bf16 %v2957_v40, %v2956_v53  ;;  %v2872_v13 = vadd.f32 1.0, %v6720_v48 }
 0x3c5   : > { %v6724_v4 = vpop.eup %6723  ;;  %v2978_v46 = vpack.c.bf16 %v2955_v35, %v2954_v16  ;;  %v2960_v1 = vmul.f32 %v6722_v36, %v8237_v20 }
 0x3c6   : > { %v6726_v2 = vpop.eup %6725  ;;  %v2870_v3 = vadd.f32 1.0, %v6724_v4 }
 0x3c7   : > { %v6728_v12 = vpop.eup %6727  ;;  %6233 = vmatprep.mubr.bf16.mxu1 %v2978_v46  ;;  %v2958_v24 = vmul.f32 %v6726_v2, %v8242_v55 }
 0x3c8   : > { %v6730_v7 = vpop.eup %6729  ;;  %v2873_v42 = vadd.f32 1.0, %v6728_v12  ;;  %6234 = vmatmul.mubr.bf16.gmra.mxu1 %v2979_v54 }
 0x3c9   : > { %v6732_v26 = vpop.eup %6731  ;;  %v2961_v33 = vmul.f32 %v6730_v7, %v8246_v44 }
 0x3ca   : > { %v6734_v18 = vpop.eup %6733  ;;  %v2959_v51 = vmul.f32 %v6732_v26, %v8253_v49  ;;  %6743 = vrcp.f32 %v2873_v42 }
 0x3cb   : > { %6745 = vrcp.f32 %v2870_v3  ;;  %v2871_v60 = vadd.f32 1.0, %v6734_v18  ;;  %v2981_v6 = vpack.c.bf16 %v2961_v33, %v2960_v1 }
 0x3cc   : > { %6747 = vrcp.f32 %v2872_v13  ;;  %v2980_v23 = vpack.c.bf16 %v2959_v51, %v2958_v24 }
 0x3cd   : > { %6749 = vrcp.f32 %v2871_v60  ;;  %v6736_v29 = vpop.eup %6735 }
 0x3ce   : > { %6237 = vmatprep.mubr.bf16.mxu1 %v2980_v23  ;;  %v2962_v55 = vmul.f32 %v6736_v29, %v8262_v21 }
 0x3cf   : > { %v6738_v27 = vpop.eup %6737 }
 0x3d0   : > { %v6740_v17 = vpop.eup %6739  ;;  %6238 = vmatmul.mubr.bf16.gmra.mxu1 %v2981_v6  ;;  %v2965_v49 = vmul.f32 %v6738_v27, %v8266_v31 }
 0x3d1   : > { %v6742_v43 = vpop.eup %6741  ;;  %v2963_v44 = vmul.f32 %v6740_v17, %v8272_v38 }
 0x3d2   : > { %v2964_v57 = vmul.f32 %v6742_v43, %v8258_v15  ;;  %v8316_v15 = vld [vmem:[%s9574_s11] ss:$0 sm:$0xff] }
 0x3d3   : > { %v2982_v0 = vpack.c.bf16 %v2963_v44, %v2962_v55 }
 0x3d4   : > { %v2983_v20 = vpack.c.bf16 %v2965_v49, %v2964_v57 }
 0x3d5   : > { %6241 = vmatprep.mubr.bf16.mxu1 %v2982_v0 }
 0x3d7   : > { %v6744_v14 = vpop.eup %6743 }
 0x3d8   : > { %v6746_v25 = vpop.eup %6745  ;;  %6242 = vmatmul.mubr.bf16.gmra.mxu1 %v2983_v20  ;;  %v2969_v39 = vmul.f32 %v6744_v14, %v8286_v11 }
 0x3d9   : > { %v6748_v62 = vpop.eup %6747  ;;  %v2966_v10 = vmul.f32 %v6746_v25, %v8282_v34 }
 0x3da   : > { %v6750_v58 = vpop.eup %6749  ;;  %v2968_v38 = vmul.f32 %v6748_v62, %v8278_v50 }
 0x3db   : > { %v2967_v21 = vmul.f32 %v6750_v58, %v8291_v52 }
 0x3dc   : > { %v2985_v31 = vpack.c.bf16 %v2969_v39, %v2968_v38 }
 0x3dd   : > { %v2984_v61 = vpack.c.bf16 %v2967_v21, %v2966_v10 }
 0x3df   : > { %6245 = vmatprep.mubr.bf16.mxu1 %v2984_v61 }
 0x3e0   : > { %6246 = vmatmul.mubr.bf16.gmra.mxu1 %v2985_v31 }
 0x464   : > { %v6219_v59 = vpop.f32.mrf.mxu1 }
 0x465   : > { %v8319_v8 = vadd.f32 %v6219_v59, %v8316_v15 }
 0x466   : > { %v8321_v11 = vpop.f32.mrf.mxu1 }
 0x467   : > { %3224 = vadd.xlane.f32.xlu1 %v8319_v8 }
 0x468   : > { %v6220_v34 = vpop.f32.mrf.mxu1 }
 0x469   : > { %v8325_v50 = vadd.f32 %v6220_v34, %v8316_v15 }
 0x46a   : > { %v8327_v52 = vpop.f32.mrf.mxu1 }
 0x46b   : > { %3226 = vadd.xlane.f32.xlu0 %v8325_v50 }
 0x46c   : > { %v6223_v45 = vpop.f32.mrf.mxu1 }
 0x46d   : > { %v8331_v28 = vadd.f32 %v6223_v45, %v8316_v15 }
 0x46e   : > { %v3107_v30 = vpop.f32.mrf.mxu1 }
 0x46f   : > { %3232 = vadd.xlane.f32.xlu1 %v8331_v28  ;;  %v3323_v37 = vmul.f32 %v8331_v28, %v8331_v28  ;;  %v8341_v22 = vadd.f32 %v8316_v15, %v3107_v30 }
 0x470   : > { %v6224_v41 = vpop.f32.mrf.mxu1 }
 0x471   : > { %v8335_v32 = vadd.f32 %v6224_v41, %v8316_v15  ;;  %v3321_v40 = vmul.f32 %v8341_v22, %v8341_v22 }
 0x472   : > { %v3110_v5 = vpop.f32.mrf.mxu1 }
 0x473   : > { %3361 = vadd.xlane.f32.xlu1 %v3323_v37  ;;  %3234 = vadd.xlane.f32.xlu0 %v8335_v32  ;;  %v3324_v47 = vmul.f32 %v8335_v32, %v8335_v32  ;;  %v8347_v9 = vadd.f32 %v8316_v15, %v3110_v5 }
 0x475   : > { %v6227_v56 = vpop.f32.mrf.mxu1  ;;  %v3322_v36 = vmul.f32 %v8347_v9, %v8347_v9 }
 0x476   : > { %v8353_v16 = vadd.f32 %v6227_v56, %v8316_v15 }
 0x477   : > { %v3123_v19 = vpop.f32.mrf.mxu1  ;;  %3363 = vadd.xlane.f32.xlu0 %v3324_v47  ;;  %3228 = vadd.xlane.f32.xlu1 %v8341_v22 }
 0x478   : > { %v3327_v2 = vmul.f32 %v8353_v16, %v8353_v16  ;;  %v8365_v12 = vadd.f32 %v8316_v15, %v3123_v19 }
 0x479   : > { %v6228_v63 = vpop.f32.mrf.mxu1 }
 0x47a   : > { %v8359_v4 = vadd.f32 %v6228_v63, %v8316_v15  ;;  %v3325_v26 = vmul.f32 %v8365_v12, %v8365_v12 }
 0x47b   : > { %v3126_v48 = vpop.f32.mrf.mxu1  ;;  %3230 = vadd.xlane.f32.xlu0 %v8347_v9  ;;  %3357 = vadd.xlane.f32.xlu1 %v3321_v40 }
 0x47c   : > { %v3328_v3 = vmul.f32 %v8359_v4, %v8359_v4  ;;  %v8371_v13 = vadd.f32 %v8316_v15, %v3126_v48 }
 0x47d   : > { %v6231_v35 = vpop.f32.mrf.mxu1 }
 0x47e   : > { %v8374_v42 = vadd.f32 %v6231_v35, %v8316_v15  ;;  %v3326_v60 = vmul.f32 %v8371_v13, %v8371_v13 }
 0x47f   : > { %v3139_v53 = vpop.f32.mrf.mxu1  ;;  %3359 = vadd.xlane.f32.xlu0 %v3322_v36  ;;  %3240 = vadd.xlane.f32.xlu1 %v8353_v16 }
 0x480   : > { %v3331_v24 = vmul.f32 %v8374_v42, %v8374_v42  ;;  %v8385_v51 = vadd.f32 %v8316_v15, %v3139_v53 }
 0x481   : > { %v6232_v46 = vpop.f32.mrf.mxu1 }
 0x482   : > { %v8393_v23 = vadd.f32 %v6232_v46, %v8316_v15  ;;  %v3329_v29 = vmul.f32 %v8385_v51, %v8385_v51 }
 0x483   : > { %3242 = vadd.xlane.f32.xlu0 %v8359_v4  ;;  %3369 = vadd.xlane.f32.xlu1 %v3327_v2  ;;  %v3142_v54 = vpop.f32.mrf.mxu1 }
 0x484   : > { %v3332_v17 = vmul.f32 %v8393_v23, %v8393_v23  ;;  %v8405_v55 = vadd.f32 %v8316_v15, %v3142_v54 }
 0x486   : > { %v3330_v0 = vmul.f32 %v8405_v55, %v8405_v55 }
 0x487   : > { %3371 = vadd.xlane.f32.xlu0 %v3328_v3  ;;  %3236 = vadd.xlane.f32.xlu1 %v8365_v12 }
 0x488   : > { %v6235_v7 = vpop.f32.mrf.mxu1 }
 0x489   : > { %v8399_v27 = vadd.f32 %v6235_v7, %v8316_v15 }
 0x48a   : > { %v8378_v18 = vpop.f32.mrf.mxu1 }
 0x48b   : > { %3238 = vadd.xlane.f32.xlu0 %v8371_v13  ;;  %3365 = vadd.xlane.f32.xlu1 %v3325_v26  ;;  %v3335_v46 = vmul.f32 %v8399_v27, %v8399_v27  ;;  %v3319_v26 = vmul.f32 %v8319_v8, %v8319_v8 }
 0x48c   : > { %v6236_v33 = vpop.f32.mrf.mxu1 }
 0x48d   : > { %v8417_v14 = vadd.f32 %v6236_v33, %v8316_v15 }
 0x48e   : > { %v8389_v1 = vpop.f32.mrf.mxu1 }
 0x48f   : > { %3248 = vadd.xlane.f32.xlu0 %v8374_v42  ;;  %3377 = vadd.xlane.f32.xlu1 %v3331_v24  ;;  %v8490_v24 = vadd.f32 %v8316_v15, %v8378_v18  ;;  %v3320_v18 = vmul.f32 %v8325_v50, %v8325_v50 }
 0x490   : > { %v6239_v6 = vpop.f32.mrf.mxu1 }
 0x491   : > { %v8408_v44 = vadd.f32 %v6239_v6, %v8316_v15  ;;  %v3333_v6 = vmul.f32 %v8490_v24, %v8490_v24 }
 0x492   : > { %v3171_v43 = vpop.f32.mrf.mxu1 }
 0x493   : > { %3367 = vadd.xlane.f32.xlu0 %v3326_v60  ;;  %3244 = vadd.xlane.f32.xlu1 %v8385_v51  ;;  %v3339_v57 = vmul.f32 %v8408_v44, %v8408_v44  ;;  %v8420_v25 = vadd.f32 %v8316_v15, %v3171_v43  ;;  %v8497_v60 = vadd.f32 %v8316_v15, %v8321_v11 }
 0x494   : > { %v6240_v49 = vpop.f32.mrf.mxu1  ;;  %v8515_v43 = vadd.f32 %v8316_v15, %v8327_v52 }
 0x495   : > { %v8425_v58 = vadd.f32 %v6240_v49, %v8316_v15  ;;  %v3337_v39 = vmul.f32 %v8420_v25, %v8420_v25  ;;  %v3317_v11 = vmul.f32 %v8497_v60, %v8497_v60 }
 0x496   : > { %v3174_v20 = vpop.f32.mrf.mxu1 }
 0x497   : > { %3250 = vadd.xlane.f32.xlu0 %v8393_v23  ;;  %3373 = vadd.xlane.f32.xlu1 %v3329_v29  ;;  %v3340_v38 = vmul.f32 %v8425_v58, %v8425_v58  ;;  %v8437_v31 = vadd.f32 %v8316_v15, %v3174_v20  ;;  %v3336_v29 = vmul.f32 %v8417_v14, %v8417_v14 }
 0x498   : > { %v6243_v62 = vpop.f32.mrf.mxu1 }
 0x499   : > { %v8431_v21 = vadd.f32 %v6243_v62, %v8316_v15  ;;  %v3338_v30 = vmul.f32 %v8437_v31, %v8437_v31 }
 0x49a   : > { %v3187_v10 = vpop.f32.mrf.mxu1 }
 0x49b   : > { %3379 = vadd.xlane.f32.xlu0 %v3332_v17  ;;  %3256 = vadd.xlane.f32.xlu1 %v8399_v27  ;;  %v3343_v59 = vmul.f32 %v8431_v21, %v8431_v21  ;;  %v8443_v45 = vadd.f32 %v8316_v15, %v3187_v10  ;;  %v8508_v17 = vadd.f32 %v8316_v15, %v8389_v1 }
 0x49c   : > { %v6244_v61 = vpop.f32.mrf.mxu1  ;;  %v3318_v1 = vmul.f32 %v8515_v43, %v8515_v43 }
 0x49d   : > { %v8449_v37 = vadd.f32 %v6244_v61, %v8316_v15  ;;  %v3341_v56 = vmul.f32 %v8443_v45, %v8443_v45  ;;  %v3334_v49 = vmul.f32 %v8508_v17, %v8508_v17 }
 0x49e   : > { %v3190_v34 = vpop.f32.mrf.mxu1 }
 0x49f   : > { %3246 = vadd.xlane.f32.xlu0 %v8405_v55  ;;  %3264 = vadd.xlane.f32.xlu1 %v8408_v44  ;;  %v3344_v47 = vmul.f32 %v8449_v37, %v8449_v37  ;;  %v8462_v40 = vadd.f32 %v8316_v15, %v3190_v34 }
 0x4a0   : > { %v6247_v41 = vpop.f32.mrf.mxu1 }
 0x4a1   : > { %v8452_v5 = vadd.f32 %v6247_v41, %v8316_v15  ;;  %v3342_v53 = vmul.f32 %v8462_v40, %v8462_v40 }
 0x4a2   : > { %v3203_v63 = vpop.f32.mrf.mxu1 }
 0x4a3   : > { %3375 = vadd.xlane.f32.xlu0 %v3330_v0  ;;  %3393 = vadd.xlane.f32.xlu1 %v3339_v57  ;;  %v3347_v19 = vmul.f32 %v8452_v5, %v8452_v5  ;;  %v8465_v48 = vadd.f32 %v8316_v15, %v3203_v63 }
 0x4a4   : > { %v6248_v35 = vpop.f32.mrf.mxu1 }
 0x4a5   : > { %v8470_v36 = vadd.f32 %v6248_v35, %v8316_v15  ;;  %v3345_v54 = vmul.f32 %v8465_v48, %v8465_v48 }
 0x4a6   : > { %v3206_v3 = vpop.f32.mrf.mxu1 }
 0x4a7   : > { %3258 = vadd.xlane.f32.xlu0 %v8417_v14  ;;  %3260 = vadd.xlane.f32.xlu1 %v8420_v25  ;;  %v3348_v2 = vmul.f32 %v8470_v36, %v8470_v36  ;;  %v8483_v7 = vadd.f32 %v8316_v15, %v3206_v3 }
 0x4a9   : > { %v3346_v33 = vmul.f32 %v8483_v7, %v8483_v7 }
 0x4ab   : > { %3266 = vadd.xlane.f32.xlu0 %v8425_v58  ;;  %3389 = vadd.xlane.f32.xlu1 %v3337_v39 }
 0x4af   : > { %3395 = vadd.xlane.f32.xlu0 %v3340_v38  ;;  %3272 = vadd.xlane.f32.xlu1 %v8431_v21 }
 0x4b3   : > { %3262 = vadd.xlane.f32.xlu0 %v8437_v31  ;;  %3401 = vadd.xlane.f32.xlu1 %v3343_v59 }
 0x4b7   : > { %3391 = vadd.xlane.f32.xlu0 %v3338_v30  ;;  %3268 = vadd.xlane.f32.xlu1 %v8443_v45 }
 0x4bb   : > { %3274 = vadd.xlane.f32.xlu0 %v8449_v37  ;;  %3397 = vadd.xlane.f32.xlu1 %v3341_v56 }
 0x4bf   : > { %3403 = vadd.xlane.f32.xlu0 %v3344_v47  ;;  %3409 = vadd.xlane.f32.xlu1 %v3347_v19 }
 0x4c3   : > { %3270 = vadd.xlane.f32.xlu0 %v8462_v40  ;;  %3276 = vadd.xlane.f32.xlu1 %v8465_v48 }
 0x4c7   : > { %3280 = vadd.xlane.f32.xlu0 %v8452_v5  ;;  %3282 = vadd.xlane.f32.xlu1 %v8470_v36 }
 0x4cb   : > { %3399 = vadd.xlane.f32.xlu0 %v3342_v53  ;;  %3385 = vadd.xlane.f32.xlu1 %v3335_v46 }
 0x4cf   : > { %3411 = vadd.xlane.f32.xlu0 %v3348_v2  ;;  %3405 = vadd.xlane.f32.xlu1 %v3345_v54 }
 0x4d3   : > { %3278 = vadd.xlane.f32.xlu0 %v8483_v7  ;;  %3353 = vadd.xlane.f32.xlu1 %v3319_v26 }
 0x4d7   : > { %3407 = vadd.xlane.f32.xlu0 %v3346_v33  ;;  %3252 = vadd.xlane.f32.xlu1 %v8490_v24 }
 0x4db   : > { %3387 = vadd.xlane.f32.xlu0 %v3336_v29  ;;  %3220 = vadd.xlane.f32.xlu1 %v8497_v60 }
 0x4df   : > { %3355 = vadd.xlane.f32.xlu0 %v3320_v18  ;;  %3381 = vadd.xlane.f32.xlu1 %v3333_v6 }
 0x4e3   : > { %3254 = vadd.xlane.f32.xlu0 %v8508_v17  ;;  %3349 = vadd.xlane.f32.xlu1 %v3317_v11 }
 0x4e7   : > { %3222 = vadd.xlane.f32.xlu0 %v8515_v43 }
 0x4eb   : > { %3383 = vadd.xlane.f32.xlu0 %v3334_v49 }
 0x4ef   : > { %3351 = vadd.xlane.f32.xlu0 %v3318_v1 }
 0x4f0   : > { %v8522_v0 = vpop.xlane.xlu1 %3224 }
 0x4f4   : > { %v8524_v57 = vpop.xlane.xlu0 %3226 }
 0x4f8   : > { %v3233_v20 = vpop.xlane.xlu1 %3232 }
 0x4f9   : > { %v3291_v62 = vmul.f32 0.0078125, %v3233_v20 }
 0x4fb   : > { %v3451_v15 = vmul.f32 %v3291_v62, %v3291_v62 }
 0x4fc   : > { %v3362_v39 = vpop.xlane.xlu1 %3361  ;;  %v3235_v10 = vpop.xlane.xlu0 %3234 }
 0x4fd   : > { %v3419_v52 = vmul.f32 0.0078125, %v3362_v39  ;;  %v8526_v38 = vmul.f32 0.0078125, %v3235_v10 }
 0x4ff   : > { %v3483_v61 = vsub.f32 %v3419_v52, %v3451_v15  ;;  %v3452_v41 = vmul.f32 %v8526_v38, %v8526_v38 }
 0x500   : > { %v3364_v59 = vpop.xlane.xlu0 %3363  ;;  %v3229_v34 = vpop.xlane.xlu1 %3228 }
 0x501   : > { %v3515_v30 = vmax.f32 %v3483_v61, 0.0  ;;  %v3420_v56 = vmul.f32 0.0078125, %v3364_v59  ;;  %v8530_v47 = vmul.f32 0.0078125, %v3229_v34 }
 0x503   : > { %v3579_v19 = vadd.f32 1e-05, %v3515_v30  ;;  %v3484_v63 = vsub.f32 %v3420_v56, %v3452_v41  ;;  %v3449_v35 = vmul.f32 %v8530_v47, %v8530_v47 }
 0x504   : > { %v3231_v53 = vpop.xlane.xlu0 %3230  ;;  %v3358_v46 = vpop.xlane.xlu1 %3357 }
 0x505   : > { %6751 = vrsqrt.f32 %v3579_v19  ;;  %v3516_v2 = vmax.f32 %v3484_v63, 0.0  ;;  %v8534_v54 = vmul.f32 0.0078125, %v3231_v53  ;;  %v3417_v3 = vmul.f32 0.0078125, %v3358_v46  ;;  %v9803_v53 = vld [vmem:[#allocation49_spill] sm:$0xff] }
 0x507   : > { %v3580_v26 = vadd.f32 1e-05, %v3516_v2  ;;  %v3481_v33 = vsub.f32 %v3417_v3, %v3449_v35  ;;  %v3450_v29 = vmul.f32 %v8534_v54, %v8534_v54  ;;  %v9802_v35 = vld [vmem:[#allocation48_spill] sm:$0xff] }
 0x508   : > { %v3360_v18 = vpop.xlane.xlu0 %3359  ;;  %v3241_v6 = vpop.xlane.xlu1 %3240  ;;  %v9804_v46 = vpack.c.bf16 %v9802_v35, %v9803_v53  ;;  %v3545_v35 = vsub.f32 %v8341_v22, %v8530_v47  ;;  %v6815_v22 = vld [vmem:[%s7232_s16 + $0x30] sm:$0xff]  ;;  %s9893_s16 = sld [smem:[#allocation105_spill]] (!%p5617_p8) }
 0x509   : > { %6753 = vrsqrt.f32 %v3580_v26  ;;  %v3513_v11 = vmax.f32 %v3481_v33, 0.0  ;;  %v3418_v49 = vmul.f32 0.0078125, %v3360_v18  ;;  %v8538_v1 = vmul.f32 0.0078125, %v3241_v6 }
 0x50b   : > { %v3577_v20 = vadd.f32 1e-05, %v3513_v11  ;;  %v3482_v39 = vsub.f32 %v3418_v49, %v3450_v29  ;;  %v3455_v10 = vmul.f32 %v8538_v1, %v8538_v1  ;;  %v3547_v29 = vsub.f32 %v8331_v28, %v3291_v62  ;;  %v8555_v11 = vld [vmem:[%s9575_s12] ss:$0 sm:$0xff] }
 0x50c   : > { %v3243_v15 = vpop.xlane.xlu0 %3242  ;;  %v3370_v52 = vpop.xlane.xlu1 %3369  ;;  %v8565_v62 = vld [vmem:[%s9576_s13] ss:$0 sm:$0xff] }
 0x50d   : > { %6755 = vrsqrt.f32 %v3577_v20  ;;  %v3514_v61 = vmax.f32 %v3482_v39, 0.0  ;;  %v8542_v59 = vmul.f32 0.0078125, %v3243_v15  ;;  %v3423_v34 = vmul.f32 0.0078125, %v3370_v52  ;;  %v9805_v39 = vld [vmem:[#allocation50_spill] sm:$0xff] }
 0x50f   : > { %v3578_v30 = vadd.f32 1e-05, %v3514_v61  ;;  %v3487_v41 = vsub.f32 %v3423_v34, %v3455_v10  ;;  %v3456_v56 = vmul.f32 %v8542_v59, %v8542_v59  ;;  %v9806_v10 = vld [vmem:[#allocation51_spill] sm:$0xff] }
 0x510   : > { %v3372_v19 = vpop.xlane.xlu0 %3371  ;;  %v3237_v63 = vpop.xlane.xlu1 %3236  ;;  %3857 = vxpose.xlu1.c.b16.start [1/8] %v9804_v46, 128  ;;  %v9807_v15 = vpack.c.bf16 %v9805_v39, %v9806_v10 }
 0x511   : > { %6757 = vrsqrt.f32 %v3578_v30  ;;  %v3519_v2 = vmax.f32 %v3487_v41, 0.0  ;;  %v3424_v3 = vmul.f32 0.0078125, %v3372_v19  ;;  %v8549_v26 = vmul.f32 0.0078125, %v3237_v63 }
 0x512   : > { %v6752_v33 = vpop.eup %6751  ;;  %v3548_v41 = vsub.f32 %v8335_v32, %v8526_v38 }
 0x513   : > { %v3583_v18 = vadd.f32 1e-05, %v3519_v2  ;;  %v3488_v6 = vsub.f32 %v3424_v3, %v3456_v56  ;;  %v3643_v52 = vmul.f32 %v6752_v33, %v3547_v29  ;;  %v3453_v34 = vmul.f32 %v8549_v26, %v8549_v26  ;;  %v9808_v2 = vld [vmem:[#allocation52_spill] sm:$0xff]  ;;  %v9809_v3 = vld [vmem:[#allocation53_spill] sm:$0xff] }
 0x514   : > { %v3239_v49 = vpop.xlane.xlu0 %3238  ;;  %v3366_v20 = vpop.xlane.xlu1 %3365  ;;  %3858 = vxpose.xlu1.c.b16.cont [2/8] %v9807_v15, 128  ;;  %v9810_v33 = vpack.c.bf16 %v9808_v2, %v9809_v3 }
 0x515   : > { %6759 = vrsqrt.f32 %v3583_v18  ;;  %v3520_v61 = vmax.f32 %v3488_v6, 0.0  ;;  %v3421_v28 = vmul.f32 0.0078125, %v3366_v20  ;;  %v3681_v56 = vmul.f32 %v8555_v11, %v3643_v52 }
 0x516   : > { %v6754_v30 = vpop.eup %6753  ;;  %v8576_v6 = vmul.f32 0.0078125, %v3239_v49  ;;  %v9811_v49 = vld [vmem:[#allocation35_spill] sm:$0xff] }
 0x517   : > { %v3584_v19 = vadd.f32 1e-05, %v3520_v61  ;;  %v3485_v63 = vsub.f32 %v3421_v28, %v3453_v34  ;;  %v3644_v29 = vmul.f32 %v6754_v30, %v3548_v41  ;;  %v3719_v18 = vadd.f32 %v8565_v62, %v3681_v56  ;;  %v9812_v30 = vld [vmem:[#allocation33_spill] sm:$0xff]  ;;  %v9814_v56 = vld [vmem:[#allocation54_spill] sm:$0xff] }
 0x518   : > { %v3249_v53 = vpop.xlane.xlu0 %3248  ;;  %v3378_v46 = vpop.xlane.xlu1 %3377  ;;  %3859 = vxpose.xlu1.c.b16.cont [3/8] %v9810_v33, 128  ;;  %v9813_v41 = vpack.c.bf16 %v9811_v49, %v9812_v30  ;;  %v3454_v2 = vmul.f32 %v8576_v6, %v8576_v6  ;;  %v3546_v33 = vsub.f32 %v8347_v9, %v8534_v54 }
 0x519   : > { %6761 = vrsqrt.f32 %v3584_v19  ;;  %v3517_v32 = vmax.f32 %v3485_v63, 0.0  ;;  %v8578_v38 = vmul.f32 0.0078125, %v3249_v53  ;;  %v3682_v39 = vmul.f32 %v8555_v11, %v3644_v29  ;;  %v9815_v19 = vld [vmem:[#allocation55_spill] sm:$0xff] }
 0x51a   : > { %v6756_v20 = vpop.eup %6755  ;;  %v8582_v47 = vadd.f32 %v6815_v22, %v3719_v18  ;;  %v3427_v52 = vmul.f32 0.0078125, %v3378_v46  ;;  %v9816_v63 = vpack.c.bf16 %v9814_v56, %v9815_v19  ;;  %v9817_v18 = vld [vmem:[#allocation70_spill] sm:$0xff]  ;;  %v9819_v56 = vld [vmem:[#allocation32_spill] sm:$0xff] }
 0x51b   : > { %v3581_v10 = vadd.f32 1e-05, %v3517_v32  ;;  %v3459_v15 = vmul.f32 %v8578_v38, %v8578_v38  ;;  %v3641_v61 = vmul.f32 %v6756_v20, %v3545_v35  ;;  %v3720_v53 = vadd.f32 %v8565_v62, %v3682_v39 }
 0x51c   : > { %v3368_v34 = vpop.xlane.xlu0 %3367  ;;  %v3245_v28 = vpop.xlane.xlu1 %3244  ;;  %3841 = vxpose.xlu0.c.b16.start [1/8] %v9813_v41, 128  ;;  %3860 = vxpose.xlu1.c.b16.cont [4/8] %v9816_v63, 128  ;;  %3783 = vst [vmem:[%s7242_s25 + $0x30] sm:$0xff] %v8582_v47  ;;  %v9818_v41 = vld [vmem:[#allocation34_spill] sm:$0xff] }
 0x51d   : > { %6763 = vrsqrt.f32 %v3581_v10  ;;  %v3491_v35 = vsub.f32 %v3427_v52, %v3459_v15  ;;  %v3422_v46 = vmul.f32 0.0078125, %v3368_v34  ;;  %v8599_v29 = vmul.f32 0.0078125, %v3245_v28  ;;  %v9821_v15 = vld [vmem:[#allocation56_spill] sm:$0xff]  ;;  %v9822_v52 = vld [vmem:[#allocation57_spill] sm:$0xff] }
 0x51e   : > { %v6758_v3 = vpop.eup %6757  ;;  %v8602_v32 = vadd.f32 %v3720_v53, %v9817_v18  ;;  %v3679_v20 = vmul.f32 %v8555_v11, %v3641_v61  ;;  %v9820_v10 = vpack.c.bf16 %v9818_v41, %v9819_v56  ;;  %v9823_v34 = vpack.c.bf16 %v9821_v15, %v9822_v52  ;;  %v9824_v41 = vld [vmem:[#allocation68_spill] sm:$0xff] }
 0x51f   : > { %v3523_v39 = vmax.f32 %v3491_v35, 0.0  ;;  %v3486_v22 = vsub.f32 %v3422_v46, %v3454_v2  ;;  %v3642_v54 = vmul.f32 %v6758_v3, %v3546_v33  ;;  %v3551_v35 = vsub.f32 %v8353_v16, %v8538_v1  ;;  %v9829_v16 = vld [vmem:[#allocation59_spill] sm:$0xff] }
 0x520   : > { %v3251_v49 = vpop.xlane.xlu0 %3250  ;;  %v3374_v30 = vpop.xlane.xlu1 %3373  ;;  %3842 = vxpose.xlu0.c.b16.cont [2/8] %v9820_v10, 128  ;;  %3861 = vxpose.xlu1.c.b16.cont [5/8] %v9823_v34, 128  ;;  %3784 = vst [vmem:[%s7242_s25 + $0x38] sm:$0xff] %v8602_v32  ;;  %v3717_v61 = vadd.f32 %v8565_v62, %v3679_v20  ;;  %v3457_v46 = vmul.f32 %v8599_v29, %v8599_v29  ;;  %v9828_v10 = vld [vmem:[#allocation58_spill] sm:$0xff] }
 0x521   : > { %v3587_v28 = vadd.f32 1e-05, %v3523_v39  ;;  %v3518_v19 = vmax.f32 %v3486_v22, 0.0  ;;  %v8616_v63 = vmul.f32 0.0078125, %v3251_v49  ;;  %v3425_v53 = vmul.f32 0.0078125, %v3374_v30  ;;  %v9825_v22 = vld [vmem:[#allocation36_spill] sm:$0xff] }
 0x522   : > { %v6760_v2 = vpop.eup %6759  ;;  %v3680_v18 = vmul.f32 %v8555_v11, %v3642_v54  ;;  %v8624_v56 = vadd.f32 %v3717_v61, %v9824_v41  ;;  %v9826_v49 = vld [vmem:[#allocation37_spill] sm:$0xff]  ;;  %v9830_v1 = vpack.c.bf16 %v9828_v10, %v9829_v16  ;;  %v3552_v34 = vsub.f32 %v8359_v4, %v8542_v59  ;;  %v9833_v4 = vld [vmem:[#allocation39_spill] sm:$0xff] }
 0x523   : > { %6765 = vrsqrt.f32 %v3587_v28  ;;  %v3582_v3 = vadd.f32 1e-05, %v3518_v19  ;;  %v3489_v33 = vsub.f32 %v3425_v53, %v3457_v46  ;;  %v9827_v30 = vpack.c.bf16 %v9825_v22, %v9826_v49  ;;  %v9831_v46 = vld [vmem:[#allocation69_spill] sm:$0xff] }
 0x524   : > { %v3380_v20 = vpop.xlane.xlu0 %3379  ;;  %v8626_v39 = vpop.xlane.xlu1 %3256  ;;  %3862 = vxpose.xlu1.c.b16.cont [6/8] %v9830_v1, 128  ;;  %v3647_v15 = vmul.f32 %v6760_v2, %v3551_v35  ;;  %v3718_v52 = vadd.f32 %v8565_v62, %v3680_v18  ;;  %3781 = vst [vmem:[%s7242_s25 + $0x20] sm:$0xff] %v8624_v56  ;;  %v3460_v54 = vmul.f32 %v8616_v63, %v8616_v63  ;;  %v9836_v10 = vld [vmem:[#allocation61_spill] sm:$0xff] }
 0x525   : > { %3843 = vxpose.xlu0.c.b16.cont [3/8] %v9827_v30, 128  ;;  %6767 = vrsqrt.f32 %v3582_v3  ;;  %v3428_v61 = vmul.f32 0.0078125, %v3380_v20  ;;  %v3521_v19 = vmax.f32 %v3489_v33, 0.0  ;;  %v9832_v30 = vld [vmem:[#allocation38_spill] sm:$0xff]  ;;  %v9835_v3 = vld [vmem:[#allocation60_spill] sm:$0xff]  ;;  %v9851_v20 = vld [vmem:[#allocation45_spill] sm:$0xff] }
 0x526   : > { %v6762_v28 = vpop.eup %6761  ;;  %v3685_v53 = vmul.f32 %v8555_v11, %v3647_v15  ;;  %v8643_v41 = vadd.f32 %v3718_v52, %v9831_v46  ;;  %v9834_v59 = vpack.c.bf16 %v9832_v30, %v9833_v4  ;;  %v9837_v16 = vpack.c.bf16 %v9835_v3, %v9836_v10  ;;  %v9840_v4 = vld [vmem:[#allocation41_spill] sm:$0xff] }
 0x527   : > { %v3492_v2 = vsub.f32 %v3428_v61, %v3460_v54  ;;  %v3648_v35 = vmul.f32 %v6762_v28, %v3552_v34  ;;  %v3585_v18 = vadd.f32 1e-05, %v3521_v19  ;;  %v3549_v61 = vsub.f32 %v8365_v12, %v8549_v26  ;;  %v9838_v28 = vld [vmem:[#allocation73_spill] sm:$0xff] }
 0x528   : > { %v3247_v22 = vpop.xlane.xlu0 %3246  ;;  %v3265_v49 = vpop.xlane.xlu1 %3264  ;;  %3863 = vxpose.xlu1.c.b16.cont [7/8] %v9837_v16, 128  ;;  %v3723_v33 = vadd.f32 %v8565_v62, %v3685_v53  ;;  %3782 = vst [vmem:[%s7242_s25 + $0x28] sm:$0xff] %v8643_v41 }
 0x529   : > { %3844 = vxpose.xlu0.c.b16.cont [4/8] %v9834_v59, 128  ;;  %v3524_v1 = vmax.f32 %v3492_v2, 0.0  ;;  %v8656_v15 = vmul.f32 0.0078125, %v3247_v22  ;;  %v8658_v52 = vmul.f32 0.0078125, %v3265_v49  ;;  %v3686_v34 = vmul.f32 %v8555_v11, %v3648_v35  ;;  %v9839_v22 = vld [vmem:[#allocation40_spill] sm:$0xff]  ;;  %v9842_v59 = vld [vmem:[#allocation62_spill] sm:$0xff]  ;;  %v9843_v35 = vld [vmem:[#allocation63_spill] sm:$0xff] }
 0x52a   : > { %v6764_v54 = vpop.eup %6763  ;;  %6769 = vrsqrt.f32 %v3585_v18  ;;  %v8664_v19 = vadd.f32 %v3723_v33, %v9838_v28  ;;  %v9841_v49 = vpack.c.bf16 %v9839_v22, %v9840_v4  ;;  %v9844_v3 = vpack.c.bf16 %v9842_v59, %v9843_v35  ;;  %v9845_v33 = vld [vmem:[#allocation74_spill] sm:$0xff] }
 0x52b   : > { %v3588_v53 = vadd.f32 1e-05, %v3524_v1  ;;  %v3458_v46 = vmul.f32 %v8656_v15, %v8656_v15  ;;  %v3724_v12 = vadd.f32 %v8565_v62, %v3686_v34  ;;  %v3645_v26 = vmul.f32 %v6764_v54, %v3549_v61  ;;  %v9846_v61 = vld [vmem:[#allocation42_spill] sm:$0xff] }
 0x52c   : > { %v3376_v30 = vpop.xlane.xlu0 %3375  ;;  %v3394_v2 = vpop.xlane.xlu1 %3393  ;;  %3864 = vxpose.xlu1.c.b16.end [8/8] %v9844_v3, 128  ;;  %3787 = vst [vmem:[%s7242_s25 + $0x50] sm:$0xff] %v8664_v19  ;;  %v3467_v18 = vmul.f32 %v8658_v52, %v8658_v52  ;;  %v3555_v34 = vsub.f32 %v8374_v42, %v8578_v38  ;;  %v3550_v38 = vsub.f32 %v8371_v13, %v8576_v6 }
 0x52d   : > { %3845 = vxpose.xlu0.c.b16.cont [5/8] %v9841_v49, 128  ;;  %6771 = vrsqrt.f32 %v3588_v53  ;;  %v3426_v10 = vmul.f32 0.0078125, %v3376_v30  ;;  %v3435_v16 = vmul.f32 0.0078125, %v3394_v2  ;;  %v8680_v1 = vadd.f32 %v3724_v12, %v9845_v33  ;;  %v9847_v53 = vld [vmem:[#allocation43_spill] sm:$0xff] }
 0x52e   : > { %v3683_v28 = vmul.f32 %v8555_v11, %v3645_v26  ;;  %v9848_v35 = vpack.c.bf16 %v9846_v61, %v9847_v53 }
 0x52f   : > { %v3490_v22 = vsub.f32 %v3426_v10, %v3458_v46  ;;  %v3499_v4 = vsub.f32 %v3435_v16, %v3467_v18  ;;  %3788 = vst [vmem:[%s7242_s25 + $0x58] sm:$0xff] %v8680_v1  ;;  %v9849_v18 = vld [vmem:[#allocation71_spill] sm:$0xff] }
 0x530   : > { %v6766_v49 = vpop.eup %6765  ;;  %v8685_v59 = vpop.xlane.xlu0 %3258  ;;  %v3721_v46 = vadd.f32 %v8565_v62, %v3683_v28 }
 0x531   : > { %v3261_v54 = vpop.xlane.xlu1 %3260  ;;  %3846 = vxpose.xlu0.c.b16.cont [6/8] %v9848_v35, 128  ;;  %v3522_v2 = vmax.f32 %v3490_v22, 0.0  ;;  %v3531_v3 = vmax.f32 %v3499_v4, 0.0  ;;  %v3651_v26 = vmul.f32 %v6766_v49, %v3555_v34  ;;  %v9850_v35 = vld [vmem:[#allocation44_spill] sm:$0xff]  ;;  %v3553_v49 = vsub.f32 %v8385_v51, %v8599_v29 }
 0x532   : > { %v8695_v12 = vmul.f32 0.0078125, %v3261_v54  ;;  %v6768_v42 = vpop.eup %6767  ;;  %v8700_v10 = vadd.f32 %v3721_v46, %v9849_v18  ;;  %v9852_v9 = vpack.c.bf16 %v9850_v35, %v9851_v20 }
 0x533   : > { %v3586_v16 = vadd.f32 1e-05, %v3522_v2  ;;  %v3595_v33 = vadd.f32 1e-05, %v3531_v3  ;;  %v3689_v28 = vmul.f32 %v8555_v11, %v3651_v26  ;;  %v3646_v22 = vmul.f32 %v6768_v42, %v3550_v38  ;;  %v9853_v3 = vld [vmem:[#allocation46_spill] sm:$0xff]  ;;  %v9854_v42 = vld [vmem:[#allocation47_spill] sm:$0xff] }
 0x534   : > { %v3267_v61 = vpop.xlane.xlu0 %3266  ;;  %3785 = vst [vmem:[%s7242_s25 + $0x40] sm:$0xff] %v8700_v10  ;;  %v3465_v13 = vmul.f32 %v8695_v12, %v8695_v12  ;;  %v9855_v38 = vpack.c.bf16 %v9853_v3, %v9854_v42  ;;  %v9856_v26 = vld [vmem:[#allocation77_spill] sm:$0xff] }
 0x535   : > { %v3390_v53 = vpop.xlane.xlu1 %3389  ;;  %3847 = vxpose.xlu0.c.b16.cont [7/8] %v9852_v9, 128  ;;  %6773 = vrsqrt.f32 %v3586_v16  ;;  %v8710_v6 = vmul.f32 0.0078125, %v3267_v61  ;;  %v3727_v34 = vadd.f32 %v8565_v62, %v3689_v28  ;;  %v3684_v9 = vmul.f32 %v8555_v11, %v3646_v22 }
 0x536   : > { %v3433_v4 = vmul.f32 0.0078125, %v3390_v53  ;;  %6775 = vrsqrt.f32 %v3595_v33  ;;  %v3556_v28 = vsub.f32 %v8393_v23, %v8616_v63 }
 0x537   : > { %v6770_v20 = vpop.eup %6769  ;;  %v8720_v18 = vadd.f32 %v3727_v34, %v9856_v26  ;;  %v3722_v51 = vadd.f32 %v8565_v62, %v3684_v9  ;;  %v3468_v29 = vmul.f32 %v8710_v6, %v8710_v6  ;;  %v9858_v26 = vld [vmem:[#allocation75_spill] sm:$0xff] }
 0x538   : > { %v3497_v54 = vsub.f32 %v3433_v4, %v3465_v13  ;;  %v3396_v46 = vpop.xlane.xlu0 %3395  ;;  %v3649_v16 = vmul.f32 %v6770_v20, %v3553_v49  ;;  %v9857_v13 = vld [vmem:[#allocation72_spill] sm:$0xff] }
 0x539   : > { %v3273_v2 = vpop.xlane.xlu1 %3272  ;;  %3848 = vxpose.xlu0.c.b16.end [8/8] %v9855_v38, 128  ;;  %v3436_v61 = vmul.f32 0.0078125, %v3396_v46  ;;  %3791 = vst [vmem:[%s7242_s25 + $0x70] sm:$0xff] %v8720_v18  ;;  %v8733_v4 = vadd.f32 %v3722_v51, %v9857_v13 }
 0x53a   : > { %v3529_v33 = vmax.f32 %v3497_v54, 0.0  ;;  %v8725_v53 = vmul.f32 0.0078125, %v3273_v2  ;;  %v6772_v35 = vpop.eup %6771  ;;  %v3687_v22 = vmul.f32 %v8555_v11, %v3649_v16 }
 0x53b   : > { %v3500_v34 = vsub.f32 %v3436_v61, %v3468_v29  ;;  %v3652_v46 = vmul.f32 %v6772_v35, %v3556_v28  ;;  %3786 = vst [vmem:[%s7242_s25 + $0x48] sm:$0xff] %v8733_v4 }
 0x53c   : > { %v3593_v49 = vadd.f32 1e-05, %v3529_v33  ;;  %v3471_v9 = vmul.f32 %v8725_v53, %v8725_v53  ;;  %v3263_v20 = vpop.xlane.xlu0 %3262  ;;  %v3725_v2 = vadd.f32 %v8565_v62, %v3687_v22 }
 0x53d   : > { %v3402_v54 = vpop.xlane.xlu1 %3401  ;;  %v3532_v63 = vmax.f32 %v3500_v34, 0.0  ;;  %v8742_v3 = vmul.f32 0.0078125, %v3263_v20  ;;  %v3690_v38 = vmul.f32 %v8555_v11, %v3652_v46  ;;  %v3554_v20 = vsub.f32 %v8405_v55, %v8656_v15 }
 0x53e   : > { %6777 = vrsqrt.f32 %v3593_v49  ;;  %v3439_v42 = vmul.f32 0.0078125, %v3402_v54  ;;  %v8746_v16 = vadd.f32 %v3725_v2, %v9858_v26  ;;  %v9859_v54 = vld [vmem:[#allocation78_spill] sm:$0xff] }
 0x53f   : > { %v3596_v51 = vadd.f32 1e-05, %v3532_v63  ;;  %v3466_v33 = vmul.f32 %v8742_v3, %v8742_v3  ;;  %v3728_v28 = vadd.f32 %v8565_v62, %v3690_v38 }
 0x540   : > { %v3503_v29 = vsub.f32 %v3439_v42, %v3471_v9  ;;  %v3392_v61 = vpop.xlane.xlu0 %3391  ;;  %3789 = vst [vmem:[%s7242_s25 + $0x60] sm:$0xff] %v8746_v16  ;;  %v3563_v9 = vsub.f32 %v8408_v44, %v8658_v52 }
 0x541   : > { %v3269_v35 = vpop.xlane.xlu1 %3268  ;;  %6779 = vrsqrt.f32 %v3596_v51  ;;  %v3434_v13 = vmul.f32 0.0078125, %v3392_v61  ;;  %v8760_v46 = vadd.f32 %v3728_v28, %v9859_v54 }
 0x542   : > { %v3535_v22 = vmax.f32 %v3503_v29, 0.0  ;;  %v8753_v49 = vmul.f32 0.0078125, %v3269_v35  ;;  %v6774_v34 = vpop.eup %6773 }
 0x543   : > { %v6776_v2 = vpop.eup %6775  ;;  %v3498_v42 = vsub.f32 %v3434_v13, %v3466_v33  ;;  %3792 = vst [vmem:[%s7242_s25 + $0x78] sm:$0xff] %v8760_v46  ;;  %v3650_v29 = vmul.f32 %v6774_v34, %v3554_v20 }
 0x544   : > { %v3599_v63 = vadd.f32 1e-05, %v3535_v22  ;;  %v3469_v38 = vmul.f32 %v8753_v49, %v8753_v49  ;;  %v3275_v26 = vpop.xlane.xlu0 %3274  ;;  %v3659_v61 = vmul.f32 %v6776_v2, %v3563_v9  ;;  %v3561_v22 = vsub.f32 %v8420_v25, %v8695_v12 }
 0x545   : > { %v3398_v51 = vpop.xlane.xlu1 %3397  ;;  %v3530_v55 = vmax.f32 %v3498_v42, 0.0  ;;  %v8766_v15 = vmul.f32 0.0078125, %v3275_v26  ;;  %v3688_v52 = vmul.f32 %v8555_v11, %v3650_v29  ;;  %v9860_v26 = vld [vmem:[#allocation76_spill] sm:$0xff] }
 0x546   : > { %6781 = vrsqrt.f32 %v3599_v63  ;;  %v3437_v44 = vmul.f32 0.0078125, %v3398_v51  ;;  %v3697_v35 = vmul.f32 %v8555_v11, %v3659_v61  ;;  %v9861_v51 = vld [vmem:[#allocation85_spill] sm:$0xff] }
 0x547   : > { %v3594_v28 = vadd.f32 1e-05, %v3530_v55  ;;  %v3726_v34 = vadd.f32 %v8565_v62, %v3688_v52  ;;  %v3472_v9 = vmul.f32 %v8766_v15, %v8766_v15 }
 0x548   : > { %v3501_v33 = vsub.f32 %v3437_v44, %v3469_v38  ;;  %v3404_v13 = vpop.xlane.xlu0 %3403  ;;  %v3735_v20 = vadd.f32 %v8565_v62, %v3697_v35 }
 0x549   : > { %v3410_v54 = vpop.xlane.xlu1 %3409  ;;  %6783 = vrsqrt.f32 %v3594_v28  ;;  %v3440_v63 = vmul.f32 0.0078125, %v3404_v13  ;;  %v8777_v38 = vadd.f32 %v3726_v34, %v9860_v26  ;;  %v3564_v28 = vsub.f32 %v8425_v58, %v8710_v6 }
 0x54a   : > { %v3533_v2 = vmax.f32 %v3501_v33, 0.0  ;;  %v8780_v25 = vadd.f32 %v3735_v20, %v9861_v51  ;;  %v8790_v13 = vmul.f32 0.0078125, %v8626_v39  ;;  %v3567_v58 = vsub.f32 %v8431_v21, %v8725_v53  ;;  %v9862_v39 = vld [vmem:[#allocation83_spill] sm:$0xff] }
 0x54b   : > { %v6778_v42 = vpop.eup %6777  ;;  %v3504_v29 = vsub.f32 %v3440_v63, %v3472_v9  ;;  %3790 = vst [vmem:[%s7242_s25 + $0x68] sm:$0xff] %v8777_v38 }
 0x54c   : > { %v3597_v12 = vadd.f32 1e-05, %v3533_v2  ;;  %v3657_v61 = vmul.f32 %v6778_v42, %v3561_v22  ;;  %v3271_v55 = vpop.xlane.xlu0 %3270  ;;  %3799 = vst [vmem:[%s7242_s25 + $0xb0] sm:$0xff] %v8780_v25 }
 0x54d   : > { %v3277_v44 = vpop.xlane.xlu1 %3276  ;;  %v3536_v52 = vmax.f32 %v3504_v29, 0.0  ;;  %v8793_v63 = vmul.f32 0.0078125, %v3271_v55  ;;  %v3463_v29 = vmul.f32 %v8790_v13, %v8790_v13 }
 0x54e   : > { %6785 = vrsqrt.f32 %v3597_v12  ;;  %v6780_v35 = vpop.eup %6779  ;;  %v3695_v33 = vmul.f32 %v8555_v11, %v3657_v61  ;;  %v8804_v12 = vmul.f32 0.0078125, %v8522_v0  ;;  %v3443_v61 = vmul.f32 0.0078125, %v3410_v54 }
 0x54f   : > { %v3600_v34 = vadd.f32 1e-05, %v3536_v52  ;;  %v3660_v9 = vmul.f32 %v6780_v35, %v3564_v28  ;;  %v3562_v52 = vsub.f32 %v8437_v31, %v8742_v3  ;;  %v3470_v0 = vmul.f32 %v8793_v63, %v8793_v63  ;;  %v9863_v3 = vld [vmem:[#allocation86_spill] sm:$0xff] }
 0x550   : > { %v3281_v20 = vpop.xlane.xlu0 %3280  ;;  %v3733_v2 = vadd.f32 %v8565_v62, %v3695_v33  ;;  %v3447_v23 = vmul.f32 %v8804_v12, %v8804_v12 }
 0x551   : > { %v3283_v22 = vpop.xlane.xlu1 %3282  ;;  %6787 = vrsqrt.f32 %v3600_v34  ;;  %v8795_v42 = vmul.f32 0.0078125, %v3281_v20  ;;  %v3698_v6 = vmul.f32 %v8555_v11, %v3660_v9 }
 0x552   : > { %v8801_v51 = vadd.f32 %v3733_v2, %v9862_v39  ;;  %v8812_v35 = vmul.f32 0.0078125, %v3283_v22  ;;  %v8819_v2 = vmul.f32 0.0078125, %v3277_v44 }
 0x553   : > { %v6782_v26 = vpop.eup %6781  ;;  %v3475_v55 = vmul.f32 %v8795_v42, %v8795_v42  ;;  %v3736_v33 = vadd.f32 %v8565_v62, %v3698_v6 }
 0x554   : > { %v3400_v21 = vpop.xlane.xlu0 %3399  ;;  %v3663_v28 = vmul.f32 %v6782_v26, %v3567_v58  ;;  %3797 = vst [vmem:[%s7242_s25 + $0xa0] sm:$0xff] %v8801_v51 }
 0x555   : > { %v3386_v53 = vpop.xlane.xlu1 %3385  ;;  %v3507_v34 = vsub.f32 %v3443_v61, %v3475_v55  ;;  %v3438_v54 = vmul.f32 0.0078125, %v3400_v21  ;;  %v8823_v22 = vadd.f32 %v3736_v33, %v9863_v3  ;;  %v3565_v61 = vsub.f32 %v8443_v45, %v8753_v49  ;;  %v9864_v45 = vld [vmem:[#allocation89_spill] sm:$0xff] }
 0x556   : > { %v3431_v20 = vmul.f32 0.0078125, %v3386_v53  ;;  %v6784_v9 = vpop.eup %6783  ;;  %v3701_v31 = vmul.f32 %v8555_v11, %v3663_v28  ;;  %v3476_v55 = vmul.f32 %v8812_v35, %v8812_v35 }
 0x557   : > { %v3539_v26 = vmax.f32 %v3507_v34, 0.0  ;;  %v3502_v58 = vsub.f32 %v3438_v54, %v3470_v0  ;;  %v3658_v39 = vmul.f32 %v6784_v9, %v3562_v52  ;;  %3800 = vst [vmem:[%s7242_s25 + $0xb8] sm:$0xff] %v8823_v22  ;;  %v3473_v34 = vmul.f32 %v8819_v2, %v8819_v2 }
 0x558   : > { %v3495_v6 = vsub.f32 %v3431_v20, %v3463_v29  ;;  %v3412_v44 = vpop.xlane.xlu0 %3411  ;;  %v3739_v53 = vadd.f32 %v8565_v62, %v3701_v31 }
 0x559   : > { %v3406_v21 = vpop.xlane.xlu1 %3405  ;;  %v3603_v28 = vadd.f32 1e-05, %v3539_v26  ;;  %v3534_v33 = vmax.f32 %v3502_v58, 0.0  ;;  %v3444_v52 = vmul.f32 0.0078125, %v3412_v44  ;;  %v3696_v20 = vmul.f32 %v8555_v11, %v3658_v39 }
 0x55a   : > { %v3527_v29 = vmax.f32 %v3495_v6, 0.0  ;;  %v3441_v54 = vmul.f32 0.0078125, %v3406_v21  ;;  %v8837_v49 = vadd.f32 %v3739_v53, %v9864_v45  ;;  %v3568_v26 = vsub.f32 %v8449_v37, %v8766_v15  ;;  %v9865_v37 = vld [vmem:[#allocation84_spill] sm:$0xff] }
 0x55b   : > { %v6786_v0 = vpop.eup %6785  ;;  %6789 = vrsqrt.f32 %v3603_v28  ;;  %v3598_v9 = vadd.f32 1e-05, %v3534_v33  ;;  %v3508_v3 = vsub.f32 %v3444_v52, %v3476_v55  ;;  %v3734_v21 = vadd.f32 %v8565_v62, %v3696_v20 }
 0x55c   : > { %v3591_v31 = vadd.f32 1e-05, %v3527_v29  ;;  %v3505_v58 = vsub.f32 %v3441_v54, %v3473_v34  ;;  %v3279_v6 = vpop.xlane.xlu0 %3278  ;;  %3803 = vst [vmem:[%s7242_s25 + $0xd0] sm:$0xff] %v8837_v49  ;;  %v3661_v30 = vmul.f32 %v6786_v0, %v3565_v61  ;;  %v8852_v61 = vmul.f32 0.0078125, %v8685_v59  ;;  %v9866_v59 = vld [vmem:[#allocation87_spill] sm:$0xff] }
 0x55d   : > { %v3354_v44 = vpop.xlane.xlu1 %3353  ;;  %6791 = vrsqrt.f32 %v3598_v9  ;;  %v3540_v53 = vmax.f32 %v3508_v3, 0.0  ;;  %v8845_v45 = vmul.f32 0.0078125, %v3279_v6  ;;  %v8849_v15 = vadd.f32 %v3734_v21, %v9865_v37 }
 0x55e   : > { %v3415_v39 = vmul.f32 0.0078125, %v3354_v44  ;;  %v6788_v28 = vpop.eup %6787  ;;  %6793 = vrsqrt.f32 %v3591_v31  ;;  %v3537_v55 = vmax.f32 %v3505_v58, 0.0  ;;  %v3699_v33 = vmul.f32 %v8555_v11, %v3661_v30 }
 0x55f   : > { %v3604_v29 = vadd.f32 1e-05, %v3540_v53  ;;  %v3664_v20 = vmul.f32 %v6788_v28, %v3568_v26  ;;  %3798 = vst [vmem:[%s7242_s25 + $0xa8] sm:$0xff] %v8849_v15  ;;  %v3474_v30 = vmul.f32 %v8845_v45, %v8845_v45  ;;  %v8864_v26 = vmul.f32 0.0078125, %v8524_v57 }
 0x560   : > { %v3479_v52 = vsub.f32 %v3415_v39, %v3447_v23  ;;  %v3601_v0 = vadd.f32 1e-05, %v3537_v55  ;;  %v3408_v34 = vpop.xlane.xlu0 %3407  ;;  %v3737_v9 = vadd.f32 %v8565_v62, %v3699_v33  ;;  %v3464_v28 = vmul.f32 %v8852_v61, %v8852_v61 }
 0x561   : > { %v3253_v54 = vpop.xlane.xlu1 %3252  ;;  %6795 = vrsqrt.f32 %v3604_v29  ;;  %v3442_v3 = vmul.f32 0.0078125, %v3408_v34  ;;  %v3702_v23 = vmul.f32 %v8555_v11, %v3664_v20  ;;  %v9867_v29 = vld [vmem:[#allocation90_spill] sm:$0xff]  ;;  %v3571_v57 = vsub.f32 %v8452_v5, %v8795_v42 }
 0x562   : > { %v3511_v31 = vmax.f32 %v3479_v52, 0.0  ;;  %6797 = vrsqrt.f32 %v3601_v0  ;;  %v8861_v58 = vadd.f32 %v3737_v9, %v9866_v59  ;;  %v8871_v37 = vmul.f32 0.0078125, %v3253_v54 }
 0x563   : > { %v3506_v44 = vsub.f32 %v3442_v3, %v3474_v30  ;;  %v3740_v39 = vadd.f32 %v8565_v62, %v3702_v23  ;;  %v3448_v9 = vmul.f32 %v8864_v26, %v8864_v26  ;;  %v3566_v30 = vsub.f32 %v8462_v40, %v8793_v63 }
 0x564   : > { %v3575_v6 = vadd.f32 1e-05, %v3511_v31  ;;  %v3388_v21 = vpop.xlane.xlu0 %3387  ;;  %3801 = vst [vmem:[%s7242_s25 + $0xc0] sm:$0xff] %v8861_v58  ;;  %v3559_v42 = vsub.f32 %v8399_v27, %v8790_v13 }
 0x565   : > { %v3221_v53 = vpop.xlane.xlu1 %3220  ;;  %v3538_v55 = vmax.f32 %v3506_v44, 0.0  ;;  %v3432_v33 = vmul.f32 0.0078125, %v3388_v21  ;;  %v8874_v52 = vadd.f32 %v3740_v39, %v9867_v29  ;;  %v3461_v44 = vmul.f32 %v8871_v37, %v8871_v37 }
 0x566   : > { %6799 = vrsqrt.f32 %v3575_v6  ;;  %v8882_v31 = vmul.f32 0.0078125, %v3221_v53 }
 0x567   : > { %v3602_v0 = vadd.f32 1e-05, %v3538_v55  ;;  %v3496_v34 = vsub.f32 %v3432_v33, %v3464_v28  ;;  %3804 = vst [vmem:[%s7242_s25 + $0xd8] sm:$0xff] %v8874_v52  ;;  %v3569_v55 = vsub.f32 %v8465_v48, %v8819_v2  ;;  %v3572_v33 = vsub.f32 %v8470_v36, %v8812_v35 }
 0x568   : > { %v6790_v20 = vpop.eup %6789  ;;  %v3356_v3 = vpop.xlane.xlu0 %3355  ;;  %v3445_v13 = vmul.f32 %v8882_v31, %v8882_v31  ;;  %v3543_v36 = vsub.f32 %v8319_v8, %v8804_v12 }
 0x569   : > { %v3382_v54 = vpop.xlane.xlu1 %3381  ;;  %v3667_v23 = vmul.f32 %v6790_v20, %v3571_v57  ;;  %6801 = vrsqrt.f32 %v3602_v0  ;;  %v3528_v59 = vmax.f32 %v3496_v34, 0.0  ;;  %v3416_v6 = vmul.f32 0.0078125, %v3356_v3 }
 0x56a   : > { %v6792_v5 = vpop.eup %6791  ;;  %v3429_v21 = vmul.f32 0.0078125, %v3382_v54 }
 0x56b   : > { %v6794_v39 = vpop.eup %6793  ;;  %v3705_v40 = vmul.f32 %v8555_v11, %v3667_v23  ;;  %v3592_v63 = vadd.f32 1e-05, %v3528_v59  ;;  %v3480_v53 = vsub.f32 %v3416_v6, %v3448_v9  ;;  %v3662_v28 = vmul.f32 %v6792_v5, %v3566_v30 }
 0x56c   : > { %v3493_v29 = vsub.f32 %v3429_v21, %v3461_v44  ;;  %v3255_v57 = vpop.xlane.xlu0 %3254  ;;  %v3655_v27 = vmul.f32 %v6794_v39, %v3559_v42  ;;  %v9868_v42 = vld [vmem:[#allocation93_spill] sm:$0xff] }
 0x56d   : > { %v3350_v0 = vpop.xlane.xlu1 %3349  ;;  %6803 = vrsqrt.f32 %v3592_v63  ;;  %v3512_v34 = vmax.f32 %v3480_v53, 0.0  ;;  %v3743_v9 = vadd.f32 %v8565_v62, %v3705_v40  ;;  %v3700_v30 = vmul.f32 %v8555_v11, %v3662_v28 }
 0x56e   : > { %v3413_v20 = vmul.f32 0.0078125, %v3350_v0  ;;  %v6796_v3 = vpop.eup %6795  ;;  %v3525_v54 = vmax.f32 %v3493_v29, 0.0  ;;  %v3693_v48 = vmul.f32 %v8555_v11, %v3655_v27  ;;  %v8903_v39 = vmul.f32 0.0078125, %v3255_v57  ;;  %v9869_v57 = vld [vmem:[#allocation88_spill] sm:$0xff] }
 0x56f   : > { %v6798_v2 = vpop.eup %6797  ;;  %v3576_v35 = vadd.f32 1e-05, %v3512_v34  ;;  %v3668_v5 = vmul.f32 %v6796_v3, %v3572_v33  ;;  %v3775_v44 = vadd.f32 %v3743_v9, %v9868_v42  ;;  %v3738_v63 = vadd.f32 %v8565_v62, %v3700_v30 }
 0x570   : > { %v3477_v23 = vsub.f32 %v3413_v20, %v3445_v13  ;;  %v3589_v59 = vadd.f32 1e-05, %v3525_v54  ;;  %v3223_v6 = vpop.xlane.xlu0 %3222  ;;  %v3665_v21 = vmul.f32 %v6798_v2, %v3569_v55  ;;  %v3731_v12 = vadd.f32 %v8565_v62, %v3693_v48  ;;  %v9870_v20 = vld [vmem:[#allocation81_spill] sm:$0xff]  ;;  %v9871_v48 = vld [vmem:[#allocation94_spill] sm:$0xff] }
 0x571   : > { %6805 = vrsqrt.f32 %v3576_v35  ;;  %v3706_v28 = vmul.f32 %v8555_v11, %v3668_v5  ;;  %3807 = vst [vmem:[%s7242_s25 + $0xf0] sm:$0xff] %v3775_v44  ;;  %v3570_v55 = vsub.f32 %v8483_v7, %v8845_v45  ;;  %v8913_v0 = vadd.f32 %v3738_v63, %v9869_v57  ;;  %v9872_v35 = vld [vmem:[#allocation91_spill] sm:$0xff] }
 0x572   : > { %v3509_v40 = vmax.f32 %v3477_v23, 0.0  ;;  %6807 = vrsqrt.f32 %v3589_v59  ;;  %v3703_v8 = vmul.f32 %v8555_v11, %v3665_v21  ;;  %v3865_v33 = vpop.trf.xlu1  ;;  %v8918_v3 = vadd.f32 %v3731_v12, %v9870_v20 }
 0x573   : > { %v6800_v53 = vpop.eup %6799  ;;  %3905 = vmatprep.mubr.bf16.mxu0 %v3865_v33  ;;  %v3744_v13 = vadd.f32 %v8565_v62, %v3706_v28  ;;  %v3462_v9 = vmul.f32 %v8903_v39, %v8903_v39  ;;  %v8922_v7 = vmul.f32 0.0078125, %v3223_v6  ;;  %3802 = vst [vmem:[%s7242_s25 + $0xc8] sm:$0xff] %v8913_v0  ;;  %v3560_v42 = vsub.f32 %v8417_v14, %v8852_v61  ;;  %v9873_v14 = vld [vmem:[#allocation66_spill] sm:$0xff] }
 0x574   : > { %v3573_v29 = vadd.f32 1e-05, %v3509_v40  ;;  %v3384_v27 = vpop.xlane.xlu0 %3383  ;;  %v3741_v34 = vadd.f32 %v8565_v62, %v3703_v8  ;;  %v3639_v54 = vmul.f32 %v6800_v53, %v3543_v36  ;;  %3795 = vst [vmem:[%s7242_s25 + $0x90] sm:$0xff] %v8918_v3  ;;  %v3832_v40 = vpack.c.bf16 %v8760_v46, %v8720_v18 }
 0x575   : > { %v3430_v45 = vmul.f32 0.0078125, %v3384_v27  ;;  %v3776_v2 = vadd.f32 %v3744_v13, %v9871_v48  ;;  %v3446_v53 = vmul.f32 %v8922_v7, %v8922_v7  ;;  %v9874_v27 = vld [vmem:[#allocation92_spill] sm:$0xff] }
 0x576   : > { %6809 = vrsqrt.f32 %v3573_v29  ;;  %v6802_v30 = vpop.eup %6801  ;;  %v3773_v23 = vadd.f32 %v3741_v34, %v9872_v35  ;;  %v3677_v59 = vmul.f32 %v8555_v11, %v3639_v54  ;;  %v3544_v29 = vsub.f32 %v8325_v50, %v8864_v26 }
 0x577   : > { %v3494_v36 = vsub.f32 %v3430_v45, %v3462_v9  ;;  %v3666_v5 = vmul.f32 %v6802_v30, %v3570_v55  ;;  %3808 = vst [vmem:[%s7242_s25 + $0xf8] sm:$0xff] %v3776_v2  ;;  %v3840_v6 = vpack.c.bf16 %v3776_v2, %v3775_v44  ;;  %v3557_v54 = vsub.f32 %v8490_v24, %v8871_v37  ;;  %v9875_v37 = vld [vmem:[#allocation82_spill] sm:$0xff] }
 0x578   : > { %v3352_v21 = vpop.xlane.xlu0 %3351  ;;  %3805 = vst [vmem:[%s7242_s25 + $0xe0] sm:$0xff] %v3773_v23  ;;  %v3715_v63 = vadd.f32 %v8565_v62, %v3677_v59  ;;  %v3541_v26 = vsub.f32 %v8497_v60, %v8882_v31  ;;  %v3831_v2 = vpack.c.bf16 %v8777_v38, %v8746_v16  ;;  %v3838_v24 = vpack.c.bf16 %v8874_v52, %v8837_v49  ;;  %v9876_v52 = vld [vmem:[#allocation67_spill] sm:$0xff] }
 0x579   : > { %v3526_v28 = vmax.f32 %v3494_v36, 0.0  ;;  %v3414_v8 = vmul.f32 0.0078125, %v3352_v21  ;;  %v3704_v12 = vmul.f32 %v8555_v11, %v3666_v5  ;;  %5833 = vmatprep.subr.bf16.mxu0 %v3840_v6  ;;  %v3837_v49 = vpack.c.bf16 %v8913_v0, %v8861_v58  ;;  %v9878_v6 = vld [vmem:[#allocation79_spill] sm:$0xff] }
 0x57a   : > { %v6804_v33 = vpop.eup %6803  ;;  %v8942_v61 = vadd.f32 %v3715_v63, %v9873_v14  ;;  %5834 = vmatpush3.bf16.msra.mxu0 %v3832_v40  ;;  %v9877_v21 = vpack.c.bf16 %v8680_v1, %v8664_v19  ;;  %v3558_v58 = vsub.f32 %v8508_v17, %v8903_v39  ;;  %v3836_v0 = vpack.c.bf16 %v8823_v22, %v8780_v25 }
 0x57b   : > { %v3590_v44 = vadd.f32 1e-05, %v3526_v28  ;;  %v3478_v55 = vsub.f32 %v3414_v8, %v3446_v53  ;;  %v3742_v18 = vadd.f32 %v8565_v62, %v3704_v12  ;;  %v3656_v46 = vmul.f32 %v6804_v33, %v3560_v42  ;;  %v9879_v28 = vld [vmem:[#allocation64_spill] sm:$0xff] }
 0x57c   : > { %3779 = vst [vmem:[%s7242_s25 + $0x10] sm:$0xff] %v8942_v61  ;;  %v9880_v19 = vpack.c.bf16 %v8733_v4, %v8700_v10  ;;  %v3542_v33 = vsub.f32 %v8515_v43, %v8922_v7  ;;  %v3835_v17 = vpack.c.bf16 %v8849_v15, %v8801_v51  ;;  %v9881_v22 = vpack.c.bf16 %v8602_v32, %v8582_v47  ;;  %v9884_v15 = vld [vmem:[#allocation65_spill] sm:$0xff] }
 0x57d   : > { %6811 = vrsqrt.f32 %v3590_v44  ;;  %v3510_v57 = vmax.f32 %v3478_v55, 0.0  ;;  %v3774_v13 = vadd.f32 %v3742_v18, %v9874_v27  ;;  %v3694_v34 = vmul.f32 %v8555_v11, %v3656_v46  ;;  %v3866_v18 = vpop.trf.xlu1 }
 0x57e   : > { %v6806_v20 = vpop.eup %6805  ;;  %v9883_v51 = vpack.c.bf16 %v8643_v41, %v8624_v56 }
 0x57f   : > { %v6808_v9 = vpop.eup %6807  ;;  %v3574_v45 = vadd.f32 1e-05, %v3510_v57  ;;  %3806 = vst [vmem:[%s7242_s25 + $0xe8] sm:$0xff] %v3774_v13  ;;  %v3839_v30 = vpack.c.bf16 %v3774_v13, %v3773_v23  ;;  %v3732_v48 = vadd.f32 %v8565_v62, %v3694_v34  ;;  %v3640_v50 = vmul.f32 %v6806_v20, %v3544_v29 }
 0x580   : > { %v3653_v35 = vmul.f32 %v6808_v9, %v3557_v54 }
 0x581   : > { %6813 = vrsqrt.f32 %v3574_v45  ;;  %5835 = vmatprep.subr.bf16.mxu0 %v3839_v30  ;;  %v3764_v59 = vadd.f32 %v3732_v48, %v9875_v37  ;;  %v3678_v23 = vmul.f32 %v8555_v11, %v3640_v50  ;;  %v3867_v46 = vpop.trf.xlu1  ;;  %v3809_v30 = vld [vmem:[#allocation2 + $0x30] sm:$0xff] }
 0x582   : > { %5836 = vmatpush3.bf16.msra.mxu0 %v3831_v2  ;;  %v3691_v5 = vmul.f32 %v8555_v11, %v3653_v35  ;;  %v3810_v35 = vld [vmem:[#allocation2] sm:$0xff] }
 0x583   : > { %v6810_v36 = vpop.eup %6809  ;;  %5837 = vmatprep.subr.bf16.mxu0 %v3838_v24  ;;  %3796 = vst [vmem:[%s7242_s25 + $0x98] sm:$0xff] %v3764_v59  ;;  %v3716_v60 = vadd.f32 %v8565_v62, %v3678_v23  ;;  %v3834_v14 = vpack.c.bf16 %v3764_v59, %v8918_v3  ;;  %v3849_v3 = vpop.trf.xlu0 }
 0x584   : > { %v3637_v16 = vmul.f32 %v6810_v36, %v3541_v26  ;;  %v3729_v38 = vadd.f32 %v8565_v62, %v3691_v5  ;;  %v3811_v36 = vld [vmem:[#allocation2 + $0x58] sm:$0xff] }
 0x585   : > { %v3748_v31 = vadd.f32 %v3716_v60, %v9876_v52  ;;  %v3868_v41 = vpop.trf.xlu1 }
 0x586   : > { %v3675_v42 = vmul.f32 %v8555_v11, %v3637_v16  ;;  %5838 = vmatpush3.bf16.msra.mxu0 %v9877_v21  ;;  %v3761_v40 = vadd.f32 %v3729_v38, %v9878_v6  ;;  %v3813_v6 = vld [vmem:[#allocation2 + $0x50] sm:$0xff] }
 0x587   : > { %5839 = vmatprep.subr.bf16.mxu0 %v3837_v49  ;;  %3780 = vst [vmem:[%s7242_s25 + $0x18] sm:$0xff] %v3748_v31  ;;  %v3826_v63 = vpack.c.bf16 %v3748_v31, %v8942_v61  ;;  %v9882_v61 = vld [vmem:[#allocation80_spill] sm:$0xff]  ;;  %v3812_v49 = vld [vmem:[#allocation2 + $0x18] sm:$0xff] }
 0x588   : > { %v3713_v53 = vadd.f32 %v8565_v62, %v3675_v42  ;;  %3793 = vst [vmem:[%s7242_s25 + $0x80] sm:$0xff] %v3761_v40 }
 0x589   : > { %v3869_v29 = vpop.trf.xlu1 }
 0x58a   : > { %v3745_v8 = vadd.f32 %v3713_v53, %v9879_v28  ;;  %v6812_v12 = vpop.eup %6811  ;;  %5840 = vmatpush3.bf16.msra.mxu0 %v9880_v19 }
 0x58b   : > { %5841 = vmatprep.subr.bf16.mxu0 %v3836_v0  ;;  %v3654_v1 = vmul.f32 %v6812_v12, %v3558_v58  ;;  %v3814_v0 = vld [vmem:[#allocation2 + $0x68] sm:$0xff] }
 0x58c   : > { %3777 = vst [vmem:[%s7242_s25] sm:$0xff] %v3745_v8 }
 0x58d   : > { %v3692_v39 = vmul.f32 %v8555_v11, %v3654_v1  ;;  %v3870_v27 = vpop.trf.xlu1  ;;  %v3815_v1 = vld [vmem:[#allocation2 + $0x8] sm:$0xff] }
 0x58e   : > { %v6814_v25 = vpop.eup %6813  ;;  %5842 = vmatpush3.bf16.msra.mxu0 %v9881_v22  ;;  %v3816_v22 = vld [vmem:[#allocation2 + $0x48] sm:$0xff] }
 0x58f   : > { %5843 = vmatprep.subr.bf16.mxu0 %v3835_v17  ;;  %v3730_v10 = vadd.f32 %v8565_v62, %v3692_v39  ;;  %v3638_v4 = vmul.f32 %v6814_v25, %v3542_v33 }
 0x591   : > { %v3762_v44 = vadd.f32 %v3730_v10, %v9882_v61  ;;  %v3676_v43 = vmul.f32 %v8555_v11, %v3638_v4  ;;  %v3850_v11 = vpop.trf.xlu0  ;;  %v3871_v34 = vpop.trf.xlu1 }
 0x592   : > { %5844 = vmatpush3.bf16.msra.mxu0 %v9883_v51 }
 0x593   : > { %5845 = vmatprep.subr.bf16.mxu0 %v3834_v14  ;;  %3794 = vst [vmem:[%s7242_s25 + $0x88] sm:$0xff] %v3762_v44  ;;  %v3714_v47 = vadd.f32 %v8565_v62, %v3676_v43  ;;  %v3833_v32 = vpack.c.bf16 %v3762_v44, %v3761_v40  ;;  %v3817_v44 = vld [vmem:[#allocation2 + $0x40] sm:$0xff] }
 0x595   : > { %v3746_v7 = vadd.f32 %v3714_v47, %v9884_v15  ;;  %v3851_v56 = vpop.trf.xlu0  ;;  %v3872_v54 = vpop.trf.xlu1  ;;  %v3818_v15 = vld [vmem:[#allocation2 + $0x20] sm:$0xff] }
 0x596   : > { %5846 = vmatpush3.bf16.msra.mxu0 %v3826_v63 }
 0x597   : > { %5847 = vmatprep.subr.bf16.mxu0 %v3833_v32  ;;  %3778 = vst [vmem:[%s7242_s25 + $0x8] sm:$0xff] %v3746_v7  ;;  %v3825_v55 = vpack.c.bf16 %v3746_v7, %v3745_v8  ;;  %s9894_s25 = sld [smem:[#allocation104_spill]] (!%p5617_p8) }
 0x599   : > { %v3852_v62 = vpop.trf.xlu0 }
 0x59a   : > { %5848 = vmatpush3.bf16.msra.mxu0 %v3825_v55 }
 0x59d   : > { %3906 = vmatmul.mubr.bf16.vlgmr.msra.gmra.mxu0 %v3849_v3  ;;  %v3853_v57 = vpop.trf.xlu0 }
 0x59e   : > { %3913 = vmatprep.mubr.bf16.mxu0 %v3866_v18 }
 0x5a1   : > { %v3854_v13 = vpop.trf.xlu0 }
 0x5a5   : > { %3914 = vmatmul.mubr.bf16.gmra.mxu0 %v3850_v11  ;;  %v3855_v20 = vpop.trf.xlu0  ;;  %v3819_v11 = vld [vmem:[#allocation2 + $0x10] sm:$0xff] }
 0x5a6   : > { %3921 = vmatprep.mubr.bf16.mxu0 %v3867_v46 }
 0x5a9   : > { %v3856_v9 = vpop.trf.xlu0 }
 0x5ad   : > { %3922 = vmatmul.mubr.bf16.gmra.mxu0 %v3851_v56 }
 0x5ae   : > { %3929 = vmatprep.mubr.bf16.mxu0 %v3868_v41 }
 0x5b5   : > { %3930 = vmatmul.mubr.bf16.gmra.mxu0 %v3852_v62 }
 0x5b6   : > { %3937 = vmatprep.mubr.bf16.mxu0 %v3869_v29  ;;  %v3820_v29 = vld [vmem:[#allocation2 + $0x38] sm:$0xff] }
 0x5bd   : > { %3938 = vmatmul.mubr.bf16.gmra.mxu0 %v3853_v57 }
 0x5be   : > { %3945 = vmatprep.mubr.bf16.mxu0 %v3870_v27 }
 0x5c5   : > { %3946 = vmatmul.mubr.bf16.gmra.mxu0 %v3854_v13 }
 0x5c6   : > { %3953 = vmatprep.mubr.bf16.mxu0 %v3871_v34 }
 0x5cd   : > { %3954 = vmatmul.mubr.bf16.gmra.mxu0 %v3855_v20  ;;  %v3821_v20 = vld [vmem:[#allocation2 + $0x60] sm:$0xff] }
 0x5ce   : > { %3961 = vmatprep.mubr.bf16.mxu0 %v3872_v54 }
 0x5d5   : > { %3962 = vmatmul.mubr.bf16.gmra.mxu0 %v3856_v9 }
 0x65d   : > { %v5849_v45 = vpop.f32.mrf.mxu0 }
 0x65f   : > { %v5850_v48 = vpop.f32.mrf.mxu0 }
 0x660   : > { %v5851_v50 = vadd.f32 %v5850_v48, %v5849_v45  ;;  %v3822_v48 = vld [vmem:[#allocation2 + $0x70] sm:$0xff] }
 0x661   : > { %v5852_v26 = vpop.f32.mrf.mxu0 }
 0x662   : > { %v3970_v2 = vadd.f32 %v5851_v50, %v3809_v30 }
 0x663   : > { %v5853_v24 = vpop.f32.mrf.mxu0 }
 0x664   : > { %3986 = vst [vmem:[#allocation2 + $0x30] sm:$0xff] %v3970_v2  ;;  %v5854_v37 = vadd.f32 %v5853_v24, %v5852_v26  ;;  %v3823_v24 = vld [vmem:[#allocation2 + $0x78] sm:$0xff] }
 0x665   : > { %v5855_v59 = vpop.f32.mrf.mxu0 }
 0x666   : > { %v3971_v23 = vadd.f32 %v5854_v37, %v3810_v35 }
 0x667   : > { %v5856_v5 = vpop.f32.mrf.mxu0 }
 0x668   : > { %3987 = vst [vmem:[#allocation2] sm:$0xff] %v3971_v23  ;;  %v5857_v60 = vadd.f32 %v5856_v5, %v5855_v59  ;;  %v3824_v5 = vld [vmem:[#allocation2 + $0x28] sm:$0xff] }
 0x669   : > { %v5858_v16 = vpop.f32.mrf.mxu0 }
 0x66a   : > { %v3972_v38 = vadd.f32 %v5857_v60, %v3811_v36 }
 0x66b   : > { %v5859_v52 = vpop.f32.mrf.mxu0 }
 0x66c   : > { %3988 = vst [vmem:[#allocation2 + $0x58] sm:$0xff] %v3972_v38  ;;  %v5860_v31 = vadd.f32 %v5859_v52, %v5858_v16 }
 0x66d   : > { %v5861_v42 = vpop.f32.mrf.mxu0 }
 0x66e   : > { %v3973_v21 = vadd.f32 %v5860_v31, %v3812_v49 }
 0x66f   : > { %v5862_v40 = vpop.f32.mrf.mxu0 }
 0x670   : > { %3989 = vst [vmem:[#allocation2 + $0x18] sm:$0xff] %v3973_v21  ;;  %v5863_v63 = vadd.f32 %v5862_v40, %v5861_v42 }
 0x671   : > { %v5864_v53 = vpop.f32.mrf.mxu0 }
 0x672   : > { %v3974_v58 = vadd.f32 %v5863_v63, %v3813_v6 }
 0x673   : > { %v5865_v28 = vpop.f32.mrf.mxu0 }
 0x674   : > { %3990 = vst [vmem:[#allocation2 + $0x50] sm:$0xff] %v3974_v58  ;;  %v5866_v8 = vadd.f32 %v5865_v28, %v5864_v53 }
 0x675   : > { %v5867_v12 = vpop.f32.mrf.mxu0 }
 0x676   : > { %v3975_v19 = vadd.f32 %v5866_v8, %v3814_v0 }
 0x677   : > { %v5868_v33 = vpop.f32.mrf.mxu0 }
 0x678   : > { %3991 = vst [vmem:[#allocation2 + $0x68] sm:$0xff] %v3975_v19  ;;  %v5869_v17 = vadd.f32 %v5868_v33, %v5867_v12 }
 0x679   : > { %v5870_v39 = vpop.f32.mrf.mxu0 }
 0x67a   : > { %v3976_v25 = vadd.f32 %v5869_v17, %v3815_v1 }
 0x67b   : > { %v5871_v10 = vpop.f32.mrf.mxu0 }
 0x67c   : > { %3992 = vst [vmem:[#allocation2 + $0x8] sm:$0xff] %v3976_v25  ;;  %v5872_v4 = vadd.f32 %v5871_v10, %v5870_v39 }
 0x67d   : > { %v5873_v14 = vpop.f32.mrf.mxu0 }
 0x67e   : > { %v3977_v61 = vadd.f32 %v5872_v4, %v3816_v22 }
 0x67f   : > { %v5874_v43 = vpop.f32.mrf.mxu0 }
 0x680   : > { %3993 = vst [vmem:[#allocation2 + $0x48] sm:$0xff] %v3977_v61  ;;  %v5875_v51 = vadd.f32 %v5874_v43, %v5873_v14 }
 0x681   : > { %v5876_v47 = vpop.f32.mrf.mxu0 }
 0x682   : > { %v3978_v32 = vadd.f32 %v5875_v51, %v3817_v44 }
 0x683   : > { %v5877_v7 = vpop.f32.mrf.mxu0 }
 0x684   : > { %3994 = vst [vmem:[#allocation2 + $0x40] sm:$0xff] %v3978_v32  ;;  %v5878_v55 = vadd.f32 %v5877_v7, %v5876_v47 }
 0x685   : > { %v5879_v3 = vpop.f32.mrf.mxu0 }
 0x686   : > { %v3979_v18 = vadd.f32 %v5878_v55, %v3818_v15 }
 0x687   : > { %v5880_v46 = vpop.f32.mrf.mxu0 }
 0x688   : > { %3995 = vst [vmem:[#allocation2 + $0x20] sm:$0xff] %v3979_v18  ;;  %v5881_v56 = vadd.f32 %v5880_v46, %v5879_v3 }
 0x689   : > { %v5882_v41 = vpop.f32.mrf.mxu0 }
 0x68a   : > { %v3980_v62 = vadd.f32 %v5881_v56, %v3819_v11 }
 0x68b   : > { %v5883_v57 = vpop.f32.mrf.mxu0 }
 0x68c   : > { %3996 = vst [vmem:[#allocation2 + $0x10] sm:$0xff] %v3980_v62  ;;  %v5884_v27 = vadd.f32 %v5883_v57, %v5882_v41 }
 0x68d   : > { %v5885_v13 = vpop.f32.mrf.mxu0 }
 0x68e   : > { %v3981_v34 = vadd.f32 %v5884_v27, %v3820_v29 }
 0x68f   : > { %v5886_v54 = vpop.f32.mrf.mxu0 }
 0x690   : > { %3997 = vst [vmem:[#allocation2 + $0x38] sm:$0xff] %v3981_v34  ;;  %v5887_v9 = vadd.f32 %v5886_v54, %v5885_v13 }
 0x691   : > { %v5888_v45 = vpop.f32.mrf.mxu0 }
 0x692   : > { %v3982_v30 = vadd.f32 %v5887_v9, %v3821_v20 }
 0x693   : > { %v5889_v50 = vpop.f32.mrf.mxu0 }
 0x694   : > { %3998 = vst [vmem:[#allocation2 + $0x60] sm:$0xff] %v3982_v30  ;;  %v5890_v26 = vadd.f32 %v5889_v50, %v5888_v45 }
 0x695   : > { %v5891_v2 = vpop.f32.mrf.mxu0 }
 0x696   : > { %v3983_v35 = vadd.f32 %v5890_v26, %v3822_v48 }
 0x697   : > { %v5892_v37 = vpop.f32.mrf.mxu0 }
 0x698   : > { %3999 = vst [vmem:[#allocation2 + $0x70] sm:$0xff] %v3983_v35  ;;  %v5893_v59 = vadd.f32 %v5892_v37, %v5891_v2 }
 0x699   : > { %v5894_v23 = vpop.f32.mrf.mxu0 }
 0x69a   : > { %v3984_v36 = vadd.f32 %v5893_v59, %v3823_v24 }
 0x69b   : > { %v5895_v60 = vpop.f32.mrf.mxu0 }
 0x69c   : > { %4000 = vst [vmem:[#allocation2 + $0x78] sm:$0xff] %v3984_v36  ;;  %v5896_v16 = vadd.f32 %v5895_v60, %v5894_v23  ;;  %4005 = sbr.rel (%p5617_p8) target bundleno = 2637 (0xa4d), region = 120 }
 0x69e   : > { %v3985_v38 = vadd.f32 %v5896_v16, %v3824_v5 }
 0x6a0   : > { %4001 = vst [vmem:[#allocation2 + $0x28] sm:$0xff] %v3985_v38 }
 0x6a1   : > { %v6816_v49 = vld [vmem:[%s9578_s15 + $0x38] sm:$0xff]   ;;  %v6818_v42 = vld [vmem:[%s9578_s15 + $0x30] sm:$0xff]   ;;  %v6820_v6 = vld [vmem:[%s9578_s15 + $0x28] sm:$0xff]  }
 0x6a2   : > { %v9885_v52 = vld [vmem:[#allocation31_spill] sm:$0xff]  ;;  %6249 = vmatprep.subr.bf16.mxu0 %v6816_v49  ;;  %v6819_v21 = vld [vmem:[%s9577_s14 + $0x30] sm:$0xff]   ;;  %v6821_v40 = vld [vmem:[%s9577_s14 + $0x28] sm:$0xff]  }
 0x6a3   : > { %6297 = vmatprep.mubr.bf16.mxu1 %v9885_v52  ;;  %v6817_v31 = vld [vmem:[%s9577_s14 + $0x38] sm:$0xff]   ;;  %6250 = vmatpush3.bf16.msra.mxu0 %v6816_v49  ;;  %v6822_v63 = vld [vmem:[%s9578_s15 + $0x20] sm:$0xff]   ;;  %v6826_v28 = vld [vmem:[%s9578_s15 + $0x10] sm:$0xff]  }
 0x6a4   : > { %6281 = vmatprep.subr.bf16.mxu1 %v6817_v31  ;;  %6251 = vmatprep.subr.bf16.mxu0 %v6818_v42  ;;  %v6823_v53 = vld [vmem:[%s9577_s14 + $0x20] sm:$0xff]   ;;  %v6824_v58 = vld [vmem:[%s9578_s15 + $0x18] sm:$0xff]   ;;  %v4006_v8 = vld [vmem:[#allocation2 + $0x30] sm:$0xff] }
 0x6a5   : > { %6282 = vmatpush3.bf16.msra.mxu1 %v6817_v31  ;;  %v6825_v0 = vld [vmem:[%s9577_s14 + $0x18] sm:$0xff]   ;;  %v4007_v12 = vld [vmem:[#allocation2] sm:$0xff]  ;;  %v6827_v19 = vld [vmem:[%s9577_s14 + $0x10] sm:$0xff]  }
 0x6a6   : > { %6283 = vmatprep.subr.bf16.mxu1 %v6819_v21  ;;  %v4022_v1 = vpack.c.bf16 %v4007_v12, %v4006_v8  ;;  %v6828_v33 = vld [vmem:[%s9578_s15 + $0x8] sm:$0xff]   ;;  %v6830_v39 = vld [vmem:[%s9578_s15] sm:$0xff]   ;;  %v4008_v22 = vld [vmem:[#allocation2 + $0x58] sm:$0xff] }
 0x6a7   : > { %6252 = vmatpush3.bf16.msra.mxu0 %v6818_v42  ;;  %v6829_v17 = vld [vmem:[%s9577_s14 + $0x8] sm:$0xff]   ;;  %v6831_v25 = vld [vmem:[%s9577_s14] sm:$0xff]   ;;  %v4009_v10 = vld [vmem:[#allocation2 + $0x18] sm:$0xff] }
 0x6a8   : > { %6253 = vmatprep.subr.bf16.mxu0 %v6820_v6  ;;  %6265 = vmatprep.mubr.bf16.mxu0 %v4022_v1  ;;  %v4010_v4 = vld [vmem:[#allocation2 + $0x50] sm:$0xff]  ;;  %v4011_v14 = vld [vmem:[#allocation2 + $0x68] sm:$0xff]  ;;  %v4023_v61 = vpack.c.bf16 %v4009_v10, %v4008_v22  ;;  %v9887_v32 = vld [vmem:[#allocation27_spill] sm:$0xff] }
 0x6a9   : > { %6284 = vmatpush3.bf16.msra.mxu1 %v6819_v21  ;;  %v4024_v44 = vpack.c.bf16 %v4011_v14, %v4010_v4  ;;  %v9886_v43 = vld [vmem:[#allocation30_spill] sm:$0xff]  ;;  %v4012_v51 = vld [vmem:[#allocation2 + $0x8] sm:$0xff]  ;;  %v4014_v15 = vld [vmem:[#allocation2 + $0x40] sm:$0xff] }
 0x6aa   : > { %6285 = vmatprep.subr.bf16.mxu1 %v6821_v40  ;;  %v4013_v47 = vld [vmem:[#allocation2 + $0x48] sm:$0xff]  ;;  %v4015_v7 = vld [vmem:[#allocation2 + $0x20] sm:$0xff]  ;;  %v4016_v11 = vld [vmem:[#allocation2 + $0x10] sm:$0xff] }
 0x6ab   : > { %6254 = vmatpush3.bf16.msra.mxu0 %v6820_v6  ;;  %v4025_v55 = vpack.c.bf16 %v4013_v47, %v4012_v51  ;;  %v4026_v3 = vpack.c.bf16 %v4015_v7, %v4014_v15  ;;  %v9888_v18 = vld [vmem:[#allocation24_spill] sm:$0xff]  ;;  %v4017_v46 = vld [vmem:[#allocation2 + $0x38] sm:$0xff]  ;;  %v9889_v56 = vld [vmem:[#allocation21_spill] sm:$0xff] }
 0x6ac   : > { %6255 = vmatprep.subr.bf16.mxu0 %v6822_v63  ;;  %v4018_v41 = vld [vmem:[#allocation2 + $0x60] sm:$0xff]  ;;  %v4019_v62 = vld [vmem:[#allocation2 + $0x70] sm:$0xff]  ;;  %v4027_v29 = vpack.c.bf16 %v4017_v46, %v4016_v11  ;;  %v4020_v13 = vld [vmem:[#allocation2 + $0x78] sm:$0xff] }
 0x6ad   : > { %6286 = vmatpush3.bf16.msra.mxu1 %v6821_v40  ;;  %v4028_v57 = vpack.c.bf16 %v4019_v62, %v4018_v41  ;;  %v9890_v27 = vld [vmem:[#allocation18_spill] sm:$0xff]  ;;  %v4021_v34 = vld [vmem:[#allocation2 + $0x28] sm:$0xff]  ;;  %v9892_v9 = vld [vmem:[#allocation12_spill] sm:$0xff] }
 0x6ae   : > { %6287 = vmatprep.subr.bf16.mxu1 %v6823_v53  ;;  %v9891_v20 = vld [vmem:[#allocation13_spill] sm:$0xff]  ;;  %v4029_v54 = vpack.c.bf16 %v4021_v34, %v4020_v13  ;;  %v6832_v45 = vld [vmem:[%s9893_s16 + $0x38] sm:$0xff]   ;;  %v6833_v30 = vld [vmem:[%s9893_s16 + $0x30] sm:$0xff]  }
 0x6af   : > { %6256 = vmatpush3.bf16.msra.mxu0 %v6822_v63  ;;  %v6834_v48 = vld [vmem:[%s9893_s16 + $0x28] sm:$0xff]   ;;  %v6835_v50 = vld [vmem:[%s9893_s16 + $0x20] sm:$0xff]   ;;  %v6836_v26 = vld [vmem:[%s9893_s16 + $0x18] sm:$0xff]  }
 0x6b0   : > { %6257 = vmatprep.subr.bf16.mxu0 %v6824_v58  ;;  %v6837_v2 = vld [vmem:[%s9893_s16 + $0x10] sm:$0xff]   ;;  %v6838_v35 = vld [vmem:[%s9893_s16 + $0x8] sm:$0xff]   ;;  %v6839_v24 = vld [vmem:[%s9893_s16] sm:$0xff]  }
 0x6b1   : > { %6288 = vmatpush3.bf16.msra.mxu1 %v6823_v53  ;;  %v9091_v23 = vld [vmem:[%s9894_s25] ss:$0 sm:$0xff] }
 0x6b2   : > { %6289 = vmatprep.subr.bf16.mxu1 %v6825_v0 }
 0x6b3   : > { %6258 = vmatpush3.bf16.msra.mxu0 %v6824_v58 }
 0x6b4   : > { %6259 = vmatprep.subr.bf16.mxu0 %v6826_v28 }
 0x6b5   : > { %6290 = vmatpush3.bf16.msra.mxu1 %v6825_v0 }
 0x6b6   : > { %6291 = vmatprep.subr.bf16.mxu1 %v6827_v19 }
 0x6b7   : > { %6260 = vmatpush3.bf16.msra.mxu0 %v6826_v28 }
 0x6b8   : > { %6261 = vmatprep.subr.bf16.mxu0 %v6828_v33 }
 0x6b9   : > { %6292 = vmatpush3.bf16.msra.mxu1 %v6827_v19 }
 0x6ba   : > { %6293 = vmatprep.subr.bf16.mxu1 %v6829_v17 }
 0x6bb   : > { %6262 = vmatpush3.bf16.msra.mxu0 %v6828_v33 }
 0x6bc   : > { %6263 = vmatprep.subr.bf16.mxu0 %v6830_v39 }
 0x6bd   : > { %6294 = vmatpush3.bf16.msra.mxu1 %v6829_v17 }
 0x6be   : > { %6295 = vmatprep.subr.bf16.mxu1 %v6831_v25 }
 0x6bf   : > { %6264 = vmatpush3.bf16.msra.mxu0 %v6830_v39 }
 0x6c0   : > { %6313 = vmatprep.subr.bf16.mxu0 %v6832_v45 }
 0x6c1   : > { %6296 = vmatpush3.bf16.msra.mxu1 %v6831_v25 }
 0x6c2   : > { %6266 = vmatmul.mubr.bf16.vlgmr.msra.gmra.mxu0 %v4023_v61 }
 0x6c3   : > { %6269 = vmatprep.mubr.bf16.mxu0 %v4024_v44  ;;  %6314 = vmatpush3.bf16.msra.mxu0 %v6832_v45 }
 0x6c4   : > { %6298 = vmatmul.mubr.bf16.vlgmr.msra.gmra.mxu1 %v9886_v43  ;;  %6315 = vmatprep.subr.bf16.mxu0 %v6833_v30 }
 0x6c5   : > { %6301 = vmatprep.mubr.bf16.mxu1 %v9887_v32 }
 0x6c7   : > { %6316 = vmatpush3.bf16.msra.mxu0 %v6833_v30 }
 0x6c8   : > { %6317 = vmatprep.subr.bf16.mxu0 %v6834_v48 }
 0x6ca   : > { %6270 = vmatmul.mubr.bf16.gmra.mxu0 %v4025_v55 }
 0x6cb   : > { %6273 = vmatprep.mubr.bf16.mxu0 %v4026_v3  ;;  %6318 = vmatpush3.bf16.msra.mxu0 %v6834_v48 }
 0x6cc   : > { %6302 = vmatmul.mubr.bf16.gmra.mxu1 %v9888_v18  ;;  %6319 = vmatprep.subr.bf16.mxu0 %v6835_v50 }
 0x6cd   : > { %6305 = vmatprep.mubr.bf16.mxu1 %v9889_v56 }
 0x6cf   : > { %6320 = vmatpush3.bf16.msra.mxu0 %v6835_v50 }
 0x6d0   : > { %6321 = vmatprep.subr.bf16.mxu0 %v6836_v26 }
 0x6d2   : > { %6274 = vmatmul.mubr.bf16.gmra.mxu0 %v4027_v29 }
 0x6d3   : > { %6277 = vmatprep.mubr.bf16.mxu0 %v4028_v57  ;;  %6322 = vmatpush3.bf16.msra.mxu0 %v6836_v26 }
 0x6d4   : > { %6306 = vmatmul.mubr.bf16.gmra.mxu1 %v9890_v27  ;;  %6323 = vmatprep.subr.bf16.mxu0 %v6837_v2 }
 0x6d5   : > { %6309 = vmatprep.mubr.bf16.mxu1 %v9891_v20 }
 0x6d7   : > { %6324 = vmatpush3.bf16.msra.mxu0 %v6837_v2 }
 0x6d8   : > { %6325 = vmatprep.subr.bf16.mxu0 %v6838_v35 }
 0x6da   : > { %6278 = vmatmul.mubr.bf16.gmra.mxu0 %v4029_v54 }
 0x6db   : > { %6326 = vmatpush3.bf16.msra.mxu0 %v6838_v35 }
 0x6dc   : > { %6310 = vmatmul.mubr.bf16.gmra.mxu1 %v9892_v9  ;;  %6327 = vmatprep.subr.bf16.mxu0 %v6839_v24 }
 0x6df   : > { %6328 = vmatpush3.bf16.msra.mxu0 %v6839_v24 }
 0x782   : > { %v6267_v37 = vpop.f32.mrf.mxu0 }
 0x784   : > { %v6299_v59 = vpop.f32.mrf.mxu1  ;;  %v4144_v5 = vpop.f32.mrf.mxu0 }
 0x785   : > { %v4298_v36 = vadd.f32 %v6299_v59, %v6267_v37 }
 0x786   : > { %v4289_v60 = vpop.f32.mrf.mxu1  ;;  %v6268_v49 = vpop.f32.mrf.mxu0 }
 0x787   : > { %v9094_v16 = vadd.f32 %v9091_v23, %v4298_v36  ;;  %v4290_v38 = vadd.f32 %v4289_v60, %v4144_v5 }
 0x788   : > { %v6300_v52 = vpop.f32.mrf.mxu1  ;;  %v4147_v6 = vpop.f32.mrf.mxu0 }
 0x789   : > { %v5637_v31 = vmul.f32 -1.442695, %v9094_v16  ;;  %v9098_v42 = vadd.f32 %v9091_v23, %v4290_v38  ;;  %v4301_v21 = vadd.f32 %v6300_v52, %v6268_v49 }
 0x78a   : > { %v4292_v40 = vpop.f32.mrf.mxu1  ;;  %v6271_v0 = vpop.f32.mrf.mxu0 }
 0x78b   : > { %6848 = vpow2.f32 %v5637_v31  ;;  %v5635_v63 = vmul.f32 -1.442695, %v9098_v42  ;;  %v9102_v53 = vadd.f32 %v9091_v23, %v4301_v21  ;;  %v4293_v58 = vadd.f32 %v4292_v40, %v4147_v6 }
 0x78c   : > { %v6303_v28 = vpop.f32.mrf.mxu1  ;;  %v4160_v1 = vpop.f32.mrf.mxu0 }
 0x78d   : > { %6850 = vpow2.f32 %v5635_v63  ;;  %v5638_v8 = vmul.f32 -1.442695, %v9102_v53  ;;  %v9106_v12 = vadd.f32 %v9091_v23, %v4293_v58  ;;  %v4314_v19 = vadd.f32 %v6303_v28, %v6271_v0 }
 0x78e   : > { %v4305_v33 = vpop.f32.mrf.mxu1  ;;  %v6272_v22 = vpop.f32.mrf.mxu0 }
 0x78f   : > { %6852 = vpow2.f32 %v5638_v8  ;;  %v5636_v17 = vmul.f32 -1.442695, %v9106_v12  ;;  %v9110_v39 = vadd.f32 %v9091_v23, %v4314_v19  ;;  %v4306_v25 = vadd.f32 %v4305_v33, %v4160_v1 }
 0x790   : > { %v6304_v10 = vpop.f32.mrf.mxu1  ;;  %v4163_v44 = vpop.f32.mrf.mxu0 }
 0x791   : > { %6854 = vpow2.f32 %v5636_v17  ;;  %v5641_v4 = vmul.f32 -1.442695, %v9110_v39  ;;  %v9114_v14 = vadd.f32 %v9091_v23, %v4306_v25  ;;  %v4317_v61 = vadd.f32 %v6304_v10, %v6272_v22 }
 0x792   : > { %v4308_v43 = vpop.f32.mrf.mxu1  ;;  %v6275_v15 = vpop.f32.mrf.mxu0 }
 0x793   : > { %6856 = vpow2.f32 %v5641_v4  ;;  %v5639_v51 = vmul.f32 -1.442695, %v9114_v14  ;;  %v9118_v47 = vadd.f32 %v9091_v23, %v4317_v61  ;;  %v4309_v32 = vadd.f32 %v4308_v43, %v4163_v44 }
 0x794   : > { %v6307_v7 = vpop.f32.mrf.mxu1  ;;  %v4176_v11 = vpop.f32.mrf.mxu0 }
 0x795   : > { %6858 = vpow2.f32 %v5639_v51  ;;  %v5642_v55 = vmul.f32 -1.442695, %v9118_v47  ;;  %v9122_v3 = vadd.f32 %v9091_v23, %v4309_v32  ;;  %v4330_v18 = vadd.f32 %v6307_v7, %v6275_v15 }
 0x796   : > { %v4321_v46 = vpop.f32.mrf.mxu1  ;;  %v6276_v29 = vpop.f32.mrf.mxu0 }
 0x797   : > { %6860 = vpow2.f32 %v5642_v55  ;;  %v5640_v56 = vmul.f32 -1.442695, %v9122_v3  ;;  %v9126_v41 = vadd.f32 %v9091_v23, %v4330_v18  ;;  %v4322_v62 = vadd.f32 %v4321_v46, %v4176_v11 }
 0x798   : > { %v6849_v57 = vpop.eup %6848  ;;  %v6308_v27 = vpop.f32.mrf.mxu1 }
 0x799   : > { %v4425_v13 = vadd.f32 1.0, %v6849_v57  ;;  %6862 = vpow2.f32 %v5640_v56  ;;  %v5645_v34 = vmul.f32 -1.442695, %v9126_v41  ;;  %v9130_v20 = vadd.f32 %v9091_v23, %v4322_v62  ;;  %v4179_v54 = vpop.f32.mrf.mxu0 }
 0x79a   : > { %v6851_v9 = vpop.eup %6850  ;;  %v4333_v45 = vadd.f32 %v6308_v27, %v6276_v29  ;;  %v4324_v30 = vpop.f32.mrf.mxu1 }
 0x79b   : > { %6864 = vrcp.f32 %v4425_v13  ;;  %v4423_v48 = vadd.f32 1.0, %v6851_v9  ;;  %v5643_v50 = vmul.f32 -1.442695, %v9130_v20  ;;  %v4325_v26 = vadd.f32 %v4324_v30, %v4179_v54  ;;  %v6279_v2 = vpop.f32.mrf.mxu0 }
 0x79c   : > { %v6853_v35 = vpop.eup %6852  ;;  %6866 = vpow2.f32 %v5645_v34  ;;  %v9134_v24 = vadd.f32 %v9091_v23, %v4333_v45  ;;  %v6311_v37 = vpop.f32.mrf.mxu1 }
 0x79d   : > { %6868 = vrcp.f32 %v4423_v48  ;;  %v4426_v59 = vadd.f32 1.0, %v6853_v35  ;;  %v9137_v36 = vadd.f32 %v9091_v23, %v4325_v26  ;;  %v4346_v5 = vadd.f32 %v6311_v37, %v6279_v2  ;;  %v4192_v60 = vpop.f32.mrf.mxu0 }
 0x79e   : > { %v6855_v38 = vpop.eup %6854  ;;  %6870 = vpow2.f32 %v5643_v50  ;;  %v5646_v49 = vmul.f32 -1.442695, %v9134_v24  ;;  %v4337_v52 = vpop.f32.mrf.mxu1 }
 0x79f   : > { %6872 = vrcp.f32 %v4426_v59  ;;  %v4424_v31 = vadd.f32 1.0, %v6855_v38  ;;  %v5644_v21 = vmul.f32 -1.442695, %v9137_v36  ;;  %v9142_v6 = vadd.f32 %v9091_v23, %v4346_v5  ;;  %v6280_v40 = vpop.f32.mrf.mxu0 }
 0x7a0   : > { %v6857_v63 = vpop.eup %6856  ;;  %6874 = vpow2.f32 %v5646_v49  ;;  %v4338_v58 = vadd.f32 %v4337_v52, %v4192_v60  ;;  %v6312_v0 = vpop.f32.mrf.mxu1 }
 0x7a1   : > { %6876 = vrcp.f32 %v4424_v31  ;;  %v4429_v28 = vadd.f32 1.0, %v6857_v63  ;;  %v5649_v8 = vmul.f32 -1.442695, %v9142_v6  ;;  %v4349_v19 = vadd.f32 %v6312_v0, %v6280_v40  ;;  %v4195_v1 = vpop.f32.mrf.mxu0 }
 0x7a2   : > { %v6859_v33 = vpop.eup %6858  ;;  %6878 = vpow2.f32 %v5644_v21  ;;  %v9146_v17 = vadd.f32 %v9091_v23, %v4338_v58  ;;  %v4340_v25 = vpop.f32.mrf.mxu1 }
 0x7a3   : > { %6880 = vrcp.f32 %v4429_v28  ;;  %v4427_v22 = vadd.f32 1.0, %v6859_v33  ;;  %v9149_v10 = vadd.f32 %v9091_v23, %v4349_v19  ;;  %v4341_v4 = vadd.f32 %v4340_v25, %v4195_v1 }
 0x7a4   : > { %v6861_v61 = vpop.eup %6860  ;;  %6882 = vpow2.f32 %v5649_v8  ;;  %v5647_v44 = vmul.f32 -1.442695, %v9146_v17 }
 0x7a5   : > { %6884 = vrcp.f32 %v4427_v22  ;;  %v4430_v43 = vadd.f32 1.0, %v6861_v61  ;;  %v5650_v51 = vmul.f32 -1.442695, %v9149_v10  ;;  %v9154_v32 = vadd.f32 %v9091_v23, %v4341_v4 }
 0x7a6   : > { %v6863_v15 = vpop.eup %6862  ;;  %6886 = vpow2.f32 %v5647_v44 }
 0x7a7   : > { %6888 = vrcp.f32 %v4430_v43  ;;  %v4428_v7 = vadd.f32 1.0, %v6863_v15  ;;  %v5648_v55 = vmul.f32 -1.442695, %v9154_v32  ;;  %v6845_v15 = vld [vmem:[%s9895_s0 + $0x10] sm:$0xff]  }
 0x7a8   : > { %v6865_v18 = vpop.eup %6864  ;;  %6890 = vpow2.f32 %v5650_v51 }
 0x7a9   : > { %v6867_v11 = vpop.eup %6866  ;;  %6892 = vrcp.f32 %v4428_v7  ;;  %v4473_v48 = vmul.f32 %v6865_v18, %v9094_v16  ;;  %v6846_v7 = vld [vmem:[%s9895_s0 + $0x8] sm:$0xff]   ;;  %v9200_v18 = vld [vmem:[%s9896_s4] ss:$0 sm:$0xff] }
 0x7aa   : > { %v6869_v46 = vpop.eup %6868  ;;  %6894 = vpow2.f32 %v5648_v55  ;;  %v4433_v27 = vadd.f32 1.0, %v6867_v11  ;;  %v6847_v55 = vld [vmem:[%s9895_s0] sm:$0xff]  }
 0x7ab   : > { %v6871_v56 = vpop.eup %6870  ;;  %v4471_v9 = vmul.f32 %v6869_v46, %v9098_v42 }
 0x7ac   : > { %v6873_v62 = vpop.eup %6872  ;;  %v4431_v29 = vadd.f32 1.0, %v6871_v56 }
 0x7ad   : > { %v6875_v57 = vpop.eup %6874  ;;  %v4474_v23 = vmul.f32 %v6873_v62, %v9102_v53 }
 0x7ae   : > { %v6877_v13 = vpop.eup %6876  ;;  %v4434_v34 = vadd.f32 1.0, %v6875_v57  ;;  %6896 = vrcp.f32 %v4431_v29 }
 0x7af   : > { %v6879_v54 = vpop.eup %6878  ;;  %v4472_v45 = vmul.f32 %v6877_v13, %v9106_v12  ;;  %v4488_v37 = vpack.c.bf16 %v4474_v23, %v4473_v48 }
 0x7b0   : > { %v6881_v30 = vpop.eup %6880  ;;  %6898 = vrcp.f32 %v4434_v34  ;;  %v4432_v50 = vadd.f32 1.0, %v6879_v54 }
 0x7b1   : > { %v6883_v26 = vpop.eup %6882  ;;  %6900 = vrcp.f32 %v4433_v27  ;;  %v4487_v2 = vpack.c.bf16 %v4472_v45, %v4471_v9  ;;  %v4477_v21 = vmul.f32 %v6881_v30, %v9110_v39 }
 0x7b2   : > { %v6885_v35 = vpop.eup %6884  ;;  %6902 = vrcp.f32 %v4432_v50  ;;  %v4437_v60 = vadd.f32 1.0, %v6883_v26 }
 0x7b3   : > { %v6887_v59 = vpop.eup %6886  ;;  %6329 = vmatprep.mubr.bf16.mxu0 %v4487_v2  ;;  %v4475_v52 = vmul.f32 %v6885_v35, %v9114_v14 }
 0x7b4   : > { %v6889_v53 = vpop.eup %6888  ;;  %v4435_v5 = vadd.f32 1.0, %v6887_v59  ;;  %6330 = vmatmul.mubr.bf16.vlgmr.msra.gmra.mxu0 %v4488_v37 }
 0x7b5   : > { %v6891_v42 = vpop.eup %6890  ;;  %v4478_v38 = vmul.f32 %v6889_v53, %v9118_v47 }
 0x7b6   : > { %v6893_v12 = vpop.eup %6892  ;;  %v4438_v49 = vadd.f32 1.0, %v6891_v42  ;;  %6904 = vrcp.f32 %v4435_v5 }
 0x7b7   : > { %v6895_v16 = vpop.eup %6894  ;;  %v4476_v31 = vmul.f32 %v6893_v12, %v9122_v3  ;;  %v4490_v58 = vpack.c.bf16 %v4478_v38, %v4477_v21 }
 0x7b8   : > { %6906 = vrcp.f32 %v4438_v49  ;;  %v4436_v40 = vadd.f32 1.0, %v6895_v16 }
 0x7b9   : > { %6908 = vrcp.f32 %v4437_v60  ;;  %v4489_v63 = vpack.c.bf16 %v4476_v31, %v4475_v52 }
 0x7ba   : > { %6910 = vrcp.f32 %v4436_v40 }
 0x7bb   : > { %6333 = vmatprep.mubr.bf16.mxu0 %v4489_v63  ;;  %v6897_v0 = vpop.eup %6896 }
 0x7bc   : > { %6334 = vmatmul.mubr.bf16.gmra.mxu0 %v4490_v58  ;;  %v4479_v14 = vmul.f32 %v6897_v0, %v9130_v20 }
 0x7bd   : > { %v6899_v28 = vpop.eup %6898 }
 0x7be   : > { %v6901_v47 = vpop.eup %6900  ;;  %v4482_v19 = vmul.f32 %v6899_v28, %v9134_v24 }
 0x7bf   : > { %v6903_v8 = vpop.eup %6902  ;;  %v4481_v39 = vmul.f32 %v6901_v47, %v9126_v41  ;;  %v6840_v41 = vld [vmem:[%s9895_s0 + $0x38] sm:$0xff]  }
 0x7c0   : > { %v4480_v3 = vmul.f32 %v6903_v8, %v9137_v36  ;;  %6345 = vmatprep.subr.bf16.mxu1 %v6840_v41 }
 0x7c1   : > { %v4492_v33 = vpack.c.bf16 %v4482_v19, %v4481_v39  ;;  %6346 = vmatpush3.bf16.msra.mxu1 %v6840_v41 }
 0x7c2   : > { %v4491_v1 = vpack.c.bf16 %v4480_v3, %v4479_v14 }
 0x7c3   : > { %v6905_v25 = vpop.eup %6904 }
 0x7c4   : > { %6337 = vmatprep.mubr.bf16.mxu0 %v4491_v1  ;;  %v4483_v43 = vmul.f32 %v6905_v25, %v9146_v17  ;;  %v6843_v17 = vld [vmem:[%s9895_s0 + $0x20] sm:$0xff]  }
 0x7c5   : > { %v6907_v22 = vpop.eup %6906  ;;  %6338 = vmatmul.mubr.bf16.gmra.mxu0 %v4492_v33 }
 0x7c6   : > { %v6909_v4 = vpop.eup %6908  ;;  %v4486_v44 = vmul.f32 %v6907_v22, %v9149_v10  ;;  %v6841_v10 = vld [vmem:[%s9895_s0 + $0x30] sm:$0xff]  }
 0x7c7   : > { %v6911_v61 = vpop.eup %6910  ;;  %v4485_v20 = vmul.f32 %v6909_v4, %v9142_v6  ;;  %6347 = vmatprep.subr.bf16.mxu1 %v6841_v10  ;;  %v6842_v6 = vld [vmem:[%s9895_s0 + $0x28] sm:$0xff]  }
 0x7c8   : > { %v4484_v24 = vmul.f32 %v6911_v61, %v9154_v32  ;;  %6348 = vmatpush3.bf16.msra.mxu1 %v6841_v10  ;;  %v6844_v32 = vld [vmem:[%s9895_s0 + $0x18] sm:$0xff]  }
 0x7c9   : > { %v4494_v36 = vpack.c.bf16 %v4486_v44, %v4485_v20  ;;  %6349 = vmatprep.subr.bf16.mxu1 %v6842_v6 }
 0x7ca   : > { %v4493_v51 = vpack.c.bf16 %v4484_v24, %v4483_v43 }
 0x7cc   : > { %6341 = vmatprep.mubr.bf16.mxu0 %v4493_v51  ;;  %6350 = vmatpush3.bf16.msra.mxu1 %v6842_v6 }
 0x7cd   : > { %6342 = vmatmul.mubr.bf16.gmra.mxu0 %v4494_v36  ;;  %6351 = vmatprep.subr.bf16.mxu1 %v6843_v17 }
 0x7d0   : > { %6352 = vmatpush3.bf16.msra.mxu1 %v6843_v17 }
 0x7d1   : > { %6353 = vmatprep.subr.bf16.mxu1 %v6844_v32 }
 0x7d4   : > { %6354 = vmatpush3.bf16.msra.mxu1 %v6844_v32 }
 0x7d5   : > { %6355 = vmatprep.subr.bf16.mxu1 %v6845_v15 }
 0x7d8   : > { %6356 = vmatpush3.bf16.msra.mxu1 %v6845_v15 }
 0x7d9   : > { %6357 = vmatprep.subr.bf16.mxu1 %v6846_v7 }
 0x7dc   : > { %6358 = vmatpush3.bf16.msra.mxu1 %v6846_v7 }
 0x7dd   : > { %6359 = vmatprep.subr.bf16.mxu1 %v6847_v55 }
 0x7e0   : > { %6360 = vmatpush3.bf16.msra.mxu1 %v6847_v55 }
 0x874   : > { %v6331_v11 = vpop.f32.mrf.mxu0 }
 0x875   : > { %v9203_v46 = vadd.f32 %v6331_v11, %v9200_v18 }
 0x876   : > { %v4600_v56 = vpop.f32.mrf.mxu0 }
 0x877   : > { %v5662_v62 = vmul.f32 -1.442695, %v9203_v46  ;;  %v9207_v29 = vadd.f32 %v9200_v18, %v4600_v56 }
 0x878   : > { %v6332_v57 = vpop.f32.mrf.mxu0 }
 0x879   : > { %6912 = vpow2.f32 %v5662_v62  ;;  %v5660_v27 = vmul.f32 -1.442695, %v9207_v29  ;;  %v9211_v13 = vadd.f32 %v6332_v57, %v9200_v18 }
 0x87a   : > { %v4603_v23 = vpop.f32.mrf.mxu0 }
 0x87b   : > { %6914 = vpow2.f32 %v5660_v27  ;;  %v5663_v34 = vmul.f32 -1.442695, %v9211_v13  ;;  %v9215_v54 = vadd.f32 %v9200_v18, %v4603_v23 }
 0x87c   : > { %v6335_v9 = vpop.f32.mrf.mxu0 }
 0x87d   : > { %6916 = vpow2.f32 %v5663_v34  ;;  %v5661_v45 = vmul.f32 -1.442695, %v9215_v54  ;;  %v9219_v30 = vadd.f32 %v6335_v9, %v9200_v18 }
 0x87e   : > { %v4616_v48 = vpop.f32.mrf.mxu0 }
 0x87f   : > { %6918 = vpow2.f32 %v5661_v45  ;;  %v5666_v50 = vmul.f32 -1.442695, %v9219_v30  ;;  %v9223_v26 = vadd.f32 %v9200_v18, %v4616_v48 }
 0x880   : > { %v6336_v2 = vpop.f32.mrf.mxu0 }
 0x881   : > { %6920 = vpow2.f32 %v5666_v50  ;;  %v5664_v35 = vmul.f32 -1.442695, %v9223_v26  ;;  %v9227_v37 = vadd.f32 %v6336_v2, %v9200_v18 }
 0x882   : > { %v4619_v59 = vpop.f32.mrf.mxu0 }
 0x883   : > { %6922 = vpow2.f32 %v5664_v35  ;;  %v5667_v53 = vmul.f32 -1.442695, %v9227_v37  ;;  %v9231_v5 = vadd.f32 %v9200_v18, %v4619_v59 }
 0x885   : > { %6924 = vpow2.f32 %v5667_v53  ;;  %v5665_v42 = vmul.f32 -1.442695, %v9231_v5  ;;  %v6339_v60 = vpop.f32.mrf.mxu0 }
 0x886   : > { %v6913_v12 = vpop.eup %6912  ;;  %v9235_v38 = vadd.f32 %v6339_v60, %v9200_v18 }
 0x887   : > { %v4713_v49 = vadd.f32 1.0, %v6913_v12  ;;  %6926 = vpow2.f32 %v5665_v42  ;;  %v4632_v16 = vpop.f32.mrf.mxu0 }
 0x888   : > { %v6915_v52 = vpop.eup %6914  ;;  %v5670_v31 = vmul.f32 -1.442695, %v9235_v38  ;;  %v9239_v21 = vadd.f32 %v9200_v18, %v4632_v16 }
 0x889   : > { %6928 = vrcp.f32 %v4713_v49  ;;  %v4711_v40 = vadd.f32 1.0, %v6915_v52  ;;  %v6340_v63 = vpop.f32.mrf.mxu0 }
 0x88a   : > { %v6917_v58 = vpop.eup %6916  ;;  %6930 = vpow2.f32 %v5670_v31  ;;  %v5668_v0 = vmul.f32 -1.442695, %v9239_v21  ;;  %v9243_v28 = vadd.f32 %v6340_v63, %v9200_v18 }
 0x88b   : > { %6932 = vrcp.f32 %v4711_v40  ;;  %v4714_v47 = vadd.f32 1.0, %v6917_v58  ;;  %v4635_v8 = vpop.f32.mrf.mxu0 }
 0x88c   : > { %v6919_v19 = vpop.eup %6918  ;;  %6934 = vpow2.f32 %v5668_v0  ;;  %v5671_v14 = vmul.f32 -1.442695, %v9243_v28  ;;  %v9247_v3 = vadd.f32 %v9200_v18, %v4635_v8 }
 0x88d   : > { %6936 = vrcp.f32 %v4714_v47  ;;  %v4712_v39 = vadd.f32 1.0, %v6919_v19  ;;  %v6343_v1 = vpop.f32.mrf.mxu0 }
 0x88e   : > { %v6921_v33 = vpop.eup %6920  ;;  %6938 = vpow2.f32 %v5671_v14  ;;  %v5669_v25 = vmul.f32 -1.442695, %v9247_v3  ;;  %v9251_v22 = vadd.f32 %v6343_v1, %v9200_v18 }
 0x88f   : > { %6940 = vrcp.f32 %v4712_v39  ;;  %v4717_v4 = vadd.f32 1.0, %v6921_v33  ;;  %v4648_v61 = vpop.f32.mrf.mxu0 }
 0x890   : > { %v6923_v44 = vpop.eup %6922  ;;  %6942 = vpow2.f32 %v5669_v25  ;;  %v5674_v43 = vmul.f32 -1.442695, %v9251_v22  ;;  %v9255_v24 = vadd.f32 %v9200_v18, %v4648_v61 }
 0x891   : > { %6944 = vrcp.f32 %v4717_v4  ;;  %v4715_v20 = vadd.f32 1.0, %v6923_v44  ;;  %v6344_v51 = vpop.f32.mrf.mxu0 }
 0x892   : > { %v6925_v36 = vpop.eup %6924  ;;  %6946 = vpow2.f32 %v5674_v43  ;;  %v5672_v41 = vmul.f32 -1.442695, %v9255_v24  ;;  %v9259_v10 = vadd.f32 %v6344_v51, %v9200_v18 }
 0x893   : > { %6948 = vrcp.f32 %v4715_v20  ;;  %v4718_v6 = vadd.f32 1.0, %v6925_v36  ;;  %v4651_v17 = vpop.f32.mrf.mxu0 }
 0x894   : > { %v6927_v32 = vpop.eup %6926  ;;  %6950 = vpow2.f32 %v5672_v41  ;;  %v5675_v15 = vmul.f32 -1.442695, %v9259_v10  ;;  %v9263_v7 = vadd.f32 %v9200_v18, %v4651_v17 }
 0x895   : > { %6952 = vrcp.f32 %v4718_v6  ;;  %v4716_v55 = vadd.f32 1.0, %v6927_v32 }
 0x896   : > { %v6929_v11 = vpop.eup %6928  ;;  %6954 = vpow2.f32 %v5675_v15  ;;  %v5673_v56 = vmul.f32 -1.442695, %v9263_v7 }
 0x897   : > { %v6931_v62 = vpop.eup %6930  ;;  %6956 = vrcp.f32 %v4716_v55  ;;  %v4761_v42 = vmul.f32 %v6929_v11, %v9203_v46 }
 0x898   : > { %v6933_v57 = vpop.eup %6932  ;;  %6958 = vpow2.f32 %v5673_v56  ;;  %v4721_v45 = vadd.f32 1.0, %v6931_v62 }
 0x899   : > { %v6935_v27 = vpop.eup %6934  ;;  %v4759_v35 = vmul.f32 %v6933_v57, %v9207_v29 }
 0x89a   : > { %v6937_v23 = vpop.eup %6936  ;;  %v4719_v34 = vadd.f32 1.0, %v6935_v27 }
 0x89b   : > { %v6939_v9 = vpop.eup %6938  ;;  %v4762_v50 = vmul.f32 %v6937_v23, %v9211_v13 }
 0x89c   : > { %v6941_v48 = vpop.eup %6940  ;;  %v4722_v18 = vadd.f32 1.0, %v6939_v9  ;;  %6960 = vrcp.f32 %v4719_v34 }
 0x89d   : > { %v6943_v2 = vpop.eup %6942  ;;  %v4760_v59 = vmul.f32 %v6941_v48, %v9215_v54  ;;  %v4776_v52 = vpack.c.bf16 %v4762_v50, %v4761_v42 }
 0x89e   : > { %v6945_v53 = vpop.eup %6944  ;;  %6962 = vrcp.f32 %v4722_v18  ;;  %v4720_v60 = vadd.f32 1.0, %v6943_v2 }
 0x89f   : > { %v6947_v12 = vpop.eup %6946  ;;  %6964 = vrcp.f32 %v4721_v45  ;;  %v4775_v49 = vpack.c.bf16 %v4760_v59, %v4759_v35  ;;  %v4765_v19 = vmul.f32 %v6945_v53, %v9219_v30 }
 0x8a0   : > { %v6949_v16 = vpop.eup %6948  ;;  %6966 = vrcp.f32 %v4720_v60  ;;  %v4725_v63 = vadd.f32 1.0, %v6947_v12 }
 0x8a1   : > { %v6951_v31 = vpop.eup %6950  ;;  %6361 = vmatprep.mubr.bf16.mxu1 %v4775_v49  ;;  %v4763_v47 = vmul.f32 %v6949_v16, %v9223_v26 }
 0x8a2   : > { %v6953_v13 = vpop.eup %6952  ;;  %v4723_v40 = vadd.f32 1.0, %v6951_v31  ;;  %6362 = vmatmul.mubr.bf16.vlgmr.msra.gmra.mxu1 %v4776_v52 }
 0x8a3   : > { %v6955_v29 = vpop.eup %6954  ;;  %v4766_v58 = vmul.f32 %v6953_v13, %v9227_v37 }
 0x8a4   : > { %v6957_v54 = vpop.eup %6956  ;;  %v4726_v0 = vadd.f32 1.0, %v6955_v29  ;;  %6968 = vrcp.f32 %v4723_v40 }
 0x8a5   : > { %v6959_v46 = vpop.eup %6958  ;;  %v4764_v8 = vmul.f32 %v6957_v54, %v9231_v5  ;;  %v4778_v1 = vpack.c.bf16 %v4766_v58, %v4765_v19 }
 0x8a6   : > { %6970 = vrcp.f32 %v4726_v0  ;;  %v4724_v14 = vadd.f32 1.0, %v6959_v46 }
 0x8a7   : > { %6972 = vrcp.f32 %v4725_v63  ;;  %v4777_v39 = vpack.c.bf16 %v4764_v8, %v4763_v47 }
 0x8a8   : > { %6974 = vrcp.f32 %v4724_v14 }
 0x8a9   : > { %6365 = vmatprep.mubr.bf16.mxu1 %v4777_v39  ;;  %v6961_v33 = vpop.eup %6960 }
 0x8aa   : > { %6366 = vmatmul.mubr.bf16.gmra.mxu1 %v4778_v1  ;;  %v4767_v26 = vmul.f32 %v6961_v33, %v9239_v21 }
 0x8ab   : > { %v6963_v25 = vpop.eup %6962 }
 0x8ac   : > { %v6965_v37 = vpop.eup %6964  ;;  %v4770_v61 = vmul.f32 %v6963_v25, %v9243_v28 }
 0x8ad   : > { %v6967_v4 = vpop.eup %6966  ;;  %v4769_v30 = vmul.f32 %v6965_v37, %v9235_v38  ;;  %v9285_v38 = vld [vmem:[%s9897_s27] ss:$0 sm:$0xff] }
 0x8ae   : > { %v4768_v5 = vmul.f32 %v6967_v4, %v9247_v3 }
 0x8af   : > { %v4780_v43 = vpack.c.bf16 %v4770_v61, %v4769_v30 }
 0x8b0   : > { %v4779_v44 = vpack.c.bf16 %v4768_v5, %v4767_v26 }
 0x8b1   : > { %v6969_v20 = vpop.eup %6968 }
 0x8b2   : > { %6369 = vmatprep.mubr.bf16.mxu1 %v4779_v44  ;;  %v4771_v17 = vmul.f32 %v6969_v20, %v9255_v24 }
 0x8b3   : > { %v6971_v51 = vpop.eup %6970  ;;  %6370 = vmatmul.mubr.bf16.gmra.mxu1 %v4780_v43 }
 0x8b4   : > { %v6973_v36 = vpop.eup %6972  ;;  %v4774_v6 = vmul.f32 %v6971_v51, %v9259_v10 }
 0x8b5   : > { %v6975_v41 = vpop.eup %6974  ;;  %v4773_v21 = vmul.f32 %v6973_v36, %v9251_v22 }
 0x8b6   : > { %v4772_v28 = vmul.f32 %v6975_v41, %v9263_v7 }
 0x8b7   : > { %v4782_v3 = vpack.c.bf16 %v4774_v6, %v4773_v21 }
 0x8b8   : > { %v4781_v32 = vpack.c.bf16 %v4772_v28, %v4771_v17 }
 0x8ba   : > { %6373 = vmatprep.mubr.bf16.mxu1 %v4781_v32 }
 0x8bb   : > { %6374 = vmatmul.mubr.bf16.gmra.mxu1 %v4782_v3 }
 0x962   : > { %v6363_v15 = vpop.f32.mrf.mxu1 }
 0x963   : > { %v9288_v55 = vadd.f32 %v6363_v15, %v9285_v38 }
 0x964   : > { %v4888_v10 = vpop.f32.mrf.mxu1 }
 0x965   : > { %v9291_v24 = vadd.f32 %v9285_v38, %v4888_v10  ;;  %4957 = vadd.xlane.f32.xlu1 %v9288_v55  ;;  %v5003_v56 = vmul.f32 %v9288_v55, %v9288_v55 }
 0x966   : > { %v6364_v22 = vpop.f32.mrf.mxu1 }
 0x967   : > { %v9295_v7 = vadd.f32 %v6364_v22, %v9285_v38  ;;  %4953 = vadd.xlane.f32.xlu0 %v9291_v24  ;;  %v5001_v34 = vmul.f32 %v9291_v24, %v9291_v24 }
 0x968   : > { %v4891_v11 = vpop.f32.mrf.mxu1 }
 0x969   : > { %4959 = vadd.xlane.f32.xlu1 %v9295_v7  ;;  %v9302_v57 = vadd.f32 %v9285_v38, %v4891_v11  ;;  %v5004_v27 = vmul.f32 %v9295_v7, %v9295_v7 }
 0x96a   : > { %v6367_v62 = vpop.f32.mrf.mxu1 }
 0x96b   : > { %5021 = vadd.xlane.f32.xlu0 %v5003_v56  ;;  %v5002_v9 = vmul.f32 %v9302_v57, %v9302_v57  ;;  %v9315_v18 = vadd.f32 %v6367_v62, %v9285_v38 }
 0x96c   : > { %v4904_v23 = vpop.f32.mrf.mxu1 }
 0x96d   : > { %5023 = vadd.xlane.f32.xlu1 %v5004_v27  ;;  %v9323_v59 = vadd.f32 %v9285_v38, %v4904_v23  ;;  %v5007_v60 = vmul.f32 %v9315_v18, %v9315_v18 }
 0x96e   : > { %v6368_v45 = vpop.f32.mrf.mxu1 }
 0x96f   : > { %5017 = vadd.xlane.f32.xlu0 %v5001_v34  ;;  %v9311_v48 = vadd.f32 %v6368_v45, %v9285_v38  ;;  %v5005_v16 = vmul.f32 %v9323_v59, %v9323_v59 }
 0x970   : > { %v4907_v50 = vpop.f32.mrf.mxu1 }
 0x971   : > { %5019 = vadd.xlane.f32.xlu1 %v5002_v9  ;;  %v9319_v2 = vadd.f32 %v9285_v38, %v4907_v50  ;;  %v5008_v53 = vmul.f32 %v9311_v48, %v9311_v48 }
 0x973   : > { %4955 = vadd.xlane.f32.xlu0 %v9302_v57  ;;  %v6371_v35 = vpop.f32.mrf.mxu1  ;;  %v5006_v12 = vmul.f32 %v9319_v2, %v9319_v2 }
 0x974   : > { %v9339_v13 = vadd.f32 %v6371_v35, %v9285_v38 }
 0x975   : > { %4967 = vadd.xlane.f32.xlu1 %v9311_v48  ;;  %v4920_v42 = vpop.f32.mrf.mxu1 }
 0x976   : > { %v9347_v63 = vadd.f32 %v9285_v38, %v4920_v42  ;;  %v5011_v0 = vmul.f32 %v9339_v13, %v9339_v13 }
 0x977   : > { %4965 = vadd.xlane.f32.xlu0 %v9315_v18  ;;  %v6372_v49 = vpop.f32.mrf.mxu1 }
 0x978   : > { %v9336_v52 = vadd.f32 %v6372_v49, %v9285_v38  ;;  %v5009_v8 = vmul.f32 %v9347_v63, %v9347_v63 }
 0x979   : > { %4963 = vadd.xlane.f32.xlu1 %v9319_v2  ;;  %v4923_v31 = vpop.f32.mrf.mxu1 }
 0x97a   : > { %v9343_v40 = vadd.f32 %v9285_v38, %v4923_v31  ;;  %v5012_v54 = vmul.f32 %v9336_v52, %v9336_v52 }
 0x97b   : > { %4961 = vadd.xlane.f32.xlu0 %v9323_v59  ;;  %v6375_v29 = vpop.f32.mrf.mxu1 }
 0x97c   : > { %v5010_v46 = vmul.f32 %v9343_v40, %v9343_v40  ;;  %v9363_v39 = vadd.f32 %v6375_v29, %v9285_v38 }
 0x97d   : > { %5031 = vadd.xlane.f32.xlu1 %v5008_v53  ;;  %v4936_v58 = vpop.f32.mrf.mxu1 }
 0x97e   : > { %v9371_v33 = vadd.f32 %v9285_v38, %v4936_v58  ;;  %v5015_v61 = vmul.f32 %v9363_v39, %v9363_v39 }
 0x97f   : > { %5029 = vadd.xlane.f32.xlu0 %v5007_v60  ;;  %v6376_v47 = vpop.f32.mrf.mxu1 }
 0x980   : > { %v9360_v19 = vadd.f32 %v6376_v47, %v9285_v38  ;;  %v5013_v37 = vmul.f32 %v9371_v33, %v9371_v33 }
 0x981   : > { %5027 = vadd.xlane.f32.xlu1 %v5006_v12  ;;  %v4939_v14 = vpop.f32.mrf.mxu1 }
 0x982   : > { %v9367_v1 = vadd.f32 %v9285_v38, %v4939_v14  ;;  %v5016_v4 = vmul.f32 %v9360_v19, %v9360_v19 }
 0x983   : > { %5025 = vadd.xlane.f32.xlu0 %v5005_v16 }
 0x984   : > { %v5014_v25 = vmul.f32 %v9367_v1, %v9367_v1 }
 0x985   : > { %4975 = vadd.xlane.f32.xlu1 %v9336_v52 }
 0x987   : > { %4973 = vadd.xlane.f32.xlu0 %v9339_v13 }
 0x989   : > { %4971 = vadd.xlane.f32.xlu1 %v9343_v40 }
 0x98b   : > { %4969 = vadd.xlane.f32.xlu0 %v9347_v63 }
 0x98d   : > { %5039 = vadd.xlane.f32.xlu1 %v5012_v54 }
 0x98f   : > { %5037 = vadd.xlane.f32.xlu0 %v5011_v0 }
 0x991   : > { %5035 = vadd.xlane.f32.xlu1 %v5010_v46 }
 0x993   : > { %5033 = vadd.xlane.f32.xlu0 %v5009_v8 }
 0x995   : > { %4983 = vadd.xlane.f32.xlu1 %v9360_v19 }
 0x997   : > { %4981 = vadd.xlane.f32.xlu0 %v9363_v39 }
 0x999   : > { %4979 = vadd.xlane.f32.xlu1 %v9367_v1 }
 0x99b   : > { %4977 = vadd.xlane.f32.xlu0 %v9371_v33 }
 0x99d   : > { %5043 = vadd.xlane.f32.xlu1 %v5014_v25 }
 0x99f   : > { %5041 = vadd.xlane.f32.xlu0 %v5013_v37 }
 0x9a1   : > { %5047 = vadd.xlane.f32.xlu1 %v5016_v4 }
 0x9a3   : > { %5045 = vadd.xlane.f32.xlu0 %v5015_v61 }
 0x9ee   : > { %v4958_v26 = vpop.xlane.xlu1 %4957 }
 0x9ef   : > { %v4987_v30 = vmul.f32 0.0078125, %v4958_v26 }
 0x9f0   : > { %v4954_v5 = vpop.xlane.xlu0 %4953 }
 0x9f1   : > { %v5067_v51 = vmul.f32 %v4987_v30, %v4987_v30  ;;  %v9385_v36 = vmul.f32 0.0078125, %v4954_v5  ;;  %v5115_v14 = vsub.f32 %v9288_v55, %v4987_v30  ;;  %v9411_v5 = vld [vmem:[%s9898_s19] ss:$0 sm:$0xff] }
 0x9f2   : > { %v4960_v44 = vpop.xlane.xlu1 %4959 }
 0x9f3   : > { %v9383_v43 = vmul.f32 0.0078125, %v4960_v44  ;;  %v5065_v3 = vmul.f32 %v9385_v36, %v9385_v36 }
 0x9f4   : > { %v5022_v20 = vpop.xlane.xlu0 %5021 }
 0x9f5   : > { %v5051_v41 = vmul.f32 0.0078125, %v5022_v20  ;;  %v5068_v17 = vmul.f32 %v9383_v43, %v9383_v43  ;;  %v5116_v26 = vsub.f32 %v9295_v7, %v9383_v43  ;;  %v9420_v7 = vld [vmem:[%s9899_s6] ss:$0 sm:$0xff] }
 0x9f6   : > { %v5024_v6 = vpop.xlane.xlu1 %5023 }
 0x9f7   : > { %v5083_v28 = vsub.f32 %v5051_v41, %v5067_v51  ;;  %v5052_v21 = vmul.f32 0.0078125, %v5024_v6 }
 0x9f8   : > { %v5018_v32 = vpop.xlane.xlu0 %5017 }
 0x9f9   : > { %v5099_v38 = vmax.f32 %v5083_v28, 0.0  ;;  %v5084_v15 = vsub.f32 %v5052_v21, %v5068_v17  ;;  %v5049_v10 = vmul.f32 0.0078125, %v5018_v32  ;;  %v5113_v17 = vsub.f32 %v9291_v24, %v9385_v36 }
 0x9fa   : > { %v5020_v22 = vpop.xlane.xlu1 %5019 }
 0x9fb   : > { %v5131_v11 = vadd.f32 1e-05, %v5099_v38  ;;  %v5100_v56 = vmax.f32 %v5084_v15, 0.0  ;;  %v5081_v62 = vsub.f32 %v5049_v10, %v5065_v3  ;;  %v5050_v35 = vmul.f32 0.0078125, %v5020_v22 }
 0x9fc   : > { %v4956_v27 = vpop.xlane.xlu0 %4955 }
 0x9fd   : > { %6976 = vrsqrt.f32 %v5131_v11  ;;  %v5132_v23 = vadd.f32 1e-05, %v5100_v56  ;;  %v5097_v34 = vmax.f32 %v5081_v62, 0.0  ;;  %v9391_v9 = vmul.f32 0.0078125, %v4956_v27 }
 0x9fe   : > { %v4968_v45 = vpop.xlane.xlu1 %4967 }
 0x9ff   : > { %6978 = vrsqrt.f32 %v5132_v23  ;;  %v5129_v50 = vadd.f32 1e-05, %v5097_v34  ;;  %v5066_v53 = vmul.f32 %v9391_v9, %v9391_v9  ;;  %v9395_v16 = vmul.f32 0.0078125, %v4968_v45 }
 0xa00   : > { %v4966_v42 = vpop.xlane.xlu0 %4965 }
 0xa01   : > { %6980 = vrsqrt.f32 %v5129_v50  ;;  %v5082_v60 = vsub.f32 %v5050_v35, %v5066_v53  ;;  %v9397_v54 = vmul.f32 0.0078125, %v4966_v42  ;;  %v5072_v0 = vmul.f32 %v9395_v16, %v9395_v16  ;;  %v9900_v50 = vld [vmem:[#allocation25_spill] sm:$0xff] }
 0xa02   : > { %v4964_v12 = vpop.xlane.xlu1 %4963 }
 0xa03   : > { %v5098_v49 = vmax.f32 %v5082_v60, 0.0  ;;  %v9401_v47 = vmul.f32 0.0078125, %v4964_v12  ;;  %v5071_v25 = vmul.f32 %v9397_v54, %v9397_v54 }
 0xa04   : > { %v4962_v31 = vpop.xlane.xlu0 %4961 }
 0xa05   : > { %v5130_v29 = vadd.f32 1e-05, %v5098_v49  ;;  %v9413_v44 = vmul.f32 0.0078125, %v4962_v31  ;;  %v5070_v43 = vmul.f32 %v9401_v47, %v9401_v47  ;;  %v9901_v31 = vld [vmem:[#allocation26_spill] sm:$0xff] }
 0xa06   : > { %v5032_v58 = vpop.xlane.xlu1 %5031 }
 0xa07   : > { %6982 = vrsqrt.f32 %v5130_v29  ;;  %v5056_v46 = vmul.f32 0.0078125, %v5032_v58  ;;  %v5069_v10 = vmul.f32 %v9413_v44, %v9413_v44 }
 0xa08   : > { %v5030_v8 = vpop.xlane.xlu0 %5029 }
 0xa09   : > { %v5088_v37 = vsub.f32 %v5056_v46, %v5072_v0  ;;  %v5055_v4 = vmul.f32 0.0078125, %v5030_v8  ;;  %v5114_v0 = vsub.f32 %v9302_v57, %v9391_v9 }
 0xa0a   : > { %v6977_v61 = vpop.eup %6976  ;;  %v5028_v20 = vpop.xlane.xlu1 %5027 }
 0xa0b   : > { %v5163_v51 = vmul.f32 %v6977_v61, %v5115_v14  ;;  %v5104_v41 = vmax.f32 %v5088_v37, 0.0  ;;  %v5087_v55 = vsub.f32 %v5055_v4, %v5071_v25  ;;  %v5054_v30 = vmul.f32 0.0078125, %v5028_v20  ;;  %v9902_v37 = vld [vmem:[#allocation28_spill] sm:$0xff] }
 0xa0c   : > { %v6979_v6 = vpop.eup %6978  ;;  %v5026_v28 = vpop.xlane.xlu0 %5025 }
 0xa0d   : > { %v5185_v21 = vmul.f32 %v9411_v5, %v5163_v51  ;;  %v5164_v32 = vmul.f32 %v6979_v6, %v5116_v26  ;;  %v5136_v3 = vadd.f32 1e-05, %v5104_v41  ;;  %v5103_v38 = vmax.f32 %v5087_v55, 0.0 }
 0xa0e   : > { %v6981_v15 = vpop.eup %6980  ;;  %v5086_v22 = vsub.f32 %v5054_v30, %v5070_v43  ;;  %v5053_v24 = vmul.f32 0.0078125, %v5026_v28  ;;  %v4976_v36 = vpop.xlane.xlu1 %4975  ;;  %v5120_v28 = vsub.f32 %v9311_v48, %v9395_v16  ;;  %v5119_v48 = vsub.f32 %v9315_v18, %v9397_v54 }
 0xa0f   : > { %v5207_v11 = vadd.f32 %v9420_v7, %v5185_v21  ;;  %v5186_v56 = vmul.f32 %v9411_v5, %v5164_v32  ;;  %v5161_v62 = vmul.f32 %v6981_v15, %v5113_v17  ;;  %6984 = vrsqrt.f32 %v5136_v3 }
 0xa10   : > { %v5135_v27 = vadd.f32 1e-05, %v5103_v38  ;;  %v5102_v23 = vmax.f32 %v5086_v22, 0.0  ;;  %v5085_v34 = vsub.f32 %v5053_v24, %v5069_v10  ;;  %v4974_v45 = vpop.xlane.xlu0 %4973  ;;  %v9437_v46 = vmul.f32 0.0078125, %v4976_v36  ;;  %v9903_v38 = vld [vmem:[#allocation29_spill] sm:$0xff] }
 0xa11   : > { %v5223_v35 = vadd.f32 %v5207_v11, %v9900_v50  ;;  %v5208_v53 = vadd.f32 %v9420_v7, %v5186_v56  ;;  %v5183_v42 = vmul.f32 %v9411_v5, %v5161_v62  ;;  %v9441_v26 = vmul.f32 0.0078125, %v4974_v45 }
 0xa12   : > { %6986 = vrsqrt.f32 %v5135_v27  ;;  %v5134_v60 = vadd.f32 1e-05, %v5102_v23  ;;  %v5101_v12 = vmax.f32 %v5085_v34, 0.0  ;;  %v4972_v49 = vpop.xlane.xlu1 %4971  ;;  %v5076_v57 = vmul.f32 %v9437_v46, %v9437_v46 }
 0xa13   : > { %5239 = vst [vmem:[%s7222_s29 + $0x10] sm:$0xff] %v5223_v35  ;;  %v5224_v29 = vadd.f32 %v5208_v53, %v9901_v31  ;;  %v5205_v58 = vadd.f32 %v9420_v7, %v5183_v42  ;;  %v9443_v20 = vmul.f32 0.0078125, %v4972_v49  ;;  %v5075_v6 = vmul.f32 %v9441_v26, %v9441_v26 }
 0xa14   : > { %v6983_v8 = vpop.eup %6982  ;;  %6988 = vrsqrt.f32 %v5134_v60  ;;  %v5133_v14 = vadd.f32 1e-05, %v5101_v12  ;;  %v4970_v25 = vpop.xlane.xlu0 %4969  ;;  %v5118_v60 = vsub.f32 %v9319_v2, %v9401_v47 }
 0xa15   : > { %5240 = vst [vmem:[%s7222_s29 + $0x18] sm:$0xff] %v5224_v29  ;;  %v5221_v4 = vadd.f32 %v5205_v58, %v9902_v37  ;;  %v5162_v61 = vmul.f32 %v6983_v8, %v5114_v0  ;;  %v5074_v21 = vmul.f32 %v9443_v20, %v9443_v20  ;;  %v9456_v32 = vmul.f32 0.0078125, %v4970_v25 }
 0xa16   : > { %6990 = vrsqrt.f32 %v5133_v14  ;;  %v5040_v51 = vpop.xlane.xlu1 %5039  ;;  %v5117_v58 = vsub.f32 %v9323_v59, %v9413_v44  ;;  %v9905_v44 = vld [vmem:[#allocation19_spill] sm:$0xff] }
 0xa17   : > { %5237 = vst [vmem:[%s7222_s29] sm:$0xff] %v5221_v4  ;;  %v5184_v41 = vmul.f32 %v9411_v5, %v5162_v61  ;;  %v5060_v9 = vmul.f32 0.0078125, %v5040_v51  ;;  %v5073_v16 = vmul.f32 %v9456_v32, %v9456_v32  ;;  %v9904_v4 = vld [vmem:[#allocation20_spill] sm:$0xff] }
 0xa18   : > { %v5038_v55 = vpop.xlane.xlu0 %5037 }
 0xa19   : > { %v5206_v30 = vadd.f32 %v9420_v7, %v5184_v41  ;;  %v5092_v17 = vsub.f32 %v5060_v9, %v5076_v57  ;;  %v5059_v43 = vmul.f32 0.0078125, %v5038_v55 }
 0xa1a   : > { %v5036_v3 = vpop.xlane.xlu1 %5035 }
 0xa1b   : > { %v5222_v15 = vadd.f32 %v5206_v30, %v9903_v38  ;;  %v5108_v10 = vmax.f32 %v5092_v17, 0.0  ;;  %v5091_v22 = vsub.f32 %v5059_v43, %v5075_v6  ;;  %v5058_v24 = vmul.f32 0.0078125, %v5036_v3 }
 0xa1c   : > { %v6985_v36 = vpop.eup %6984  ;;  %v5034_v11 = vpop.xlane.xlu0 %5033 }
 0xa1d   : > { %5238 = vst [vmem:[%s7222_s29 + $0x8] sm:$0xff] %v5222_v15  ;;  %v5168_v56 = vmul.f32 %v6985_v36, %v5120_v28  ;;  %v5140_v62 = vadd.f32 1e-05, %v5108_v10  ;;  %v5107_v27 = vmax.f32 %v5091_v22, 0.0  ;;  %v5090_v23 = vsub.f32 %v5058_v24, %v5074_v21  ;;  %v9906_v28 = vld [vmem:[#allocation23_spill] sm:$0xff]  ;;  %v9907_v36 = vld [vmem:[#allocation22_spill] sm:$0xff] }
 0xa1e   : > { %v5057_v34 = vmul.f32 0.0078125, %v5034_v11  ;;  %v4984_v45 = vpop.xlane.xlu1 %4983 }
 0xa1f   : > { %v6987_v50 = vpop.eup %6986  ;;  %v5190_v35 = vmul.f32 %v9411_v5, %v5168_v56  ;;  %6992 = vrsqrt.f32 %v5140_v62  ;;  %v5139_v53 = vadd.f32 1e-05, %v5107_v27  ;;  %v5106_v42 = vmax.f32 %v5090_v23, 0.0 }
 0xa20   : > { %v5167_v12 = vmul.f32 %v6987_v50, %v5119_v48  ;;  %v5089_v49 = vsub.f32 %v5057_v34, %v5073_v16  ;;  %v4982_v31 = vpop.xlane.xlu0 %4981  ;;  %v9482_v43 = vmul.f32 0.0078125, %v4984_v45  ;;  %v5124_v23 = vsub.f32 %v9336_v52, %v9437_v46 }
 0xa21   : > { %v6989_v29 = vpop.eup %6988  ;;  %v5212_v18 = vadd.f32 %v9420_v7, %v5190_v35  ;;  %6994 = vrsqrt.f32 %v5139_v53  ;;  %v5138_v54 = vadd.f32 1e-05, %v5106_v42  ;;  %v9493_v56 = vmul.f32 0.0078125, %v4982_v31 }
 0xa22   : > { %v5189_v0 = vmul.f32 %v9411_v5, %v5167_v12  ;;  %v5166_v8 = vmul.f32 %v6989_v29, %v5118_v60  ;;  %v5105_v14 = vmax.f32 %v5089_v49, 0.0  ;;  %v4980_v25 = vpop.xlane.xlu1 %4979  ;;  %v5080_v48 = vmul.f32 %v9482_v43, %v9482_v43 }
 0xa23   : > { %v6991_v37 = vpop.eup %6990  ;;  %v5228_v2 = vadd.f32 %v5212_v18, %v9904_v4  ;;  %6996 = vrsqrt.f32 %v5138_v54  ;;  %v9475_v9 = vmul.f32 0.0078125, %v4980_v25  ;;  %v5123_v50 = vsub.f32 %v9339_v13, %v9441_v26 }
 0xa24   : > { %v5211_v47 = vadd.f32 %v9420_v7, %v5189_v0  ;;  %v5188_v61 = vmul.f32 %v9411_v5, %v5166_v8  ;;  %v5165_v51 = vmul.f32 %v6991_v37, %v5117_v58  ;;  %v5137_v41 = vadd.f32 1e-05, %v5105_v14  ;;  %v4978_v57 = vpop.xlane.xlu0 %4977 }
 0xa25   : > { %5244 = vst [vmem:[%s7222_s29 + $0x38] sm:$0xff] %v5228_v2  ;;  %v9477_v59 = vmul.f32 0.0078125, %v4978_v57  ;;  %v5078_v38 = vmul.f32 %v9475_v9, %v9475_v9  ;;  %v5122_v52 = vsub.f32 %v9343_v40, %v9443_v20  ;;  %v5079_v46 = vmul.f32 %v9493_v56, %v9493_v56  ;;  %v9908_v2 = vld [vmem:[#allocation15_spill] sm:$0xff] }
 0xa26   : > { %v5227_v55 = vadd.f32 %v5211_v47, %v9905_v44  ;;  %v5210_v30 = vadd.f32 %v9420_v7, %v5188_v61  ;;  %v5187_v6 = vmul.f32 %v9411_v5, %v5165_v51  ;;  %6998 = vrsqrt.f32 %v5137_v41  ;;  %v5044_v17 = vpop.xlane.xlu1 %5043  ;;  %v9909_v44 = vld [vmem:[#allocation14_spill] sm:$0xff] }
 0xa27   : > { %v5062_v15 = vmul.f32 0.0078125, %v5044_v17  ;;  %v5077_v22 = vmul.f32 %v9477_v59, %v9477_v59  ;;  %v5121_v40 = vsub.f32 %v9347_v63, %v9456_v32  ;;  %v9910_v32 = vld [vmem:[#allocation17_spill] sm:$0xff] }
 0xa28   : > { %5243 = vst [vmem:[%s7222_s29 + $0x30] sm:$0xff] %v5227_v55  ;;  %v5226_v21 = vadd.f32 %v5210_v30, %v9906_v28  ;;  %v5209_v3 = vadd.f32 %v9420_v7, %v5187_v6  ;;  %v5042_v10 = vpop.xlane.xlu0 %5041  ;;  %v9911_v28 = vld [vmem:[#allocation16_spill] sm:$0xff] }
 0xa29   : > { %v5061_v24 = vmul.f32 0.0078125, %v5042_v10  ;;  %v5094_v62 = vsub.f32 %v5062_v15, %v5078_v38  ;;  %v5125_v15 = vsub.f32 %v9371_v33, %v9477_v59 }
 0xa2a   : > { %5242 = vst [vmem:[%s7222_s29 + $0x28] sm:$0xff] %v5226_v21  ;;  %v5225_v11 = vadd.f32 %v5209_v3, %v9907_v36  ;;  %v5048_v27 = vpop.xlane.xlu1 %5047  ;;  %v5126_v3 = vsub.f32 %v9367_v1, %v9475_v9  ;;  %v5128_v36 = vsub.f32 %v9360_v19, %v9482_v43  ;;  %v5127_v1 = vsub.f32 %v9363_v39, %v9493_v56  ;;  %v9914_v39 = vld [vmem:[#allocation9_spill] sm:$0xff] }
 0xa2b   : > { %v5093_v16 = vsub.f32 %v5061_v24, %v5077_v22  ;;  %v5064_v34 = vmul.f32 0.0078125, %v5048_v27  ;;  %v5110_v35 = vmax.f32 %v5094_v62, 0.0 }
 0xa2c   : > { %v6993_v45 = vpop.eup %6992  ;;  %5241 = vst [vmem:[%s7222_s29 + $0x20] sm:$0xff] %v5225_v11  ;;  %v5046_v53 = vpop.xlane.xlu0 %5045 }
 0xa2d   : > { %v5172_v42 = vmul.f32 %v6993_v45, %v5124_v23  ;;  %v5109_v60 = vmax.f32 %v5093_v16, 0.0  ;;  %v5096_v12 = vsub.f32 %v5064_v34, %v5080_v48  ;;  %v5063_v49 = vmul.f32 0.0078125, %v5046_v53  ;;  %v9912_v48 = vld [vmem:[#allocation11_spill] sm:$0xff]  ;;  %v9913_v34 = vld [vmem:[#allocation10_spill] sm:$0xff] }
 0xa2e   : > { %v6995_v31 = vpop.eup %6994  ;;  %v5142_v29 = vadd.f32 1e-05, %v5110_v35 }
 0xa2f   : > { %v5194_v18 = vmul.f32 %v9411_v5, %v5172_v42  ;;  %v5171_v54 = vmul.f32 %v6995_v31, %v5123_v50  ;;  %v5141_v58 = vadd.f32 1e-05, %v5109_v60  ;;  %v5112_v0 = vmax.f32 %v5096_v12, 0.0  ;;  %v9915_v42 = vld [vmem:[#allocation8_spill] sm:$0xff] }
 0xa30   : > { %v6997_v13 = vpop.eup %6996  ;;  %7000 = vrsqrt.f32 %v5142_v29  ;;  %v5095_v26 = vsub.f32 %v5063_v49, %v5079_v46 }
 0xa31   : > { %v5216_v8 = vadd.f32 %v9420_v7, %v5194_v18  ;;  %v5193_v14 = vmul.f32 %v9411_v5, %v5171_v54  ;;  %v5170_v25 = vmul.f32 %v6997_v13, %v5122_v52  ;;  %7002 = vrsqrt.f32 %v5141_v58 }
 0xa32   : > { %v5144_v20 = vadd.f32 1e-05, %v5112_v0  ;;  %v5111_v37 = vmax.f32 %v5095_v26, 0.0 }
 0xa33   : > { %v6999_v4 = vpop.eup %6998  ;;  %v5232_v47 = vadd.f32 %v5216_v8, %v9908_v2  ;;  %v5215_v61 = vadd.f32 %v9420_v7, %v5193_v14  ;;  %v5192_v51 = vmul.f32 %v9411_v5, %v5170_v25 }
 0xa34   : > { %v5169_v41 = vmul.f32 %v6999_v4, %v5121_v40  ;;  %7004 = vrsqrt.f32 %v5144_v20  ;;  %v5143_v57 = vadd.f32 1e-05, %v5111_v37 }
 0xa35   : > { %5248 = vst [vmem:[%s7222_s29 + $0x58] sm:$0xff] %v5232_v47  ;;  %v5231_v55 = vadd.f32 %v5215_v61, %v9909_v44  ;;  %v5214_v30 = vadd.f32 %v9420_v7, %v5192_v51 }
 0xa36   : > { %v5191_v63 = vmul.f32 %v9411_v5, %v5169_v41  ;;  %7006 = vrsqrt.f32 %v5143_v57 }
 0xa37   : > { %5247 = vst [vmem:[%s7222_s29 + $0x50] sm:$0xff] %v5231_v55  ;;  %v5230_v6 = vadd.f32 %v5214_v30, %v9910_v32 }
 0xa38   : > { %v5213_v17 = vadd.f32 %v9420_v7, %v5191_v63 }
 0xa39   : > { %5246 = vst [vmem:[%s7222_s29 + $0x48] sm:$0xff] %v5230_v6 }
 0xa3a   : > { %v5229_v21 = vadd.f32 %v5213_v17, %v9911_v28 }
 0xa3c   : > { %5245 = vst [vmem:[%s7222_s29 + $0x40] sm:$0xff] %v5229_v21 }
 0xa3d   : > { %v7001_v38 = vpop.eup %7000 }
 0xa3e   : > { %v7003_v10 = vpop.eup %7002  ;;  %v5174_v22 = vmul.f32 %v7001_v38, %v5126_v3 }
 0xa3f   : > { %v5173_v24 = vmul.f32 %v7003_v10, %v5125_v15 }
 0xa40   : > { %v5196_v11 = vmul.f32 %v9411_v5, %v5174_v22 }
 0xa41   : > { %v7005_v62 = vpop.eup %7004  ;;  %v5195_v27 = vmul.f32 %v9411_v5, %v5173_v24 }
 0xa42   : > { %v5218_v9 = vadd.f32 %v9420_v7, %v5196_v11  ;;  %v5176_v33 = vmul.f32 %v7005_v62, %v5128_v36 }
 0xa43   : > { %v7007_v59 = vpop.eup %7006  ;;  %v5217_v23 = vadd.f32 %v9420_v7, %v5195_v27 }
 0xa44   : > { %v5234_v16 = vadd.f32 %v5218_v9, %v9912_v48  ;;  %v5198_v19 = vmul.f32 %v9411_v5, %v5176_v33  ;;  %v5175_v43 = vmul.f32 %v7007_v59, %v5127_v1 }
 0xa45   : > { %v5233_v45 = vadd.f32 %v5217_v23, %v9913_v34 }
 0xa46   : > { %5250 = vst [vmem:[%s7222_s29 + $0x68] sm:$0xff] %v5234_v16  ;;  %v5220_v50 = vadd.f32 %v9420_v7, %v5198_v19  ;;  %v5197_v35 = vmul.f32 %v9411_v5, %v5175_v43 }
 0xa47   : > { %5249 = vst [vmem:[%s7222_s29 + $0x60] sm:$0xff] %v5233_v45 }
 0xa48   : > { %v5236_v56 = vadd.f32 %v5220_v50, %v9914_v39  ;;  %v5219_v53 = vadd.f32 %v9420_v7, %v5197_v35 }
 0xa4a   : > { %5252 = vst [vmem:[%s7222_s29 + $0x78] sm:$0xff] %v5236_v56  ;;  %v5235_v60 = vadd.f32 %v5219_v53, %v9915_v42 }
 0xa4c   : > { %5251 = vst [vmem:[%s7222_s29 + $0x70] sm:$0xff] %v5235_v60 }
 0xa4d PF: > { %s9916_s3 = sld [smem:[#allocation5_spill]] }
 0xa4e   : > { %s9917_s5 = sld [smem:[#allocation3_spill]] }
 0xa4f   : > { %s9918_s26 = sld [smem:[#allocation4_spill]] }
 0xa50   : > { %s9919_s27 = sld [smem:[#allocation6_spill]] }
 0xa51   : > { %s9920_s28 = sld [smem:[#allocation7_spill]] }
 0xa53   : > { %s35_s6 = sadd.s32 1, %s9916_s3  }
 0xa54   : > { %p32_p9 = scmp.ge.s32.totalorder %s35_s6, 6  }
 0xa56   :  { %34 = sbr.rel (!%p32_p9) target bundleno = 17 (0x11), region = 171 }

</bundles_post_ra>
